<compile_context>
chip_gen: v5e
topology: v5e:2x2
jax: 0.10.0
libtpu: 0.0.40
codegen_flags: <defaults>
</compile_context>

<pallas_src>
import functools

import jax
import jax.numpy as jnp
from jax.experimental import pallas as pl
from jax.experimental.pallas import tpu as pltpu

BN_EPS = 1e-5


# ------------------------------ spec helpers ------------------------------- #
def _const_spec(shape):
    """Full-array block, invariant over the (b, t) grid (VMEM-resident weights)."""
    return pl.BlockSpec(shape, lambda bi, ti: (0,) * len(shape))


def _full_spec(shape):
    """Full-array block for a grid-less pallas_call."""
    return pl.BlockSpec(shape, lambda: (0,) * len(shape))


def _pick_tile(n, max_tile=256):
    for t in (512, 256, 128, 64, 32, 16, 8):
        if t <= max_tile and n % t == 0:
            return t
    return n


# --------------------------- stage 1: conv + pool --------------------------- #
def _conv_pool_kernel(x_ref, w1_ref, s1_ref, w2_ref, s2_ref, w3_ref, s3_ref,
                      pool_ref):
    """One point-tile of one cloud: conv1->conv2->conv3->running max.

    x_ref    : (1, tile_n, kpad) bf16   points as rows, channels on lanes
    w*_ref   : (Cin, Cout)       bf16   BN-scale folded in
    s*_ref   : (1, Cout)         f32    folded bias/BN shift rows
    pool_ref : (1, 1, 1024)      f32    per-cloud pooled features (accumulator)
    """
    t = pl.program_id(1)

    x = x_ref[0]                                                     # (tile_n, kpad)
    h = jnp.dot(x, w1_ref[...], preferred_element_type=jnp.float32)
    h = jnp.maximum(h + s1_ref[...], 0.0)                            # (tile_n, 64)
    h = jnp.dot(h.astype(jnp.bfloat16), w2_ref[...],
                preferred_element_type=jnp.float32)
    h = jnp.maximum(h + s2_ref[...], 0.0)                            # (tile_n, 128)
    h = jnp.dot(h.astype(jnp.bfloat16), w3_ref[...],
                preferred_element_type=jnp.float32)
    h = jnp.maximum(h + s3_ref[...], 0.0)                            # (tile_n, 1024)

    tile_max = jnp.max(h, axis=0, keepdims=True)                     # (1, 1024)

    @pl.when(t == 0)
    def _():
        pool_ref[0] = tile_max

    @pl.when(t > 0)
    def _():
        pool_ref[0] = jnp.maximum(pool_ref[0], tile_max)


# ------------------------------ stage 2: FCs -------------------------------- #
def _fc_kernel(g_ref, f1_ref, s4_ref, f2_ref, s5_ref, f3_ref, b3_ref, out_ref):
    """fc1 -> fc2 -> fc3 (+identity folded into b3), batched & lane-dense.

    g_ref   : (B, 1024) f32 pooled features
    f3_ref  : (256, 128) bf16 (zero-padded to 128 lanes)
    b3_ref  : (1, 128)   f32  fc3 bias + flattened identity, zero-padded
    out_ref : (B, 128)   f32
    """
    g = g_ref[...].astype(jnp.bfloat16)                              # (B, 1024)
    g = jnp.maximum(jnp.dot(g, f1_ref[...],
                            preferred_element_type=jnp.float32) + s4_ref[...],
                    0.0)                                             # (B, 512)
    g = jnp.maximum(jnp.dot(g.astype(jnp.bfloat16), f2_ref[...],
                            preferred_element_type=jnp.float32) + s5_ref[...],
                    0.0)                                             # (B, 256)
    out_ref[...] = jnp.dot(g.astype(jnp.bfloat16), f3_ref[...],
                           preferred_element_type=jnp.float32) + b3_ref[...]


# ------------------------------ thin wrapper -------------------------------- #
def tnet_batch_forward(x, fp, *, tile_n=None):
    """x: (B, k, N) float32 point clouds (Conv1d NCW layout) -> (B, k, k)."""
    b, k, n = x.shape
    kk = k * k
    kpad = fp['w1'].shape[0]
    c3 = fp['w3'].shape[1]                 # 1024
    kk_pad = fp['f3'].shape[1]             # lane-padded fc3 width

    if tile_n is None:
        tile_n = _pick_tile(n)
    assert n % tile_n == 0
    t_steps = n // tile_n

    # Layout plumbing only: points as rows, channels on lanes, pad k -> kpad, bf16.
    x_rows = jnp.transpose(x, (0, 2, 1))                             # (B, N, k)
    x_rows = jnp.pad(x_rows, ((0, 0), (0, 0), (0, kpad - k)))
    x_rows = x_rows.astype(jnp.bfloat16)

    pooled = pl.pallas_call(
        _conv_pool_kernel,
        out_shape=jax.ShapeDtypeStruct((b, 1, c3), jnp.float32),
        grid=(b, t_steps),
        in_specs=[
            pl.BlockSpec((1, tile_n, kpad), lambda bi, ti: (bi, ti, 0)),
            _const_spec(fp['w1'].shape), _const_spec(fp['s1'].shape),
            _const_spec(fp['w2'].shape), _const_spec(fp['s2'].shape),
            _const_spec(fp['w3'].shape), _const_spec(fp['s3'].shape),
        ],
        out_specs=pl.BlockSpec((1, 1, c3), lambda bi, ti: (bi, 0, 0)),
        compiler_params=pltpu.CompilerParams(
            dimension_semantics=("parallel", "arbitrary"),
            vmem_limit_bytes=32 * 1024 * 1024,
        ),
    )(x_rows, fp['w1'], fp['s1'], fp['w2'], fp['s2'], fp['w3'], fp['s3'])

    g = pooled.reshape(b, c3)                                        # (B, 1024)

    out_pad = pl.pallas_call(
        _fc_kernel,
        out_shape=jax.ShapeDtypeStruct((b, kk_pad), jnp.float32),
        in_specs=[
            _full_spec((b, c3)),
            _full_spec(fp['f1'].shape), _full_spec(fp['s4'].shape),
            _full_spec(fp['f2'].shape), _full_spec(fp['s5'].shape),
            _full_spec(fp['f3'].shape), _full_spec(fp['b3'].shape),
        ],
        out_specs=_full_spec((b, kk_pad)),
        compiler_params=pltpu.CompilerParams(
            vmem_limit_bytes=32 * 1024 * 1024),
    )(g, fp['f1'], fp['s4'], fp['f2'], fp['s5'], fp['f3'], fp['b3'])

    return out_pad[:, :kk].reshape(b, k, k)


# ---------------------------- parameter handling ---------------------------- #
def init_linear(key, cout, cin):
    k1, k2 = jax.random.split(key)
    scale = 1.0 / jnp.sqrt(jnp.float32(cin))
    w = jax.random.uniform(k1, (cout, cin), jnp.float32, -scale, scale)
    b = jax.random.uniform(k2, (cout,), jnp.float32, -scale, scale)
    return w, b


def init_bn(key, c):
    k1, k2, k3, k4 = jax.random.split(key, 4)
    gamma = 1.0 + 0.1 * jax.random.normal(k1, (c,), jnp.float32)
    beta = 0.1 * jax.random.normal(k2, (c,), jnp.float32)
    mean = 0.1 * jax.random.normal(k3, (c,), jnp.float32)
    var = jax.random.uniform(k4, (c,), jnp.float32, 0.5, 1.5)
    return gamma, beta, mean, var


def init_tnet_params(key, k=3):
    ks = jax.random.split(key, 11)
    p = {}
    p['conv1'] = init_linear(ks[0], 64, k)
    p['conv2'] = init_linear(ks[1], 128, 64)
    p['conv3'] = init_linear(ks[2], 1024, 128)
    p['fc1'] = init_linear(ks[3], 512, 1024)
    p['fc2'] = init_linear(ks[4], 256, 512)
    p['fc3'] = init_linear(ks[5], k * k, 256)
    p['bn1'] = init_bn(ks[6], 64)
    p['bn2'] = init_bn(ks[7], 128)
    p['bn3'] = init_bn(ks[8], 1024)
    p['bn4'] = init_bn(ks[9], 512)
    p['bn5'] = init_bn(ks[10], 256)
    return p


def fold_params(p, k=3, kpad=8):
    """Fold inference-mode BN + bias into transposed bf16 weights + f32 shifts."""
    def fold_bn(wb, bn, pad_in=None):
        w, b = wb
        gamma, beta, mean, var = bn
        scale = gamma * jax.lax.rsqrt(var + BN_EPS)                  # (Cout,)
        w_eff = (w * scale[:, None]).T                               # (Cin, Cout)
        if pad_in is not None and pad_in > w_eff.shape[0]:
            w_eff = jnp.pad(w_eff, ((0, pad_in - w_eff.shape[0]), (0, 0)))
        shift = (beta + (b - mean) * scale).reshape(1, -1).astype(jnp.float32)
        return w_eff.astype(jnp.bfloat16), shift

    fp = {}
    fp['w1'], fp['s1'] = fold_bn(p['conv1'], p['bn1'], pad_in=kpad)
    fp['w2'], fp['s2'] = fold_bn(p['conv2'], p['bn2'])
    fp['w3'], fp['s3'] = fold_bn(p['conv3'], p['bn3'])
    fp['f1'], fp['s4'] = fold_bn(p['fc1'], p['bn4'])
    fp['f2'], fp['s5'] = fold_bn(p['fc2'], p['bn5'])

    # fc3: no BN; fold "+ identity" into the bias and zero-pad to 128 lanes.
    w3, b3 = p['fc3']
    kk = k * k
    kk_pad = ((kk + 127) // 128) * 128
    f3 = jnp.pad(w3.T, ((0, 0), (0, kk_pad - kk))).astype(jnp.bfloat16)
    bias_full = b3 + jnp.eye(k, dtype=jnp.float32).reshape(-1)       # row-major
    fp['f3'] = f3                                                    # (256, kk_pad)
    fp['b3'] = jnp.pad(bias_full, (0, kk_pad - kk)).reshape(1, kk_pad)
    fp['b3'] = fp['b3'].astype(jnp.float32)
    return fp


# ------------------------------ pure-JAX reference -------------------------- #
def tnet_batch_reference(x, p, k=3):
    def conv(h, wb, bn):
        w, bias = wb
        gamma, beta, mean, var = bn
        y = jnp.einsum('oc,bcn->bon', w, h) + bias[None, :, None]
        y = ((y - mean[None, :, None]) * jax.lax.rsqrt(var[None, :, None] + BN_EPS)
             * gamma[None, :, None] + beta[None, :, None])
        return jnp.maximum(y, 0.0)

    def fc(h, wb, bn):
        w, bias = wb
        gamma, beta, mean, var = bn
        y = h @ w.T + bias
        y = (y - mean) * jax.lax.rsqrt(var + BN_EPS) * gamma + beta
        return jnp.maximum(y, 0.0)

    h = conv(x, p['conv1'], p['bn1'])
    h = conv(h, p['conv2'], p['bn2'])
    h = conv(h, p['conv3'], p['bn3'])
    g = jnp.max(h, axis=-1)                                          # (B, 1024)
    g = fc(g, p['fc1'], p['bn4'])
    g = fc(g, p['fc2'], p['bn5'])
    w, bias = p['fc3']
    m = g @ w.T + bias
    return m.reshape(-1, k, k) + jnp.eye(k, dtype=jnp.float32)[None]


if __name__ == "__main__":
    key = jax.random.PRNGKey(0)
    pkey, xkey = jax.random.split(key)

    BATCH, K, N_POINTS = 2, 3, 512          # grid = (2 batches, 2 point-tiles)
    raw = init_tnet_params(pkey, K)
    folded = fold_params(raw, K)
    x = jax.random.normal(xkey, (BATCH, K, N_POINTS), jnp.float32)

    fwd = jax.jit(tnet_batch_forward)
    out = fwd(x, folded)
    jax.block_until_ready(out)

    assert out.shape == (BATCH, K, K), out.shape
    assert jnp.all(jnp.isfinite(out))

    ref = tnet_batch_reference(x, raw, K)
    max_err = float(jnp.max(jnp.abs(out - ref)))
    assert max_err < 0.1, f"max abs error vs f32 reference too large: {max_err}"

    print("KERNEL_OK")
</pallas_src>

<mosaic_0001>
module attributes {stable_mosaic.version = 11 : i64} {
  func.func @_conv_pool_kernel(%arg0: i32, %arg1: i32, %arg2: memref<1x256x8xbf16, #tpu.memory_space<vmem>>, %arg3: memref<8x64xbf16, #tpu.memory_space<vmem>>, %arg4: memref<1x64xf32, #tpu.memory_space<vmem>>, %arg5: memref<64x128xbf16, #tpu.memory_space<vmem>>, %arg6: memref<1x128xf32, #tpu.memory_space<vmem>>, %arg7: memref<128x1024xbf16, #tpu.memory_space<vmem>>, %arg8: memref<1x1024xf32, #tpu.memory_space<vmem>>, %arg9: memref<1x1x1024xf32, #tpu.memory_space<vmem>>) attributes {dimension_semantics = [#tpu.dimension_semantics<parallel>, #tpu.dimension_semantics<arbitrary>], iteration_bounds = array<i64: 2, 2>, scalar_prefetch = 0 : i64, scratch_operands = 0 : i64, tpu.core_type = #tpu.core_type<tc>, window_params = [{transform_indices = @transform_0, window_bounds = array<i64: 1, 256, 8>}, {pipeline_mode = #tpu.pipeline_mode<synchronous>, transform_indices = @transform_1, window_bounds = array<i64: 8, 64>}, {pipeline_mode = #tpu.pipeline_mode<synchronous>, transform_indices = @transform_2, window_bounds = array<i64: 1, 64>}, {pipeline_mode = #tpu.pipeline_mode<synchronous>, transform_indices = @transform_3, window_bounds = array<i64: 64, 128>}, {pipeline_mode = #tpu.pipeline_mode<synchronous>, transform_indices = @transform_4, window_bounds = array<i64: 1, 128>}, {pipeline_mode = #tpu.pipeline_mode<synchronous>, transform_indices = @transform_5, window_bounds = array<i64: 128, 1024>}, {pipeline_mode = #tpu.pipeline_mode<synchronous>, transform_indices = @transform_6, window_bounds = array<i64: 1, 1024>}, {transform_indices = @transform_7, window_bounds = array<i64: 1, 1, 1024>}]} {
    %c0 = arith.constant 0 : index
    %c0_0 = arith.constant 0 : index
    %c0_1 = arith.constant 0 : index
    %0 = vector.load %arg2[%c0, %c0_0, %c0_1] : memref<1x256x8xbf16, #tpu.memory_space<vmem>>, vector<1x256x8xbf16>
    %1 = vector.shape_cast %0 : vector<1x256x8xbf16> to vector<256x8xbf16>
    %c0_2 = arith.constant 0 : index
    %c0_3 = arith.constant 0 : index
    %2 = vector.load %arg3[%c0_2, %c0_3] : memref<8x64xbf16, #tpu.memory_space<vmem>>, vector<8x64xbf16>
    %cst = arith.constant dense<0.000000e+00> : vector<256x64xf32>
    %3 = tpu.matmul %1, %2, %cst {dimension_numbers = #tpu.dot_dimension_numbers<[1], [0], [0], [1], [0, 0, 1, 1], [], []>} : vector<256x8xbf16>, vector<8x64xbf16>, vector<256x64xf32> -> vector<256x64xf32>
    %c0_4 = arith.constant 0 : index
    %c0_5 = arith.constant 0 : index
    %4 = vector.load %arg4[%c0_4, %c0_5] : memref<1x64xf32, #tpu.memory_space<vmem>>, vector<1x64xf32>
    %5 = vector.broadcast %4 : vector<1x64xf32> to vector<256x64xf32>
    %6 = arith.addf %3, %5 : vector<256x64xf32>
    %cst_6 = arith.constant 0.000000e+00 : f32
    %7 = vector.broadcast %cst_6 : f32 to vector<256x64xf32>
    %8 = arith.maximumf %6, %7 : vector<256x64xf32>
    %9 = arith.truncf %8 : vector<256x64xf32> to vector<256x64xbf16>
    %c0_7 = arith.constant 0 : index
    %c0_8 = arith.constant 0 : index
    %10 = vector.load %arg5[%c0_7, %c0_8] : memref<64x128xbf16, #tpu.memory_space<vmem>>, vector<64x128xbf16>
    %cst_9 = arith.constant dense<0.000000e+00> : vector<256x128xf32>
    %11 = tpu.matmul %9, %10, %cst_9 {dimension_numbers = #tpu.dot_dimension_numbers<[1], [0], [0], [1], [0, 0, 1, 1], [], []>} : vector<256x64xbf16>, vector<64x128xbf16>, vector<256x128xf32> -> vector<256x128xf32>
    %c0_10 = arith.constant 0 : index
    %c0_11 = arith.constant 0 : index
    %12 = vector.load %arg6[%c0_10, %c0_11] : memref<1x128xf32, #tpu.memory_space<vmem>>, vector<1x128xf32>
    %13 = vector.broadcast %12 : vector<1x128xf32> to vector<256x128xf32>
    %14 = arith.addf %11, %13 : vector<256x128xf32>
    %cst_12 = arith.constant 0.000000e+00 : f32
    %15 = vector.broadcast %cst_12 : f32 to vector<256x128xf32>
    %16 = arith.maximumf %14, %15 : vector<256x128xf32>
    %17 = arith.truncf %16 : vector<256x128xf32> to vector<256x128xbf16>
    %c0_13 = arith.constant 0 : index
    %c0_14 = arith.constant 0 : index
    %18 = vector.load %arg7[%c0_13, %c0_14] : memref<128x1024xbf16, #tpu.memory_space<vmem>>, vector<128x1024xbf16>
    %cst_15 = arith.constant dense<0.000000e+00> : vector<256x1024xf32>
    %19 = tpu.matmul %17, %18, %cst_15 {dimension_numbers = #tpu.dot_dimension_numbers<[1], [0], [0], [1], [0, 0, 1, 1], [], []>} : vector<256x128xbf16>, vector<128x1024xbf16>, vector<256x1024xf32> -> vector<256x1024xf32>
    %c0_16 = arith.constant 0 : index
    %c0_17 = arith.constant 0 : index
    %20 = vector.load %arg8[%c0_16, %c0_17] : memref<1x1024xf32, #tpu.memory_space<vmem>>, vector<1x1024xf32>
    %21 = vector.broadcast %20 : vector<1x1024xf32> to vector<256x1024xf32>
    %22 = arith.addf %19, %21 : vector<256x1024xf32>
    %cst_18 = arith.constant 0.000000e+00 : f32
    %23 = vector.broadcast %cst_18 : f32 to vector<256x1024xf32>
    %24 = arith.maximumf %22, %23 : vector<256x1024xf32>
    %cst_19 = arith.constant dense<0xFF800000> : vector<1024xf32>
    %25 = vector.multi_reduction <maximumf>, %24, %cst_19 [0] : vector<256x1024xf32> to vector<1024xf32>
    %26 = vector.shape_cast %25 : vector<1024xf32> to vector<1x1024xf32>
    %c0_i32 = arith.constant 0 : i32
    %27 = arith.cmpi eq, %arg1, %c0_i32 : i32
    %28 = arith.extui %27 : i1 to i32
    %c0_i32_20 = arith.constant 0 : i32
    %29 = arith.cmpi ne, %28, %c0_i32_20 : i32
    scf.if %29 {
      %c0_23 = arith.constant 0 : index
      %c0_24 = arith.constant 0 : index
      %c0_25 = arith.constant 0 : index
      %33 = vector.load %arg9[%c0_23, %c0_24, %c0_25] : memref<1x1x1024xf32, #tpu.memory_space<vmem>>, vector<1x1x1024xf32>
      %34 = vector.shape_cast %33 : vector<1x1x1024xf32> to vector<1x1024xf32>
      %35 = vector.shape_cast %26 : vector<1x1024xf32> to vector<1x1x1024xf32>
      tpu.vector_store %arg9[%c0_23, %c0_24, %c0_25], %35 {strides = array<i32>} : memref<1x1x1024xf32, #tpu.memory_space<vmem>>, vector<1x1x1024xf32>,
    } else {
    }
    %c0_i32_21 = arith.constant 0 : i32
    %30 = arith.cmpi sgt, %arg1, %c0_i32_21 : i32
    %31 = arith.extui %30 : i1 to i32
    %c0_i32_22 = arith.constant 0 : i32
    %32 = arith.cmpi ne, %31, %c0_i32_22 : i32
    scf.if %32 {
      %c0_23 = arith.constant 0 : index
      %c0_24 = arith.constant 0 : index
      %c0_25 = arith.constant 0 : index
      %33 = vector.load %arg9[%c0_23, %c0_24, %c0_25] : memref<1x1x1024xf32, #tpu.memory_space<vmem>>, vector<1x1x1024xf32>
      %34 = vector.shape_cast %33 : vector<1x1x1024xf32> to vector<1x1024xf32>
      %35 = arith.maximumf %34, %26 : vector<1x1024xf32>
      %c0_26 = arith.constant 0 : index
      %c0_27 = arith.constant 0 : index
      %c0_28 = arith.constant 0 : index
      %36 = vector.load %arg9[%c0_26, %c0_27, %c0_28] : memref<1x1x1024xf32, #tpu.memory_space<vmem>>, vector<1x1x1024xf32>
      %37 = vector.shape_cast %36 : vector<1x1x1024xf32> to vector<1x1024xf32>
      %38 = vector.shape_cast %35 : vector<1x1024xf32> to vector<1x1x1024xf32>
      tpu.vector_store %arg9[%c0_26, %c0_27, %c0_28], %38 {strides = array<i32>} : memref<1x1x1024xf32, #tpu.memory_space<vmem>>, vector<1x1x1024xf32>,
    } else {
    }
    return
  }
  func.func @transform_0(%arg0: i32, %arg1: i32) -> (i32, i32, i32) {
    %c0_i32 = arith.constant 0 : i32
    %c0_i32_0 = arith.constant 0 : i32
    return %arg0, %arg1, %c0_i32 : i32, i32, i32
  }
  func.func @transform_1(%arg0: i32, %arg1: i32) -> (i32, i32) {
    %c0_i32 = arith.constant 0 : i32
    %c0_i32_0 = arith.constant 0 : i32
    %c0_i32_1 = arith.constant 0 : i32
    return %c0_i32, %c0_i32_0 : i32, i32
  }
  func.func @transform_2(%arg0: i32, %arg1: i32) -> (i32, i32) {
    %c0_i32 = arith.constant 0 : i32
    %c0_i32_0 = arith.constant 0 : i32
    %c0_i32_1 = arith.constant 0 : i32
    return %c0_i32, %c0_i32_0 : i32, i32
  }
  func.func @transform_3(%arg0: i32, %arg1: i32) -> (i32, i32) {
    %c0_i32 = arith.constant 0 : i32
    %c0_i32_0 = arith.constant 0 : i32
    %c0_i32_1 = arith.constant 0 : i32
    return %c0_i32, %c0_i32_0 : i32, i32
  }
  func.func @transform_4(%arg0: i32, %arg1: i32) -> (i32, i32) {
    %c0_i32 = arith.constant 0 : i32
    %c0_i32_0 = arith.constant 0 : i32
    %c0_i32_1 = arith.constant 0 : i32
    return %c0_i32, %c0_i32_0 : i32, i32
  }
  func.func @transform_5(%arg0: i32, %arg1: i32) -> (i32, i32) {
    %c0_i32 = arith.constant 0 : i32
    %c0_i32_0 = arith.constant 0 : i32
    %c0_i32_1 = arith.constant 0 : i32
    return %c0_i32, %c0_i32_0 : i32, i32
  }
  func.func @transform_6(%arg0: i32, %arg1: i32) -> (i32, i32) {
    %c0_i32 = arith.constant 0 : i32
    %c0_i32_0 = arith.constant 0 : i32
    %c0_i32_1 = arith.constant 0 : i32
    return %c0_i32, %c0_i32_0 : i32, i32
  }
  func.func @transform_7(%arg0: i32, %arg1: i32) -> (i32, i32, i32) {
    %c0_i32 = arith.constant 0 : i32
    %c0_i32_0 = arith.constant 0 : i32
    %c0_i32_1 = arith.constant 0 : i32
    return %arg0, %c0_i32, %c0_i32_0 : i32, i32, i32
  }
}

module attributes {stable_mosaic.version = 11 : i64} {
  func.func @_fc_kernel(%arg0: memref<2x1024xf32, #tpu.memory_space<vmem>>, %arg1: memref<1024x512xbf16, #tpu.memory_space<vmem>>, %arg2: memref<1x512xf32, #tpu.memory_space<vmem>>, %arg3: memref<512x256xbf16, #tpu.memory_space<vmem>>, %arg4: memref<1x256xf32, #tpu.memory_space<vmem>>, %arg5: memref<256x128xbf16, #tpu.memory_space<vmem>>, %arg6: memref<1x128xf32, #tpu.memory_space<vmem>>, %arg7: memref<2x128xf32, #tpu.memory_space<vmem>>) attributes {dimension_semantics = [], scalar_prefetch = 0 : i64, scratch_operands = 0 : i64, tpu.core_type = #tpu.core_type<tc>} {
    %c0 = arith.constant 0 : index
    %c0_0 = arith.constant 0 : index
    %0 = vector.load %arg0[%c0, %c0_0] : memref<2x1024xf32, #tpu.memory_space<vmem>>, vector<2x1024xf32>
    %1 = arith.truncf %0 : vector<2x1024xf32> to vector<2x1024xbf16>
    %c0_1 = arith.constant 0 : index
    %c0_2 = arith.constant 0 : index
    %2 = vector.load %arg1[%c0_1, %c0_2] : memref<1024x512xbf16, #tpu.memory_space<vmem>>, vector<1024x512xbf16>
    %cst = arith.constant dense<0.000000e+00> : vector<2x512xf32>
    %3 = tpu.matmul %1, %2, %cst {dimension_numbers = #tpu.dot_dimension_numbers<[1], [0], [0], [1], [0, 0, 1, 1], [], []>} : vector<2x1024xbf16>, vector<1024x512xbf16>, vector<2x512xf32> -> vector<2x512xf32>
    %c0_3 = arith.constant 0 : index
    %c0_4 = arith.constant 0 : index
    %4 = vector.load %arg2[%c0_3, %c0_4] : memref<1x512xf32, #tpu.memory_space<vmem>>, vector<1x512xf32>
    %5 = vector.broadcast %4 : vector<1x512xf32> to vector<2x512xf32>
    %6 = arith.addf %3, %5 : vector<2x512xf32>
    %cst_5 = arith.constant 0.000000e+00 : f32
    %7 = vector.broadcast %cst_5 : f32 to vector<2x512xf32>
    %8 = arith.maximumf %6, %7 : vector<2x512xf32>
    %9 = arith.truncf %8 : vector<2x512xf32> to vector<2x512xbf16>
    %c0_6 = arith.constant 0 : index
    %c0_7 = arith.constant 0 : index
    %10 = vector.load %arg3[%c0_6, %c0_7] : memref<512x256xbf16, #tpu.memory_space<vmem>>, vector<512x256xbf16>
    %cst_8 = arith.constant dense<0.000000e+00> : vector<2x256xf32>
    %11 = tpu.matmul %9, %10, %cst_8 {dimension_numbers = #tpu.dot_dimension_numbers<[1], [0], [0], [1], [0, 0, 1, 1], [], []>} : vector<2x512xbf16>, vector<512x256xbf16>, vector<2x256xf32> -> vector<2x256xf32>
    %c0_9 = arith.constant 0 : index
    %c0_10 = arith.constant 0 : index
    %12 = vector.load %arg4[%c0_9, %c0_10] : memref<1x256xf32, #tpu.memory_space<vmem>>, vector<1x256xf32>
    %13 = vector.broadcast %12 : vector<1x256xf32> to vector<2x256xf32>
    %14 = arith.addf %11, %13 : vector<2x256xf32>
    %cst_11 = arith.constant 0.000000e+00 : f32
    %15 = vector.broadcast %cst_11 : f32 to vector<2x256xf32>
    %16 = arith.maximumf %14, %15 : vector<2x256xf32>
    %17 = arith.truncf %16 : vector<2x256xf32> to vector<2x256xbf16>
    %c0_12 = arith.constant 0 : index
    %c0_13 = arith.constant 0 : index
    %18 = vector.load %arg5[%c0_12, %c0_13] : memref<256x128xbf16, #tpu.memory_space<vmem>>, vector<256x128xbf16>
    %cst_14 = arith.constant dense<0.000000e+00> : vector<2x128xf32>
    %19 = tpu.matmul %17, %18, %cst_14 {dimension_numbers = #tpu.dot_dimension_numbers<[1], [0], [0], [1], [0, 0, 1, 1], [], []>} : vector<2x256xbf16>, vector<256x128xbf16>, vector<2x128xf32> -> vector<2x128xf32>
    %c0_15 = arith.constant 0 : index
    %c0_16 = arith.constant 0 : index
    %20 = vector.load %arg6[%c0_15, %c0_16] : memref<1x128xf32, #tpu.memory_space<vmem>>, vector<1x128xf32>
    %21 = vector.broadcast %20 : vector<1x128xf32> to vector<2x128xf32>
    %22 = arith.addf %19, %21 : vector<2x128xf32>
    %c0_17 = arith.constant 0 : index
    %c0_18 = arith.constant 0 : index
    %23 = vector.load %arg7[%c0_17, %c0_18] : memref<2x128xf32, #tpu.memory_space<vmem>>, vector<2x128xf32>
    tpu.vector_store %arg7[%c0_17, %c0_18], %22 {strides = array<i32>} : memref<2x128xf32, #tpu.memory_space<vmem>>, vector<2x128xf32>,
    return
  }
}

</mosaic_0001>

<bundles_post_ra>
// kernel: tnet_batch_forward.2
= control target key start
LH: loop header
LB: loop body
LE: loop exit
PB: predicated region body
PF: predicated region fallthrough
CT: control target
= control target key end

     0   :  { %s3242_s24 = smov 0   ;;  %s3244_s25 = smov 0   ;;  %s4387_s0 = inlined_call_operand.vmem [shape: bf16[2,512,8], index: 0, kind: input, shape index: {}]   ;;  %s4388_s1 = inlined_call_operand.vmem [shape: bf16[8,64], index: 1, kind: input, shape index: {}]   ;;  %s4389_s2 = inlined_call_operand.vmem [shape: f32[1,64], index: 2, kind: input, shape index: {}]   ;;  %s4390_s3 = inlined_call_operand.vmem [shape: bf16[64,128], index: 3, kind: input, shape index: {}]   ;;  %s4391_s4 = inlined_call_operand.vmem [shape: f32[1,128], index: 4, kind: input, shape index: {}]   ;;  %s4392_s5 = inlined_call_operand.vmem [shape: bf16[128,1024], index: 5, kind: input, shape index: {}]   ;;  %s4393_s6 = inlined_call_operand.vmem [shape: f32[1,1024], index: 6, kind: input, shape index: {}]   ;;  %s4394_s7 = inlined_call_operand.vmem [shape: f32[2,1,1024], index: 7, kind: output, shape index: {}]  }
   0x1   :  { %s3246_s26 = smov 0   ;;  %s3248_s27 = smov 0  }
   0x2   :  { %s3250_s28 = smov 0  }
   0x3 LB: > { %s26_s29 = sadd.s32 1, %s3192_s26  ;;  %s29_s30 = sadd.s32 1, %s3196_s27  ;;  %s3200_s28 = sphi %s3250_s28, %s17_s28   ;;  %s3196_s27 = sphi %s3248_s27, %s4398_s27   ;;  %s3192_s26 = sphi %s3246_s26, %s4397_s26   ;;  %s3188_s25 = sphi %s3244_s25, %s4396_s25   ;;  %s3184_s24 = sphi %s3242_s24, %s4395_s24  }
   0x4   : > { %p27_p0 = scmp.ge.s32.totalorder %s26_s29, 2  ;;  %p2645_p1 = scmp.ge.s32.totalorder %s3200_s28, 1 }
   0x5   : > { %p256_p2 = scmp.lt.s32.totalorder %s3200_s28, 5 }
   0x6   : > { %s4400_s29 = smov (%p27_p0, %s26_s29), 0  ;;  %s4402_s30 = smov (!%p27_p0, %s29_s30), %s3196_s27 }
   0x7   : > { %p257_p3 = pnand %p2645_p1, %p256_p2  ;;  %p31_p4 = scmp.ge.s32.totalorder %s4402_s30, 2 }
   0x8   : > { %s2646_s10 = sshll.u32 (!%p257_p3), %s3184_s24, 5  ;;  %p292_p5 = scmp.lt.s32.totalorder (!%p257_p3), %s3188_s25, 1 }
   0x9   : > { %s4404_s30 = smov (%p31_p4, %s4402_s30), 0  ;;  %260 = sbr.rel (%p257_p3) target bundleno = 994 (0x3e2), region = 48 }
   0xa   : > { %p294_p6 = scmp.lt.s32.totalorder (!%p257_p3), %s2646_s10, 63  ;;  %p3018_p7 = scmp.ne.s32.totalorder (!%p257_p3), %s3184_s24, 0 }
   0xe   : > { %v338_v0 = vld [vmem:[%s4388_s1] sm:$0xf]  ;;  %vm472_vm0 = vcmask 1043456   ;;  %s4406_s25 = smov (!%p292_p5, %s3188_s25), 1  ;;  %s4408_s10 = smov (!%p294_p6, %s2646_s10), 63  ;;  %vm423_vm1 = vcmask 64512  }
   0xf   : > { %v474_v1 = vsel %vm472_vm0, %v338_v0, 0  ;;  %s2647_s11 = sshll.u32 %s4406_s25, 6  ;;  %s2649_s12 = sshll.u32 %s4406_s25, 3  ;;  %v3041_v14 = vld [vmem:[%s4390_s3 + $0x18] sm:$0xff]  ;;  %v3040_v17 = vld [vmem:[%s4390_s3 + $0x10] sm:$0xff]  ;;  %v3039_v18 = vld [vmem:[%s4390_s3 + $0x8] sm:$0xff] }
  0x10   : > { %483 = vmatpush.bf16.msra.mxu0 %v474_v1  ;;  %3106 = vmatpush.bf16.msra.mxu3 %v474_v1  ;;  %s297_s13 = sadd.s32 %s2647_s11, %s4408_s10  ;;  %s3282_s16 = scalar_lea.vmem %s4394_s7, %s2649_s12  ;;  %v3038_v19 = vld [vmem:[%s4390_s3] sm:$0xff]  ;;  %v2996_v24 = vld [vmem:[%s4392_s5 + $0x1c8] sm:$0xf]  ;;  %vm649_vm2 = vcmask 523264   ;;  %v3099_v37 = vld [vmem:[%s4392_s5 + $0x1cc] sm:$0xf] }
  0x11   : > { %s2648_s17 = sshll.u32 %s297_s13, 2  ;;  %702 = vmatpush.bf16.msra.mxu1 %v3041_v14  ;;  %3107 = vmatpush.bf16.msra.mxu2 %v3041_v14  ;;  %v3335_v23 = vld [vmem:[%s4389_s2] ss:$0 sm:$0xff]  ;;  %v3103_v25 = vld [vmem:[%s4392_s5 + $0x1e4] sm:$0xf0] }
  0x12   : > { %s3287_s20 = scalar_lea.vmem %s4387_s0, %s2648_s17  ;;  %v2997_v26 = vor.u32 %v3103_v25, %v2996_v24  ;;  %v3098_v34 = vld [vmem:[%s4392_s5 + $0x1c4] sm:$0xf]  ;;  %v2998_v38 = vld [vmem:[%s4392_s5 + $0x1e8] sm:$0xf0]  ;;  %v2964_v47 = vld [vmem:[%s4392_s5 + $0x188] sm:$0xf] }
  0x13   : > { %v3022_v2 = vld [vmem:[%s3287_s20] sm:$0xff]  ;;  %v3031_v3 = vld [vmem:[%s3287_s20 + $0x48] sm:$0xff]  ;;  %v3032_v5 = vld [vmem:[%s3287_s20 + $0x50] sm:$0xff]  ;;  %v3001_v40 = vor.u32 %v3099_v37, %v2998_v38 }
  0x14   : > { %2714 = vmatmul.msk.bf16.vlgmr.msra.gmra.mxu0 %vm423_vm1, %v3022_v2  ;;  %2723 = vmatmul.msk.bf16.vlgmr.msra.gmra.mxu3 %vm423_vm1, %v3031_v3  ;;  %v3023_v4 = vld [vmem:[%s3287_s20 + $0x8] sm:$0xff]  ;;  %v3024_v6 = vld [vmem:[%s3287_s20 + $0x10] sm:$0xff]  ;;  %v3033_v7 = vld [vmem:[%s3287_s20 + $0x58] sm:$0xff] }
  0x15   : > { %v3025_v8 = vld [vmem:[%s3287_s20 + $0x18] sm:$0xff]  ;;  %v3034_v9 = vld [vmem:[%s3287_s20 + $0x60] sm:$0xff]  ;;  %v3035_v11 = vld [vmem:[%s3287_s20 + $0x68] sm:$0xff]  ;;  %703 = vmatpush.bf16.msra.mxu1 %v3040_v17  ;;  %3108 = vmatpush.bf16.msra.mxu2 %v3040_v17 }
  0x16   : > { %v3026_v10 = vld [vmem:[%s3287_s20 + $0x20] sm:$0xff]  ;;  %v3027_v12 = vld [vmem:[%s3287_s20 + $0x28] sm:$0xff]  ;;  %v3036_v13 = vld [vmem:[%s3287_s20 + $0x70] sm:$0xff]  ;;  %1415 = vmatpush.bf16.msrb.mxu0 %v2997_v26 }
  0x17   : > { %v3028_v15 = vld [vmem:[%s3287_s20 + $0x30] sm:$0xff]  ;;  %v3037_v16 = vld [vmem:[%s3287_s20 + $0x78] sm:$0xff]  ;;  %v3030_v21 = vld [vmem:[%s3287_s20 + $0x40] sm:$0xff] }
  0x18   : > { %v3029_v20 = vld [vmem:[%s3287_s20 + $0x38] sm:$0xff]  ;;  %v2990_v35 = vld [vmem:[%s4392_s5 + $0x1e0] sm:$0xf0]  ;;  %v3095_v48 = vld [vmem:[%s4392_s5 + $0x1a4] sm:$0xf0] }
  0x19   : > { %704 = vmatpush.bf16.msra.mxu1 %v3039_v18  ;;  %3109 = vmatpush.bf16.msra.mxu2 %v3039_v18  ;;  %v2993_v36 = vor.u32 %v3098_v34, %v2990_v35  ;;  %v2965_v49 = vor.u32 %v3095_v48, %v2964_v47  ;;  %v3090_v57 = vld [vmem:[%s4392_s5 + $0x184] sm:$0xf]  ;;  %v2988_v60 = vld [vmem:[%s4392_s5 + $0x1c0] sm:$0xf]  ;;  %v3091_v3 = vld [vmem:[%s4392_s5 + $0x18c] sm:$0xf] }
  0x1a   : > { %v2958_v58 = vld [vmem:[%s4392_s5 + $0x1a0] sm:$0xf0]  ;;  %v3102_v61 = vld [vmem:[%s4392_s5 + $0x1dc] sm:$0xf0]  ;;  %v2934_v34 = vld [vmem:[%s4392_s5 + $0x168] sm:$0xf0] }
  0x1b   : > { %1326 = vmatpush.bf16.msrb.mxu3 %v2993_v36  ;;  %1416 = vmatpush.bf16.msrb.mxu0 %v2965_v49  ;;  %v2961_v59 = vor.u32 %v3090_v57, %v2958_v58  ;;  %v2989_v63 = vor.u32 %v3102_v61, %v2988_v60  ;;  %v3094_v24 = vld [vmem:[%s4392_s5 + $0x19c] sm:$0xf0]  ;;  %v3074_v36 = vld [vmem:[%s4392_s5 + $0x104] sm:$0xf] }
  0x1c   : > { %v2894_v37 = vld [vmem:[%s4392_s5 + $0x120] sm:$0xf0]  ;;  %v2924_v38 = vld [vmem:[%s4392_s5 + $0x140] sm:$0xf] }
  0x1d   : > { %705 = vmatpush.bf16.msra.mxu1 %v3038_v19  ;;  %3110 = vmatpush.bf16.msra.mxu2 %v3038_v19  ;;  %v2862_v60 = vld [vmem:[%s4392_s5 + $0xe0] sm:$0xf0] }
  0x1f   : > { %1327 = vmatpush.bf16.msrb.mxu3 %v2961_v59  ;;  %v3066_v59 = vld [vmem:[%s4392_s5 + $0xc4] sm:$0xf] }
  0x20   : > { %v2865_v61 = vor.u32 %v3066_v59, %v2862_v60 }
  0x21   : > { %1504 = vmatpush.bf16.msrb.mxu1 %v3001_v40  ;;  %1237 = vmatpush.bf16.msrb.mxu2 %v2989_v63  ;;  %v3086_v40 = vld [vmem:[%s4392_s5 + $0x15c] sm:$0xf0]  ;;  %v2902_v63 = vld [vmem:[%s4392_s5 + $0x128] sm:$0xf0] }
  0x24   : > { %2715 = vmatmul.msk.bf16.gmra.mxu0 %vm423_vm1, %v3023_v4  ;;  %2724 = vmatmul.msk.bf16.gmra.mxu3 %vm423_vm1, %v3032_v5  ;;  %v2966_v4 = vld [vmem:[%s4392_s5 + $0x1a8] sm:$0xf0] }
  0x34   : > { %2716 = vmatmul.msk.bf16.gmra.mxu0 %vm423_vm1, %v3024_v6  ;;  %2725 = vmatmul.msk.bf16.gmra.mxu3 %vm423_vm1, %v3033_v7  ;;  %v2969_v6 = vor.u32 %v3091_v3, %v2966_v4 }
  0x36   : > { %1505 = vmatpush.bf16.msrb.mxu1 %v2969_v6 }
  0x44   : > { %2717 = vmatmul.msk.bf16.gmra.mxu0 %vm423_vm1, %v3025_v8  ;;  %2726 = vmatmul.msk.bf16.gmra.mxu3 %vm423_vm1, %v3034_v9  ;;  %v2932_v9 = vld [vmem:[%s4392_s5 + $0x148] sm:$0xf] }
  0x54   : > { %2718 = vmatmul.msk.bf16.gmra.mxu0 %vm423_vm1, %v3026_v10  ;;  %2727 = vmatmul.msk.bf16.gmra.mxu3 %vm423_vm1, %v3035_v11  ;;  %v3087_v10 = vld [vmem:[%s4392_s5 + $0x164] sm:$0xf0] }
  0x55   : > { %v2933_v11 = vor.u32 %v3087_v10, %v2932_v9 }
  0x57   : > { %1417 = vmatpush.bf16.msrb.mxu0 %v2933_v11  ;;  %v2868_v11 = vld [vmem:[%s4392_s5 + $0xc8] sm:$0xf] }
  0x64   : > { %2719 = vmatmul.msk.bf16.gmra.mxu0 %vm423_vm1, %v3027_v12  ;;  %2728 = vmatmul.msk.bf16.gmra.mxu3 %vm423_vm1, %v3036_v13  ;;  %v3082_v12 = vld [vmem:[%s4392_s5 + $0x144] sm:$0xf] }
  0x65   : > { %v2926_v13 = vld [vmem:[%s4392_s5 + $0x160] sm:$0xf0] }
  0x66   : > { %v2929_v14 = vor.u32 %v3082_v12, %v2926_v13  ;;  %v3071_v12 = vld [vmem:[%s4392_s5 + $0xe4] sm:$0xf0] }
  0x67   : > { %v2869_v13 = vor.u32 %v3071_v12, %v2868_v11  ;;  %v3054_v11 = vld [vmem:[%s4392_s5 + $0x5c] sm:$0xf0] }
  0x68   : > { %1328 = vmatpush.bf16.msrb.mxu3 %v2929_v14 }
  0x74   : > { %2720 = vmatmul.msk.bf16.gmra.mxu0 %vm423_vm1, %v3028_v15  ;;  %2729 = vmatmul.msk.bf16.gmra.mxu3 %vm423_vm1, %v3037_v16 }
  0x84   : > { %2721 = vmatmul.msk.bf16.gmra.mxu0 %vm423_vm1, %v3029_v20 }
  0x91   : > { %v485_v22 = vpop.f32.mrf.mxu0 }
  0x92   : > { %v486_v28 = vadd.f32 %v3335_v23, %v485_v22  ;;  %v2956_v22 = vld [vmem:[%s4392_s5 + $0x180] sm:$0xf] }
  0x93   : > { %v2957_v25 = vor.u32 %v3094_v24, %v2956_v22  ;;  %v2830_v22 = vld [vmem:[%s4392_s5 + $0xa0] sm:$0xf0] }
  0x94   : > { %2722 = vmatmul.msk.bf16.gmra.mxu0 %vm423_vm1, %v3030_v21  ;;  %v565_v31 = vmax.f32 %v486_v28, 0.0 }
  0x95   : > { %1238 = vmatpush.bf16.msrb.mxu2 %v2957_v25  ;;  %v2860_v25 = vld [vmem:[%s4392_s5 + $0xc0] sm:$0xf] }
  0x97   : > { %v530_v27 = vpop.f32.mrf.mxu3 }
  0x98   : > { %v531_v33 = vadd.f32 %v3335_v23, %v530_v27 }
  0x99   : > { %v487_v29 = vpop.f32.mrf.mxu0 }
  0x9a   : > { %v488_v30 = vadd.f32 %v3335_v23, %v487_v29  ;;  %v583_v42 = vmax.f32 %v531_v33, 0.0  ;;  %v3083_v33 = vld [vmem:[%s4392_s5 + $0x14c] sm:$0xf] }
  0x9b   : > { %v2937_v35 = vor.u32 %v3083_v33, %v2934_v34 }
  0x9c   : > { %v566_v32 = vmax.f32 %v488_v30, 0.0 }
  0x9d   : > { %1506 = vmatpush.bf16.msrb.mxu1 %v2937_v35 }
  0x9e   : > { %v597_v39 = vpack.c.bf16 %v566_v32, %v565_v31 }
  0x9f   : > { %v532_v41 = vpop.f32.mrf.mxu3 }
  0xa0   : > { %2746 = vmatmul.msk.bf16.vlgmr.msra.gmra.mxu1 %vm649_vm2, %v597_v39  ;;  %v533_v43 = vadd.f32 %v3335_v23, %v532_v41  ;;  %v2897_v39 = vor.u32 %v3074_v36, %v2894_v37  ;;  %v2900_v41 = vld [vmem:[%s4392_s5 + $0x108] sm:$0xf] }
  0xa1   : > { %v490_v44 = vpop.f32.mrf.mxu0 }
  0xa2   : > { %v584_v45 = vmax.f32 %v533_v43, 0.0  ;;  %v491_v51 = vadd.f32 %v3335_v23, %v490_v44  ;;  %v2925_v44 = vor.u32 %v3086_v40, %v2924_v38  ;;  %1329 = vmatpush.bf16.msrb.mxu3 %v2897_v39  ;;  %v2836_v38 = vld [vmem:[%s4392_s5 + $0x88] sm:$0xf] }
  0xa3   : > { %v3063_v39 = vld [vmem:[%s4392_s5 + $0xa4] sm:$0xf0] }
  0xa4   : > { %v606_v46 = vpack.c.bf16 %v584_v45, %v583_v42  ;;  %v567_v54 = vmax.f32 %v491_v51, 0.0  ;;  %v3079_v42 = vld [vmem:[%s4392_s5 + $0x124] sm:$0xf0]  ;;  %1239 = vmatpush.bf16.msrb.mxu2 %v2925_v44  ;;  %v2837_v40 = vor.u32 %v3063_v39, %v2836_v38 }
  0xa5   : > { %v2901_v45 = vor.u32 %v3079_v42, %v2900_v41 }
  0xa6   : > { %2755 = vmatmul.msk.bf16.vlgmr.msra.gmra.mxu2 %vm649_vm2, %v606_v46  ;;  %1330 = vmatpush.bf16.msrb.mxu3 %v2865_v61 }
  0xa7   : > { %v535_v50 = vpop.f32.mrf.mxu3  ;;  %1418 = vmatpush.bf16.msrb.mxu0 %v2901_v45  ;;  %v3050_v45 = vld [vmem:[%s4392_s5 + $0x44] sm:$0xf] }
  0xa8   : > { %v536_v56 = vadd.f32 %v3335_v23, %v535_v50 }
  0xa9   : > { %v492_v52 = vpop.f32.mrf.mxu0 }
  0xaa   : > { %v493_v53 = vadd.f32 %v3335_v23, %v492_v52  ;;  %v585_v1 = vmax.f32 %v536_v56, 0.0 }
  0xab   : > { %1419 = vmatpush.bf16.msrb.mxu0 %v2869_v13 }
  0xac   : > { %v568_v55 = vmax.f32 %v493_v53, 0.0 }
  0xae   : > { %v598_v62 = vpack.c.bf16 %v568_v55, %v567_v54 }
  0xaf   : > { %v537_v0 = vpop.f32.mrf.mxu3  ;;  %1420 = vmatpush.bf16.msrb.mxu0 %v2837_v40 }
  0xb0   : > { %2747 = vmatmul.msk.bf16.gmra.mxu1 %vm649_vm2, %v598_v62  ;;  %v538_v2 = vadd.f32 %v3335_v23, %v537_v0  ;;  %v3075_v62 = vld [vmem:[%s4392_s5 + $0x10c] sm:$0xf]  ;;  %v2892_v0 = vld [vmem:[%s4392_s5 + $0x100] sm:$0xf] }
  0xb1   : > { %v495_v5 = vpop.f32.mrf.mxu0 }
  0xb2   : > { %v586_v7 = vmax.f32 %v538_v2, 0.0  ;;  %v496_v16 = vadd.f32 %v3335_v23, %v495_v5  ;;  %v3078_v2 = vld [vmem:[%s4392_s5 + $0x11c] sm:$0xf0] }
  0xb3   : > { %v2893_v4 = vor.u32 %v3078_v2, %v2892_v0 }
  0xb4   : > { %v607_v8 = vpack.c.bf16 %v586_v7, %v585_v1  ;;  %v569_v19 = vmax.f32 %v496_v16, 0.0  ;;  %v2905_v1 = vor.u32 %v3075_v62, %v2902_v63 }
  0xb5   : > { %1240 = vmatpush.bf16.msrb.mxu2 %v2893_v4  ;;  %v3042_v4 = vld [vmem:[%s4392_s5 + $0x4] sm:$0xf] }
  0xb6   : > { %2756 = vmatmul.msk.bf16.gmra.mxu2 %vm649_vm2, %v607_v8  ;;  %1507 = vmatpush.bf16.msrb.mxu1 %v2905_v1 }
  0xb7   : > { %v540_v15 = vpop.f32.mrf.mxu3 }
  0xb8   : > { %v541_v21 = vadd.f32 %v3335_v23, %v540_v15 }
  0xb9   : > { %v497_v17 = vpop.f32.mrf.mxu0 }
  0xba   : > { %v498_v18 = vadd.f32 %v3335_v23, %v497_v17  ;;  %v587_v28 = vmax.f32 %v541_v21, 0.0  ;;  %v3058_v21 = vld [vmem:[%s4392_s5 + $0x84] sm:$0xf] }
  0xbb   : > { %v2833_v24 = vor.u32 %v3058_v21, %v2830_v22  ;;  %v3051_v21 = vld [vmem:[%s4392_s5 + $0x4c] sm:$0xf] }
  0xbc   : > { %v570_v20 = vmax.f32 %v498_v18, 0.0  ;;  %v2806_v22 = vld [vmem:[%s4392_s5 + $0x68] sm:$0xf0] }
  0xbd   : > { %1331 = vmatpush.bf16.msrb.mxu3 %v2833_v24 }
  0xbe   : > { %v599_v26 = vpack.c.bf16 %v570_v20, %v569_v19 }
  0xbf   : > { %v542_v27 = vpop.f32.mrf.mxu3 }
  0xc0   : > { %2748 = vmatmul.msk.bf16.gmra.mxu1 %vm649_vm2, %v599_v26  ;;  %v543_v29 = vadd.f32 %v3335_v23, %v542_v27  ;;  %v3070_v26 = vld [vmem:[%s4392_s5 + $0xdc] sm:$0xf0]  ;;  %v3067_v27 = vld [vmem:[%s4392_s5 + $0xcc] sm:$0xf] }
  0xc1   : > { %v500_v30 = vpop.f32.mrf.mxu0 }
  0xc2   : > { %v588_v31 = vmax.f32 %v543_v29, 0.0  ;;  %v501_v46 = vadd.f32 %v3335_v23, %v500_v30  ;;  %v2870_v29 = vld [vmem:[%s4392_s5 + $0xe8] sm:$0xf0] }
  0xc4   : > { %v608_v32 = vpack.c.bf16 %v588_v31, %v587_v28  ;;  %v571_v49 = vmax.f32 %v501_v46, 0.0  ;;  %v2861_v28 = vor.u32 %v3070_v26, %v2860_v25  ;;  %v2873_v31 = vor.u32 %v3067_v27, %v2870_v29  ;;  %v2798_v46 = vld [vmem:[%s4392_s5 + $0x60] sm:$0xf0]  ;;  %v3043_v29 = vld [vmem:[%s4392_s5 + $0xc] sm:$0xf] }
  0xc5   : > { %v2809_v26 = vor.u32 %v3051_v21, %v2806_v22 }
  0xc6   : > { %2757 = vmatmul.msk.bf16.gmra.mxu2 %vm649_vm2, %v608_v32  ;;  %1508 = vmatpush.bf16.msrb.mxu1 %v2873_v31 }
  0xc7   : > { %v545_v43 = vpop.f32.mrf.mxu3  ;;  %1241 = vmatpush.bf16.msrb.mxu2 %v2861_v28 }
  0xc8   : > { %v546_v51 = vadd.f32 %v3335_v23, %v545_v43 }
  0xc9   : > { %v502_v47 = vpop.f32.mrf.mxu0 }
  0xca   : > { %v503_v48 = vadd.f32 %v3335_v23, %v502_v47  ;;  %v589_v54 = vmax.f32 %v546_v51, 0.0  ;;  %v2828_v51 = vld [vmem:[%s4392_s5 + $0x80] sm:$0xf] }
  0xcc   : > { %v572_v50 = vmax.f32 %v503_v48, 0.0  ;;  %v2801_v48 = vor.u32 %v3050_v45, %v2798_v46  ;;  %v3004_v45 = vld [vmem:[%s4392_s5 + $0x1d0] sm:$0xf] }
  0xcd   : > { %v3104_v46 = vld [vmem:[%s4392_s5 + $0x1ec] sm:$0xf0] }
  0xce   : > { %v600_v52 = vpack.c.bf16 %v572_v50, %v571_v49  ;;  %1332 = vmatpush.bf16.msrb.mxu3 %v2801_v48  ;;  %v3005_v48 = vor.u32 %v3104_v46, %v3004_v45  ;;  %v2948_v45 = vld [vmem:[%s4392_s5 + $0x158] sm:$0xf] }
  0xcf   : > { %v547_v53 = vpop.f32.mrf.mxu3  ;;  %v3089_v46 = vld [vmem:[%s4392_s5 + $0x174] sm:$0xf0] }
  0xd0   : > { %2749 = vmatmul.msk.bf16.gmra.mxu1 %vm649_vm2, %v600_v52  ;;  %v548_v55 = vadd.f32 %v3335_v23, %v547_v53  ;;  %v3062_v52 = vld [vmem:[%s4392_s5 + $0x9c] sm:$0xf0] }
  0xd1   : > { %v505_v56 = vpop.f32.mrf.mxu0  ;;  %v2829_v53 = vor.u32 %v3062_v52, %v2828_v51 }
  0xd2   : > { %v590_v57 = vmax.f32 %v548_v55, 0.0  ;;  %v506_v5 = vadd.f32 %v3335_v23, %v505_v56  ;;  %v2838_v55 = vld [vmem:[%s4392_s5 + $0xa8] sm:$0xf0] }
  0xd3   : > { %1242 = vmatpush.bf16.msrb.mxu2 %v2829_v53 }
  0xd4   : > { %v609_v58 = vpack.c.bf16 %v590_v57, %v589_v54  ;;  %v573_v8 = vmax.f32 %v506_v5, 0.0  ;;  %v3059_v54 = vld [vmem:[%s4392_s5 + $0x8c] sm:$0xf]  ;;  %v2766_v5 = vld [vmem:[%s4392_s5 + $0x20] sm:$0xf0] }
  0xd5   : > { %v2841_v56 = vor.u32 %v3059_v54, %v2838_v55 }
  0xd6   : > { %2758 = vmatmul.msk.bf16.gmra.mxu2 %vm649_vm2, %v609_v58 }
  0xd7   : > { %v550_v3 = vpop.f32.mrf.mxu3  ;;  %1509 = vmatpush.bf16.msrb.mxu1 %v2841_v56 }
  0xd8   : > { %v551_v10 = vadd.f32 %v3335_v23, %v550_v3 }
  0xd9   : > { %v507_v6 = vpop.f32.mrf.mxu0 }
  0xda   : > { %v508_v7 = vadd.f32 %v3335_v23, %v507_v6  ;;  %v591_v16 = vmax.f32 %v551_v10, 0.0  ;;  %v2804_v6 = vld [vmem:[%s4392_s5 + $0x48] sm:$0xf]  ;;  %v2796_v10 = vld [vmem:[%s4392_s5 + $0x40] sm:$0xf] }
  0xdb   : > { %1510 = vmatpush.bf16.msrb.mxu1 %v2809_v26 }
  0xdc   : > { %v574_v9 = vmax.f32 %v508_v7, 0.0 }
  0xde   : > { %v601_v14 = vpack.c.bf16 %v574_v9, %v573_v8  ;;  %v2769_v8 = vor.u32 %v3042_v4, %v2766_v5  ;;  %v3055_v9 = vld [vmem:[%s4392_s5 + $0x64] sm:$0xf0] }
  0xdf   : > { %v552_v15 = vpop.f32.mrf.mxu3  ;;  %v2805_v13 = vor.u32 %v3055_v9, %v2804_v6 }
  0xe0   : > { %2750 = vmatmul.msk.bf16.gmra.mxu1 %vm649_vm2, %v601_v14  ;;  %v553_v17 = vadd.f32 %v3335_v23, %v552_v15  ;;  %v2797_v14 = vor.u32 %v3054_v11, %v2796_v10  ;;  %1333 = vmatpush.bf16.msrb.mxu3 %v2769_v8  ;;  %v2972_v11 = vld [vmem:[%s4392_s5 + $0x190] sm:$0xf] }
  0xe1   : > { %v510_v18 = vpop.f32.mrf.mxu0  ;;  %1421 = vmatpush.bf16.msrb.mxu0 %v2805_v13 }
  0xe2   : > { %v592_v19 = vmax.f32 %v553_v17, 0.0  ;;  %v511_v32 = vadd.f32 %v3335_v23, %v510_v18  ;;  %1243 = vmatpush.bf16.msrb.mxu2 %v2797_v14  ;;  %v3046_v17 = vld [vmem:[%s4392_s5 + $0x1c] sm:$0xf0]  ;;  %v2772_v18 = vld [vmem:[%s4392_s5 + $0x8] sm:$0xf] }
  0xe3   : > { %v2980_v14 = vld [vmem:[%s4392_s5 + $0x198] sm:$0xf] }
  0xe4   : > { %v610_v20 = vpack.c.bf16 %v592_v19, %v591_v16  ;;  %v575_v35 = vmax.f32 %v511_v32, 0.0  ;;  %v2764_v16 = vld [vmem:[%s4392_s5] sm:$0xf] }
  0xe5   : > { %v2765_v19 = vor.u32 %v3046_v17, %v2764_v16 }
  0xe6   : > { %2759 = vmatmul.msk.bf16.gmra.mxu2 %vm649_vm2, %v610_v20  ;;  %v3047_v20 = vld [vmem:[%s4392_s5 + $0x24] sm:$0xf0] }
  0xe7   : > { %v555_v30 = vpop.f32.mrf.mxu3  ;;  %v2773_v25 = vor.u32 %v3047_v20, %v2772_v18  ;;  %1244 = vmatpush.bf16.msrb.mxu2 %v2765_v19 }
  0xe8   : > { %v556_v37 = vadd.f32 %v3335_v23, %v555_v30  ;;  %v2774_v30 = vld [vmem:[%s4392_s5 + $0x28] sm:$0xf0] }
  0xe9   : > { %v512_v33 = vpop.f32.mrf.mxu0  ;;  %1422 = vmatpush.bf16.msrb.mxu0 %v2773_v25 }
  0xea   : > { %v513_v34 = vadd.f32 %v3335_v23, %v512_v33  ;;  %v593_v43 = vmax.f32 %v556_v37, 0.0  ;;  %v2777_v33 = vor.u32 %v3043_v29, %v2774_v30  ;;  %v3093_v30 = vld [vmem:[%s4392_s5 + $0x19c] sm:$0xf] }
  0xeb   : > { %1593 = vmatpush.bf16.msra.mxu2 %v3005_v48 }
  0xec   : > { %v576_v36 = vmax.f32 %v513_v34, 0.0  ;;  %v3100_v34 = vld [vmem:[%s4392_s5 + $0x1d4] sm:$0xf]  ;;  %1511 = vmatpush.bf16.msrb.mxu1 %v2777_v33 }
  0xee   : > { %v602_v41 = vpack.c.bf16 %v576_v36, %v575_v35  ;;  %v3006_v35 = vld [vmem:[%s4392_s5 + $0x1f0] sm:$0xf0] }
  0xef   : > { %v557_v42 = vpop.f32.mrf.mxu3  ;;  %v3009_v37 = vor.u32 %v3100_v34, %v3006_v35 }
  0xf0   : > { %2751 = vmatmul.msk.bf16.gmra.mxu1 %vm649_vm2, %v602_v41  ;;  %v558_v44 = vadd.f32 %v3335_v23, %v557_v42 }
  0xf1   : > { %v515_v47 = vpop.f32.mrf.mxu0  ;;  %1682 = vmatpush.bf16.msra.mxu3 %v3009_v37 }
  0xf2   : > { %v594_v49 = vmax.f32 %v558_v44, 0.0  ;;  %v516_v58 = vadd.f32 %v3335_v23, %v515_v47 }
  0xf4   : > { %v611_v50 = vpack.c.bf16 %v594_v49, %v593_v43  ;;  %v577_v62 = vmax.f32 %v516_v58, 0.0  ;;  %v3592_v49 = vld [vmem:[%s4391_s4] ss:$0 sm:$0xff] }
  0xf6   : > { %2760 = vmatmul.msk.bf16.gmra.mxu2 %vm649_vm2, %v611_v50  ;;  %v3105_v50 = vld [vmem:[%s4392_s5 + $0x1f4] sm:$0xf0] }
  0xf7   : > { %v560_v57 = vpop.f32.mrf.mxu3 }
  0xf8   : > { %v561_v61 = vadd.f32 %v3335_v23, %v560_v57 }
  0xf9   : > { %v517_v59 = vpop.f32.mrf.mxu0 }
  0xfa   : > { %v518_v60 = vadd.f32 %v3335_v23, %v517_v59  ;;  %v595_v1 = vmax.f32 %v561_v61, 0.0  ;;  %v2974_v61 = vld [vmem:[%s4392_s5 + $0x1b0] sm:$0xf0] }
  0xfc   : > { %v578_v63 = vmax.f32 %v518_v60, 0.0  ;;  %v3092_v60 = vld [vmem:[%s4392_s5 + $0x194] sm:$0xf] }
  0xfe   : > { %v603_v0 = vpack.c.bf16 %v578_v63, %v577_v62  ;;  %v2977_v62 = vor.u32 %v3092_v60, %v2974_v61  ;;  %v3101_v63 = vld [vmem:[%s4392_s5 + $0x1dc] sm:$0xf] }
  0xff   : > { %v562_v2 = vpop.f32.mrf.mxu3  ;;  %v3085_v61 = vld [vmem:[%s4392_s5 + $0x15c] sm:$0xf] }
 0x100   : > { %2752 = vmatmul.msk.bf16.gmra.mxu1 %vm649_vm2, %v603_v0  ;;  %v563_v3 = vadd.f32 %v3335_v23, %v562_v2  ;;  %1683 = vmatpush.bf16.msra.mxu3 %v2977_v62  ;;  %v3014_v0 = vld [vmem:[%s4392_s5 + $0x1f8] sm:$0xf0] }
 0x101   : > { %v520_v7 = vpop.f32.mrf.mxu0  ;;  %v3625_v2 = vor.u32 %v3101_v63, %v3014_v0  ;;  %v2950_v62 = vld [vmem:[%s4392_s5 + $0x178] sm:$0xf0] }
 0x102   : > { %v596_v12 = vmax.f32 %v563_v3, 0.0  ;;  %v521_v24 = vadd.f32 %v3335_v23, %v520_v7  ;;  %v3723_v63 = vor.u32 %v3085_v61, %v2950_v62  ;;  %v2884_v61 = vld [vmem:[%s4392_s5 + $0xd8] sm:$0xf] }
 0x103   : > { %1860 = vmatpush.bf16.msra.mxu1 %v3625_v2  ;;  %v3073_v62 = vld [vmem:[%s4392_s5 + $0xf4] sm:$0xf0] }
 0x104   : > { %v612_v15 = vpack.c.bf16 %v596_v12, %v595_v1  ;;  %v579_v31 = vmax.f32 %v521_v24, 0.0  ;;  %v3096_v12 = vld [vmem:[%s4392_s5 + $0x1ac] sm:$0xf0] }
 0x105   : > { %v2973_v13 = vor.u32 %v3096_v12, %v2972_v11 }
 0x106   : > { %2761 = vmatmul.msk.bf16.gmra.mxu2 %vm649_vm2, %v612_v15  ;;  %v3097_v15 = vld [vmem:[%s4392_s5 + $0x1b4] sm:$0xf0] }
 0x107   : > { %1594 = vmatpush.bf16.msra.mxu2 %v2973_v13  ;;  %v2981_v17 = vor.u32 %v3097_v15, %v2980_v14  ;;  %v2908_v13 = vld [vmem:[%s4392_s5 + $0x110] sm:$0xf] }
 0x108   : > { %v3080_v14 = vld [vmem:[%s4392_s5 + $0x12c] sm:$0xf0] }
 0x109   : > { %v522_v27 = vpop.f32.mrf.mxu0  ;;  %v2909_v15 = vor.u32 %v3080_v14, %v2908_v13 }
 0x10a   : > { %v523_v28 = vadd.f32 %v3335_v23, %v522_v27  ;;  %v3084_v27 = vld [vmem:[%s4392_s5 + $0x154] sm:$0xf] }
 0x10c   : > { %v580_v32 = vmax.f32 %v523_v28, 0.0  ;;  %v2942_v28 = vld [vmem:[%s4392_s5 + $0x170] sm:$0xf0] }
 0x10d   : > { %v2945_v29 = vor.u32 %v3084_v27, %v2942_v28 }
 0x10e   : > { %v604_v36 = vpack.c.bf16 %v580_v32, %v579_v31  ;;  %v2982_v31 = vld [vmem:[%s4392_s5 + $0x1b8] sm:$0xf0] }
 0x10f   : > { %1684 = vmatpush.bf16.msra.mxu3 %v2945_v29  ;;  %v3674_v32 = vor.u32 %v3093_v30, %v2982_v31  ;;  %v3068_v31 = vld [vmem:[%s4392_s5 + $0xd4] sm:$0xf] }
 0x110   : > { %2753 = vmatmul.msk.bf16.gmra.mxu1 %vm649_vm2, %v604_v36 }
 0x111   : > { %v525_v38 = vpop.f32.mrf.mxu0  ;;  %1861 = vmatpush.bf16.msra.mxu1 %v3674_v32 }
 0x112   : > { %v526_v39 = vadd.f32 %v3335_v23, %v525_v38 }
 0x114   : > { %v581_v42 = vmax.f32 %v526_v39, 0.0 }
 0x115   : > { %1862 = vmatpush.bf16.msra.mxu1 %v3723_v63 }
 0x119   : > { %v527_v40 = vpop.f32.mrf.mxu0 }
 0x11a   : > { %v528_v41 = vadd.f32 %v3335_v23, %v527_v40  ;;  %v3012_v23 = vld [vmem:[%s4392_s5 + $0x1d8] sm:$0xf] }
 0x11b   : > { %v3013_v51 = vor.u32 %v3105_v50, %v3012_v23 }
 0x11c   : > { %v582_v43 = vmax.f32 %v528_v41, 0.0  ;;  %v2940_v41 = vld [vmem:[%s4392_s5 + $0x150] sm:$0xf] }
 0x11d   : > { %v707_v44 = vpop.f32.mrf.mxu1  ;;  %1771 = vmatpush.bf16.msra.mxu0 %v3013_v51 }
 0x11e   : > { %v605_v47 = vpack.c.bf16 %v582_v43, %v581_v42  ;;  %v708_v52 = vadd.f32 %v3592_v49, %v707_v44  ;;  %v3088_v42 = vld [vmem:[%s4392_s5 + $0x16c] sm:$0xf0] }
 0x11f   : > { %v2941_v43 = vor.u32 %v3088_v42, %v2940_v41 }
 0x120   : > { %2754 = vmatmul.msk.bf16.gmra.mxu1 %vm649_vm2, %v605_v47  ;;  %v787_v55 = vmax.f32 %v708_v52, 0.0  ;;  %v2949_v47 = vor.u32 %v3089_v46, %v2948_v45 }
 0x121   : > { %1772 = vmatpush.bf16.msra.mxu0 %v2981_v17  ;;  %1595 = vmatpush.bf16.msra.mxu2 %v2941_v43  ;;  %v2916_v17 = vld [vmem:[%s4392_s5 + $0x118] sm:$0xf] }
 0x125   : > { %v709_v53 = vpop.f32.mrf.mxu1  ;;  %1773 = vmatpush.bf16.msra.mxu0 %v2949_v47  ;;  %1596 = vmatpush.bf16.msra.mxu2 %v2909_v15 }
 0x126   : > { %v710_v54 = vadd.f32 %v3592_v49, %v709_v53 }
 0x128   : > { %v788_v56 = vmax.f32 %v710_v54, 0.0 }
 0x129   : > { %v3603_v57 = vpop.f32.mrf.mxu2 }
 0x12a   : > { %v3605_v58 = vpack.c.bf16 %v788_v56, %v787_v55  ;;  %v3076_v56 = vld [vmem:[%s4392_s5 + $0x114] sm:$0xf] }
 0x12c   : > { %1245 = vmatmul.bf16.vlgmr.msrb.gmra.mxu2 %v3605_v58  ;;  %1334 = vmatmul.bf16.vlgmr.msrb.gmra.mxu3 %v3605_v58 }
 0x12d   : > { %1423 = vmatmul.bf16.vlgmr.msrb.gmra.mxu0 %v3605_v58  ;;  %v712_v59 = vpop.f32.mrf.mxu1 }
 0x12e   : > { %v713_v3 = vadd.f32 %v3592_v49, %v712_v59  ;;  %v2910_v59 = vld [vmem:[%s4392_s5 + $0x130] sm:$0xf0] }
 0x12f   : > { %v2913_v60 = vor.u32 %v3076_v56, %v2910_v59 }
 0x130   : > { %1512 = vmatmul.bf16.vlgmr.msrb.gmra.mxu1 %v3605_v58  ;;  %v789_v6 = vmax.f32 %v713_v3, 0.0 }
 0x131   : > { %v3623_v1 = vpop.f32.mrf.mxu2  ;;  %1685 = vmatpush.bf16.msra.mxu3 %v2913_v60 }
 0x135   : > { %v714_v4 = vpop.f32.mrf.mxu1 }
 0x136   : > { %v715_v5 = vadd.f32 %v3592_v49, %v714_v4 }
 0x138   : > { %v790_v7 = vmax.f32 %v715_v5, 0.0 }
 0x139   : > { %v3630_v8 = vpop.f32.mrf.mxu2 }
 0x13a   : > { %v3632_v9 = vpack.c.bf16 %v790_v7, %v789_v6 }
 0x13c   : > { %1250 = vmatmul.bf16.gmra.mxu2 %v3632_v9  ;;  %1339 = vmatmul.bf16.gmra.mxu3 %v3632_v9 }
 0x13d   : > { %1428 = vmatmul.bf16.gmra.mxu0 %v3632_v9  ;;  %v717_v10 = vpop.f32.mrf.mxu1 }
 0x13e   : > { %v718_v18 = vadd.f32 %v3592_v49, %v717_v10 }
 0x140   : > { %1517 = vmatmul.bf16.gmra.mxu1 %v3632_v9  ;;  %v791_v21 = vmax.f32 %v718_v18, 0.0  ;;  %v3081_v18 = vld [vmem:[%s4392_s5 + $0x134] sm:$0xf0] }
 0x141   : > { %v3650_v16 = vpop.f32.mrf.mxu2 }
 0x145   : > { %v719_v19 = vpop.f32.mrf.mxu1 }
 0x146   : > { %v720_v20 = vadd.f32 %v3592_v49, %v719_v19  ;;  %v2917_v19 = vor.u32 %v3081_v18, %v2916_v17  ;;  %v3060_v18 = vld [vmem:[%s4392_s5 + $0x94] sm:$0xf] }
 0x148   : > { %v792_v22 = vmax.f32 %v720_v20, 0.0  ;;  %1774 = vmatpush.bf16.msra.mxu0 %v2917_v19  ;;  %v2846_v19 = vld [vmem:[%s4392_s5 + $0xb0] sm:$0xf0] }
 0x149   : > { %v3656_v25 = vpop.f32.mrf.mxu2 }
 0x14a   : > { %v3654_v24 = vpack.c.bf16 %v792_v22, %v791_v21 }
 0x14c   : > { %1255 = vmatmul.bf16.gmra.mxu2 %v3654_v24  ;;  %1344 = vmatmul.bf16.gmra.mxu3 %v3654_v24 }
 0x14d   : > { %1433 = vmatmul.bf16.gmra.mxu0 %v3654_v24  ;;  %v722_v26 = vpop.f32.mrf.mxu1 }
 0x14e   : > { %v723_v33 = vadd.f32 %v3592_v49, %v722_v26 }
 0x150   : > { %1522 = vmatmul.bf16.gmra.mxu1 %v3654_v24  ;;  %v793_v37 = vmax.f32 %v723_v33, 0.0  ;;  %v2878_v33 = vld [vmem:[%s4392_s5 + $0xf0] sm:$0xf0] }
 0x151   : > { %v3678_v35 = vpop.f32.mrf.mxu2 }
 0x155   : > { %v724_v34 = vpop.f32.mrf.mxu1 }
 0x156   : > { %v725_v36 = vadd.f32 %v3592_v49, %v724_v34  ;;  %v2881_v34 = vor.u32 %v3068_v31, %v2878_v33 }
 0x158   : > { %v794_v38 = vmax.f32 %v725_v36, 0.0  ;;  %1686 = vmatpush.bf16.msra.mxu3 %v2881_v34  ;;  %v3077_v36 = vld [vmem:[%s4392_s5 + $0x11c] sm:$0xf] }
 0x159   : > { %v3692_v44 = vpop.f32.mrf.mxu2  ;;  %v2886_v34 = vld [vmem:[%s4392_s5 + $0xf8] sm:$0xf0] }
 0x15a   : > { %v3681_v39 = vpack.c.bf16 %v794_v38, %v793_v37  ;;  %v2918_v37 = vld [vmem:[%s4392_s5 + $0x138] sm:$0xf0] }
 0x15c   : > { %1260 = vmatmul.bf16.gmra.mxu2 %v3681_v39  ;;  %1349 = vmatmul.bf16.gmra.mxu3 %v3681_v39 }
 0x15d   : > { %1438 = vmatmul.bf16.gmra.mxu0 %v3681_v39  ;;  %v727_v40 = vpop.f32.mrf.mxu1 }
 0x15e   : > { %v728_v48 = vadd.f32 %v3592_v49, %v727_v40  ;;  %v3774_v40 = vor.u32 %v3077_v36, %v2918_v37 }
 0x160   : > { %1527 = vmatmul.bf16.gmra.mxu1 %v3681_v39  ;;  %v795_v51 = vmax.f32 %v728_v48, 0.0 }
 0x161   : > { %v3703_v53 = vpop.f32.mrf.mxu2  ;;  %1863 = vmatpush.bf16.msra.mxu1 %v3774_v40 }
 0x165   : > { %v729_v23 = vpop.f32.mrf.mxu1 }
 0x166   : > { %v730_v50 = vadd.f32 %v3592_v49, %v729_v23 }
 0x168   : > { %v796_v52 = vmax.f32 %v730_v50, 0.0  ;;  %v2876_v50 = vld [vmem:[%s4392_s5 + $0xd0] sm:$0xf] }
 0x169   : > { %v3725_v0 = vpop.f32.mrf.mxu2 }
 0x16a   : > { %v3705_v54 = vpack.c.bf16 %v796_v52, %v795_v51  ;;  %v3072_v51 = vld [vmem:[%s4392_s5 + $0xec] sm:$0xf0] }
 0x16b   : > { %v2877_v52 = vor.u32 %v3072_v51, %v2876_v50 }
 0x16c   : > { %1265 = vmatmul.bf16.gmra.mxu2 %v3705_v54  ;;  %1354 = vmatmul.bf16.gmra.mxu3 %v3705_v54 }
 0x16d   : > { %1443 = vmatmul.bf16.gmra.mxu0 %v3705_v54  ;;  %v732_v55 = vpop.f32.mrf.mxu1  ;;  %1597 = vmatpush.bf16.msra.mxu2 %v2877_v52 }
 0x16e   : > { %v733_v3 = vadd.f32 %v3592_v49, %v732_v55 }
 0x170   : > { %1532 = vmatmul.bf16.gmra.mxu1 %v3705_v54  ;;  %v797_v6 = vmax.f32 %v733_v3, 0.0 }
 0x171   : > { %v3735_v12 = vpop.f32.mrf.mxu2 }
 0x175   : > { %v734_v4 = vpop.f32.mrf.mxu1 }
 0x176   : > { %v735_v5 = vadd.f32 %v3592_v49, %v734_v4 }
 0x178   : > { %v798_v7 = vmax.f32 %v735_v5, 0.0  ;;  %v2885_v5 = vor.u32 %v3073_v62, %v2884_v61 }
 0x179   : > { %v3752_v26 = vpop.f32.mrf.mxu2 }
 0x17a   : > { %v3730_v10 = vpack.c.bf16 %v798_v7, %v797_v6  ;;  %v899_v7 = vld [vmem:[%s4393_s6] sm:$0xff]  ;;  %1775 = vmatpush.bf16.msra.mxu0 %v2885_v5 }
 0x17b   : > { %v3810_v13 = vperm.slane %v899_v7, 2  ;;  %v3829_v31 = vperm.slane %v899_v7, 1 }
 0x17c   : > { %1270 = vmatmul.bf16.gmra.mxu2 %v3730_v10  ;;  %1359 = vmatmul.bf16.gmra.mxu3 %v3730_v10 }
 0x17d   : > { %1448 = vmatmul.bf16.gmra.mxu0 %v3730_v10  ;;  %v737_v11 = vpop.f32.mrf.mxu1 }
 0x17e   : > { %v738_v20 = vadd.f32 %v3592_v49, %v737_v11 }
 0x180   : > { %1537 = vmatmul.bf16.gmra.mxu1 %v3730_v10  ;;  %v799_v27 = vmax.f32 %v738_v20, 0.0  ;;  %v753_v20 = vadd.f32 %v3592_v49, %v3603_v57  ;;  %v3069_v57 = vld [vmem:[%s4392_s5 + $0xdc] sm:$0xf] }
 0x181   : > { %v3772_v38 = vpop.f32.mrf.mxu2  ;;  %v3838_v37 = vor.u32 %v3069_v57, %v2886_v34 }
 0x183   : > { %1864 = vmatpush.bf16.msra.mxu1 %v3838_v37 }
 0x185   : > { %v739_v21 = vpop.f32.mrf.mxu1 }
 0x186   : > { %v740_v22 = vadd.f32 %v3592_v49, %v739_v21  ;;  %v3821_v21 = vperm.slane %v899_v7, 3 }
 0x188   : > { %v800_v28 = vmax.f32 %v740_v22, 0.0  ;;  %v2849_v22 = vor.u32 %v3060_v18, %v2846_v19 }
 0x189   : > { %v3781_v48 = vpop.f32.mrf.mxu2 }
 0x18a   : > { %v3754_v29 = vpack.c.bf16 %v800_v28, %v799_v27  ;;  %v755_v27 = vadd.f32 %v3592_v49, %v3623_v1  ;;  %1687 = vmatpush.bf16.msra.mxu3 %v2849_v22  ;;  %v805_v1 = vmax.f32 %v753_v20, 0.0 }
 0x18c   : > { %1275 = vmatmul.bf16.gmra.mxu2 %v3754_v29  ;;  %1364 = vmatmul.bf16.gmra.mxu3 %v3754_v29 }
 0x18d   : > { %1453 = vmatmul.bf16.gmra.mxu0 %v3754_v29  ;;  %v742_v30 = vpop.f32.mrf.mxu1 }
 0x18e   : > { %v743_v41 = vadd.f32 %v3592_v49, %v742_v30  ;;  %v3827_v30 = vperm.slane %v899_v7, 0 }
 0x190   : > { %1542 = vmatmul.bf16.gmra.mxu1 %v3754_v29  ;;  %v801_v45 = vmax.f32 %v743_v41, 0.0 }
 0x191   : > { %v3794_v59 = vpop.f32.mrf.mxu2 }
 0x195   : > { %v744_v42 = vpop.f32.mrf.mxu1 }
 0x196   : > { %v745_v43 = vadd.f32 %v3592_v49, %v744_v42  ;;  %v806_v42 = vmax.f32 %v755_v27, 0.0 }
 0x198   : > { %v802_v46 = vmax.f32 %v745_v43, 0.0 }
 0x19a   : > { %v3779_v47 = vpack.c.bf16 %v802_v46, %v801_v45 }
 0x19c   : > { %1280 = vmatmul.bf16.gmra.mxu2 %v3779_v47  ;;  %1369 = vmatmul.bf16.gmra.mxu3 %v3779_v47 }
 0x19d   : > { %1458 = vmatmul.bf16.gmra.mxu0 %v3779_v47  ;;  %v747_v23 = vpop.f32.mrf.mxu1 }
 0x19e   : > { %v748_v55 = vadd.f32 %v3592_v49, %v747_v23 }
 0x1a0   : > { %1547 = vmatmul.bf16.gmra.mxu1 %v3779_v47  ;;  %v803_v3 = vmax.f32 %v748_v55, 0.0 }
 0x1a5   : > { %v749_v56 = vpop.f32.mrf.mxu1 }
 0x1a6   : > { %v750_v60 = vadd.f32 %v3592_v49, %v749_v56 }
 0x1a8   : > { %v804_v4 = vmax.f32 %v750_v60, 0.0 }
 0x1aa   : > { %v3803_v6 = vpack.c.bf16 %v804_v4, %v803_v3  ;;  %v1424_v11 = vpop.f32.mrf.mxu0  ;;  %v3847_v4 = vpack.c.bf16 %v806_v42, %v805_v1  ;;  %v3064_v1 = vld [vmem:[%s4392_s5 + $0xac] sm:$0xf0] }
 0x1ab   : > { %v1425_v28 = vadd.f32 %v1424_v11, %v3810_v13 }
 0x1ac   : > { %1285 = vmatmul.bf16.gmra.mxu2 %v3803_v6  ;;  %1374 = vmatmul.bf16.gmra.mxu3 %v3803_v6 }
 0x1ad   : > { %1463 = vmatmul.bf16.gmra.mxu0 %v3803_v6  ;;  %v1513_v14 = vpop.f32.mrf.mxu1  ;;  %v1951_v43 = vmax.f32 %v1425_v28, 0.0 }
 0x1ae   : > { %v1514_v41 = vadd.f32 %v1513_v14, %v3821_v21 }
 0x1af   : > { %v1246_v15 = vpop.f32.mrf.mxu2  ;;  %v1335_v17 = vpop.f32.mrf.mxu3 }
 0x1b0   : > { %1552 = vmatmul.bf16.gmra.mxu1 %v3803_v6  ;;  %v1247_v45 = vadd.f32 %v1246_v15, %v3827_v30  ;;  %v1336_v50 = vadd.f32 %v1335_v17, %v3829_v31  ;;  %v1952_v60 = vmax.f32 %v1514_v41, 0.0 }
 0x1b2   : > { %v1426_v33 = vpop.f32.mrf.mxu0  ;;  %v1949_v5 = vmax.f32 %v1247_v45, 0.0  ;;  %v1950_v7 = vmax.f32 %v1336_v50, 0.0 }
 0x1b3   : > { %v1427_v36 = vadd.f32 %v1426_v33, %v3810_v13 }
 0x1b5   : > { %v1959_v46 = vmax.f32 %v1427_v36, 0.0  ;;  %v1515_v23 = vpop.f32.mrf.mxu1  ;;  %v2844_v36 = vld [vmem:[%s4392_s5 + $0x90] sm:$0xf] }
 0x1b6   : > { %v1516_v51 = vadd.f32 %v1515_v23, %v3821_v21  ;;  %v2845_v45 = vor.u32 %v3064_v1, %v2844_v36  ;;  %v760_v23 = vadd.f32 %v3592_v49, %v3650_v16  ;;  %v2852_v16 = vld [vmem:[%s4392_s5 + $0x98] sm:$0xf] }
 0x1b7   : > { %v2279_v52 = vmax.f32 %v1951_v43, %v1959_v46  ;;  %v1248_v55 = vpop.f32.mrf.mxu2  ;;  %v1337_v56 = vpop.f32.mrf.mxu3  ;;  %v758_v46 = vadd.f32 %v3592_v49, %v3630_v8 }
 0x1b8   : > { %v1960_v61 = vmax.f32 %v1516_v51, 0.0  ;;  %v1249_v62 = vadd.f32 %v1248_v55, %v3827_v30  ;;  %v1338_v3 = vadd.f32 %v1337_v56, %v3829_v31  ;;  %1598 = vmatpush.bf16.msra.mxu2 %v2845_v45 }
 0x1ba   : > { %v2316_v11 = vmax.f32 %v1952_v60, %v1960_v61  ;;  %v1957_v14 = vmax.f32 %v1249_v62, 0.0  ;;  %v1958_v15 = vmax.f32 %v1338_v3, 0.0  ;;  %v1429_v18 = vpop.f32.mrf.mxu0 }
 0x1bb   : > { %v1430_v17 = vadd.f32 %v1429_v18, %v3810_v13 }
 0x1bc   : > { %v2205_v19 = vmax.f32 %v1949_v5, %v1957_v14  ;;  %v2242_v20 = vmax.f32 %v1950_v7, %v1958_v15  ;;  %1290 = vmatmul.bf16.gmra.mxu2 %v3847_v4  ;;  %1379 = vmatmul.bf16.gmra.mxu3 %v3847_v4  ;;  %v807_v5 = vmax.f32 %v758_v46, 0.0  ;;  %v808_v7 = vmax.f32 %v760_v23, 0.0 }
 0x1bd   : > { %v1967_v22 = vmax.f32 %v1430_v17, 0.0  ;;  %1468 = vmatmul.bf16.gmra.mxu0 %v3847_v4  ;;  %v1518_v27 = vpop.f32.mrf.mxu1 }
 0x1be   : > { %v1519_v28 = vadd.f32 %v1518_v27, %v3821_v21  ;;  %v3877_v27 = vpack.c.bf16 %v808_v7, %v807_v5 }
 0x1bf   : > { %v2280_v33 = vmax.f32 %v2279_v52, %v1967_v22  ;;  %v1251_v57 = vpop.f32.mrf.mxu2  ;;  %v1340_v34 = vpop.f32.mrf.mxu3 }
 0x1c0   : > { %v1968_v41 = vmax.f32 %v1519_v28, 0.0  ;;  %v1252_v42 = vadd.f32 %v1251_v57, %v3827_v30  ;;  %v1341_v43 = vadd.f32 %v1340_v34, %v3829_v31  ;;  %1557 = vmatmul.bf16.gmra.mxu1 %v3847_v4 }
 0x1c2   : > { %v2317_v50 = vmax.f32 %v2316_v11, %v1968_v41  ;;  %v1965_v51 = vmax.f32 %v1252_v42, 0.0  ;;  %v1966_v52 = vmax.f32 %v1341_v43, 0.0  ;;  %v1431_v55 = vpop.f32.mrf.mxu0  ;;  %v3065_v11 = vld [vmem:[%s4392_s5 + $0xb4] sm:$0xf0] }
 0x1c3   : > { %v1432_v56 = vadd.f32 %v1431_v55, %v3810_v13  ;;  %v2853_v22 = vor.u32 %v3065_v11, %v2852_v16 }
 0x1c4   : > { %v2206_v60 = vmax.f32 %v2205_v19, %v1965_v51  ;;  %v2243_v61 = vmax.f32 %v2242_v20, %v1966_v52  ;;  %v3052_v51 = vld [vmem:[%s4392_s5 + $0x54] sm:$0xf] }
 0x1c5   : > { %v1975_v62 = vmax.f32 %v1432_v56, 0.0  ;;  %v1520_v3 = vpop.f32.mrf.mxu1  ;;  %1776 = vmatpush.bf16.msra.mxu0 %v2853_v22  ;;  %v2814_v52 = vld [vmem:[%s4392_s5 + $0x70] sm:$0xf0] }
 0x1c6   : > { %v1521_v14 = vadd.f32 %v1520_v3, %v3821_v21  ;;  %v765_v3 = vadd.f32 %v3592_v49, %v3678_v35 }
 0x1c7   : > { %v2281_v15 = vmax.f32 %v2280_v33, %v1975_v62  ;;  %v1253_v8 = vpop.f32.mrf.mxu2  ;;  %v1342_v18 = vpop.f32.mrf.mxu3  ;;  %v763_v62 = vadd.f32 %v3592_v49, %v3656_v25 }
 0x1c8   : > { %v1976_v17 = vmax.f32 %v1521_v14, 0.0  ;;  %v1254_v19 = vadd.f32 %v1253_v8, %v3827_v30  ;;  %v1343_v20 = vadd.f32 %v1342_v18, %v3829_v31  ;;  %v3061_v8 = vld [vmem:[%s4392_s5 + $0x9c] sm:$0xf]  ;;  %v810_v22 = vmax.f32 %v765_v3, 0.0 }
 0x1c9   : > { %v2854_v18 = vld [vmem:[%s4392_s5 + $0xb8] sm:$0xf0] }
 0x1ca   : > { %v2318_v28 = vmax.f32 %v2317_v50, %v1976_v17  ;;  %v1973_v33 = vmax.f32 %v1254_v19, 0.0  ;;  %v1974_v57 = vmax.f32 %v1343_v20, 0.0  ;;  %v1434_v34 = vpop.f32.mrf.mxu0  ;;  %v3904_v11 = vor.u32 %v3061_v8, %v2854_v18 }
 0x1cb   : > { %v1435_v36 = vadd.f32 %v1434_v34, %v3810_v13  ;;  %v809_v20 = vmax.f32 %v763_v62, 0.0 }
 0x1cc   : > { %v2207_v1 = vmax.f32 %v2206_v60, %v1973_v33  ;;  %v2244_v41 = vmax.f32 %v2243_v61, %v1974_v57  ;;  %1295 = vmatmul.bf16.gmra.mxu2 %v3877_v27  ;;  %1384 = vmatmul.bf16.gmra.mxu3 %v3877_v27  ;;  %v2817_v61 = vor.u32 %v3052_v51, %v2814_v52 }
 0x1cd   : > { %v1983_v42 = vmax.f32 %v1435_v36, 0.0  ;;  %1473 = vmatmul.bf16.gmra.mxu0 %v3877_v27  ;;  %v1523_v43 = vpop.f32.mrf.mxu1  ;;  %1865 = vmatpush.bf16.msra.mxu1 %v3904_v11 }
 0x1ce   : > { %v1524_v45 = vadd.f32 %v1523_v43, %v3821_v21  ;;  %1688 = vmatpush.bf16.msra.mxu3 %v2817_v61 }
 0x1cf   : > { %v2282_v46 = vmax.f32 %v2281_v15, %v1983_v42  ;;  %v1256_v23 = vpop.f32.mrf.mxu2  ;;  %v1345_v50 = vpop.f32.mrf.mxu3 }
 0x1d0   : > { %v1984_v55 = vmax.f32 %v1524_v45, 0.0  ;;  %v1257_v56 = vadd.f32 %v1256_v23, %v3827_v30  ;;  %v1346_v60 = vadd.f32 %v1345_v50, %v3829_v31  ;;  %1562 = vmatmul.bf16.gmra.mxu1 %v3877_v27  ;;  %v3910_v45 = vpack.c.bf16 %v810_v22, %v809_v20 }
 0x1d2   : > { %v2319_v5 = vmax.f32 %v2318_v28, %v1984_v55  ;;  %v1981_v7 = vmax.f32 %v1257_v56, 0.0  ;;  %v1982_v14 = vmax.f32 %v1346_v60, 0.0  ;;  %v1436_v15 = vpop.f32.mrf.mxu0 }
 0x1d3   : > { %v1437_v16 = vadd.f32 %v1436_v15, %v3810_v13 }
 0x1d4   : > { %v2208_v25 = vmax.f32 %v2207_v1, %v1981_v7  ;;  %v2245_v17 = vmax.f32 %v2244_v41, %v1982_v14  ;;  %v3056_v7 = vld [vmem:[%s4392_s5 + $0x6c] sm:$0xf0] }
 0x1d5   : > { %v1991_v35 = vmax.f32 %v1437_v16, 0.0  ;;  %v1525_v19 = vpop.f32.mrf.mxu1  ;;  %v768_v16 = vadd.f32 %v3592_v49, %v3692_v44 }
 0x1d6   : > { %v1526_v28 = vadd.f32 %v1525_v19, %v3821_v21 }
 0x1d7   : > { %v2283_v33 = vmax.f32 %v2282_v46, %v1991_v35  ;;  %v1258_v57 = vpop.f32.mrf.mxu2  ;;  %v1347_v34 = vpop.f32.mrf.mxu3 }
 0x1d8   : > { %v1992_v36 = vmax.f32 %v1526_v28, 0.0  ;;  %v1259_v42 = vadd.f32 %v1258_v57, %v3827_v30  ;;  %v1348_v43 = vadd.f32 %v1347_v34, %v3829_v31 }
 0x1da   : > { %v2320_v1 = vmax.f32 %v2319_v5, %v1992_v36  ;;  %v1989_v41 = vmax.f32 %v1259_v42, 0.0  ;;  %v1990_v23 = vmax.f32 %v1348_v43, 0.0  ;;  %v1439_v50 = vpop.f32.mrf.mxu0  ;;  %v2812_v5 = vld [vmem:[%s4392_s5 + $0x50] sm:$0xf]  ;;  %v811_v36 = vmax.f32 %v768_v16, 0.0 }
 0x1db   : > { %v1440_v51 = vadd.f32 %v1439_v50, %v3810_v13  ;;  %v2813_v18 = vor.u32 %v3056_v7, %v2812_v5 }
 0x1dc   : > { %v2209_v52 = vmax.f32 %v2208_v25, %v1989_v41  ;;  %v2246_v55 = vmax.f32 %v2245_v17, %v1990_v23  ;;  %1300 = vmatmul.bf16.gmra.mxu2 %v3910_v45  ;;  %1389 = vmatmul.bf16.gmra.mxu3 %v3910_v45  ;;  %v770_v25 = vadd.f32 %v3592_v49, %v3703_v53  ;;  %v2820_v53 = vld [vmem:[%s4392_s5 + $0x58] sm:$0xf] }
 0x1dd   : > { %v1999_v46 = vmax.f32 %v1440_v51, 0.0  ;;  %1478 = vmatmul.bf16.gmra.mxu0 %v3910_v45  ;;  %v1528_v56 = vpop.f32.mrf.mxu1  ;;  %1599 = vmatpush.bf16.msra.mxu2 %v2813_v18 }
 0x1de   : > { %v1529_v60 = vadd.f32 %v1528_v56, %v3821_v21  ;;  %v812_v42 = vmax.f32 %v770_v25, 0.0 }
 0x1df   : > { %v2284_v61 = vmax.f32 %v2283_v33, %v1999_v46  ;;  %v1261_v62 = vpop.f32.mrf.mxu2  ;;  %v1350_v3 = vpop.f32.mrf.mxu3 }
 0x1e0   : > { %v2000_v14 = vmax.f32 %v1529_v60, 0.0  ;;  %v1262_v15 = vadd.f32 %v1261_v62, %v3827_v30  ;;  %v1351_v8 = vadd.f32 %v1350_v3, %v3829_v31  ;;  %1567 = vmatmul.bf16.gmra.mxu1 %v3910_v45  ;;  %v3940_v46 = vpack.c.bf16 %v812_v42, %v811_v36 }
 0x1e2   : > { %v2321_v17 = vmax.f32 %v2320_v1, %v2000_v14  ;;  %v1997_v35 = vmax.f32 %v1262_v15, 0.0  ;;  %v1998_v19 = vmax.f32 %v1351_v8, 0.0  ;;  %v1441_v20 = vpop.f32.mrf.mxu0  ;;  %v3057_v1 = vld [vmem:[%s4392_s5 + $0x74] sm:$0xf0] }
 0x1e3   : > { %v1442_v22 = vadd.f32 %v1441_v20, %v3810_v13 }
 0x1e4   : > { %v2210_v28 = vmax.f32 %v2209_v52, %v1997_v35  ;;  %v2247_v33 = vmax.f32 %v2246_v55, %v1998_v19  ;;  %v2821_v55 = vor.u32 %v3057_v1, %v2820_v53  ;;  %v2782_v35 = vld [vmem:[%s4392_s5 + $0x30] sm:$0xf0] }
 0x1e5   : > { %v2007_v57 = vmax.f32 %v1442_v22, 0.0  ;;  %v1530_v34 = vpop.f32.mrf.mxu1 }
 0x1e6   : > { %v1531_v43 = vadd.f32 %v1530_v34, %v3821_v21  ;;  %1777 = vmatpush.bf16.msra.mxu0 %v2821_v55 }
 0x1e7   : > { %v2285_v41 = vmax.f32 %v2284_v61, %v2007_v57  ;;  %v1263_v44 = vpop.f32.mrf.mxu2  ;;  %v1352_v23 = vpop.f32.mrf.mxu3  ;;  %v775_v57 = vadd.f32 %v3592_v49, %v3735_v12 }
 0x1e8   : > { %v2008_v50 = vmax.f32 %v1531_v43, 0.0  ;;  %v1264_v51 = vadd.f32 %v1263_v44, %v3827_v30  ;;  %v1353_v52 = vadd.f32 %v1352_v23, %v3829_v31  ;;  %v2822_v44 = vld [vmem:[%s4392_s5 + $0x78] sm:$0xf0] }
 0x1ea   : > { %v2322_v56 = vmax.f32 %v2321_v17, %v2008_v50  ;;  %v2005_v60 = vmax.f32 %v1264_v51, 0.0  ;;  %v2006_v61 = vmax.f32 %v1353_v52, 0.0  ;;  %v1444_v62 = vpop.f32.mrf.mxu0  ;;  %v3044_v17 = vld [vmem:[%s4392_s5 + $0x14] sm:$0xf]  ;;  %v814_v52 = vmax.f32 %v775_v57, 0.0 }
 0x1eb   : > { %v1445_v3 = vadd.f32 %v1444_v62, %v3810_v13 }
 0x1ec   : > { %v2211_v5 = vmax.f32 %v2210_v28, %v2005_v60  ;;  %v2248_v7 = vmax.f32 %v2247_v33, %v2006_v61  ;;  %1305 = vmatmul.bf16.gmra.mxu2 %v3940_v46  ;;  %1394 = vmatmul.bf16.gmra.mxu3 %v3940_v46  ;;  %v2785_v28 = vor.u32 %v3044_v17, %v2782_v35 }
 0x1ed   : > { %v2015_v14 = vmax.f32 %v1445_v3, 0.0  ;;  %1483 = vmatmul.bf16.gmra.mxu0 %v3940_v46  ;;  %v1533_v15 = vpop.f32.mrf.mxu1  ;;  %v773_v33 = vadd.f32 %v3592_v49, %v3725_v0 }
 0x1ee   : > { %v1534_v8 = vadd.f32 %v1533_v15, %v3821_v21  ;;  %1689 = vmatpush.bf16.msra.mxu3 %v2785_v28  ;;  %v2780_v28 = vld [vmem:[%s4392_s5 + $0x10] sm:$0xf] }
 0x1ef   : > { %v2286_v18 = vmax.f32 %v2285_v41, %v2015_v14  ;;  %v1266_v16 = vpop.f32.mrf.mxu2  ;;  %v1355_v25 = vpop.f32.mrf.mxu3  ;;  %v3053_v41 = vld [vmem:[%s4392_s5 + $0x5c] sm:$0xf]  ;;  %v813_v51 = vmax.f32 %v773_v33, 0.0 }
 0x1f0   : > { %v2016_v19 = vmax.f32 %v1534_v8, 0.0  ;;  %v1267_v20 = vadd.f32 %v1266_v16, %v3827_v30  ;;  %v1356_v22 = vadd.f32 %v1355_v25, %v3829_v31  ;;  %1572 = vmatmul.bf16.gmra.mxu1 %v3940_v46  ;;  %v3967_v53 = vor.u32 %v3053_v41, %v2822_v44 }
 0x1f2   : > { %v2323_v34 = vmax.f32 %v2322_v56, %v2016_v19  ;;  %v2013_v36 = vmax.f32 %v1267_v20, 0.0  ;;  %v2014_v42 = vmax.f32 %v1356_v22, 0.0  ;;  %v1446_v43 = vpop.f32.mrf.mxu0  ;;  %3111 = vmatpush.bf16.msrb.mxu3 %v3625_v2  ;;  %1866 = vmatpush.bf16.msra.mxu1 %v3967_v53 }
 0x1f3   : > { %v1447_v23 = vadd.f32 %v1446_v43, %v3810_v13  ;;  %v780_v43 = vadd.f32 %v3592_v49, %v3772_v38 }
 0x1f4   : > { %v2212_v0 = vmax.f32 %v2211_v5, %v2013_v36  ;;  %v2249_v12 = vmax.f32 %v2248_v7, %v2014_v42  ;;  %v3975_v5 = vpack.c.bf16 %v814_v52, %v813_v51  ;;  %v778_v42 = vadd.f32 %v3592_v49, %v3752_v26 }
 0x1f5   : > { %v2023_v1 = vmax.f32 %v1447_v23, 0.0  ;;  %v1535_v50 = vpop.f32.mrf.mxu1 }
 0x1f6   : > { %v1536_v55 = vadd.f32 %v1535_v50, %v3821_v21  ;;  %3112 = vmatpush.bf16.msrb.mxu3 %v3674_v32  ;;  %v815_v52 = vmax.f32 %v778_v42, 0.0  ;;  %v783_v42 = vadd.f32 %v3592_v49, %v3781_v48 }
 0x1f7   : > { %v2287_v56 = vmax.f32 %v2286_v18, %v2023_v1  ;;  %v1268_v60 = vpop.f32.mrf.mxu2  ;;  %v1357_v61 = vpop.f32.mrf.mxu3 }
 0x1f8   : > { %v2024_v62 = vmax.f32 %v1536_v55, 0.0  ;;  %v1269_v3 = vadd.f32 %v1268_v60, %v3827_v30  ;;  %v1358_v2 = vadd.f32 %v1357_v61, %v3829_v31  ;;  %v816_v55 = vmax.f32 %v780_v43, 0.0  ;;  %v2788_v61 = vld [vmem:[%s4392_s5 + $0x18] sm:$0xf] }
 0x1f9   : > { %v785_v43 = vadd.f32 %v3592_v49, %v3794_v59 }
 0x1fa   : > { %v2324_v7 = vmax.f32 %v2323_v34, %v2024_v62  ;;  %v2021_v14 = vmax.f32 %v1269_v3, 0.0  ;;  %v2022_v15 = vmax.f32 %v1358_v2, 0.0  ;;  %v1449_v8 = vpop.f32.mrf.mxu0  ;;  %3113 = vmatpush.bf16.msrb.mxu3 %v3723_v63  ;;  %v3048_v63 = vld [vmem:[%s4392_s5 + $0x2c] sm:$0xf0]  ;;  %v3049_v62 = vld [vmem:[%s4392_s5 + $0x34] sm:$0xf0] }
 0x1fb   : > { %v1450_v16 = vadd.f32 %v1449_v8, %v3810_v13  ;;  %v2781_v36 = vor.u32 %v3048_v63, %v2780_v28 }
 0x1fc   : > { %v2213_v18 = vmax.f32 %v2212_v0, %v2021_v14  ;;  %v2250_v25 = vmax.f32 %v2249_v12, %v2022_v15  ;;  %1310 = vmatmul.bf16.gmra.mxu2 %v3975_v5  ;;  %1399 = vmatmul.bf16.gmra.mxu3 %v3975_v5  ;;  %v4009_v14 = vpack.c.bf16 %v816_v55, %v815_v52  ;;  %v817_v52 = vmax.f32 %v783_v42, 0.0 }
 0x1fd   : > { %v2031_v32 = vmax.f32 %v1450_v16, 0.0  ;;  %1488 = vmatmul.bf16.gmra.mxu0 %v3975_v5  ;;  %v1538_v17 = vpop.f32.mrf.mxu1  ;;  %1600 = vmatpush.bf16.msra.mxu2 %v2781_v36  ;;  %v818_v55 = vmax.f32 %v785_v43, 0.0 }
 0x1fe   : > { %v1539_v35 = vadd.f32 %v1538_v17, %v3821_v21  ;;  %3114 = vmatpush.bf16.msrb.mxu3 %v3774_v40 }
 0x1ff   : > { %v2288_v19 = vmax.f32 %v2287_v56, %v2031_v32  ;;  %v1271_v20 = vpop.f32.mrf.mxu2  ;;  %v1360_v22 = vpop.f32.mrf.mxu3  ;;  %v3045_v32 = vld [vmem:[%s4392_s5 + $0x1c] sm:$0xf] }
 0x200   : > { %v2032_v33 = vmax.f32 %v1539_v35, 0.0  ;;  %v1272_v57 = vadd.f32 %v1271_v20, %v3827_v30  ;;  %v1361_v34 = vadd.f32 %v1360_v22, %v3829_v31  ;;  %1577 = vmatmul.bf16.gmra.mxu1 %v3975_v5 }
 0x202   : > { %v2325_v41 = vmax.f32 %v2324_v7, %v2032_v33  ;;  %v2029_v44 = vmax.f32 %v1272_v57, 0.0  ;;  %v2030_v23 = vmax.f32 %v1361_v34, 0.0  ;;  %v1451_v0 = vpop.f32.mrf.mxu0  ;;  %3115 = vmatpush.bf16.msrb.mxu3 %v3838_v37  ;;  %v2789_v7 = vor.u32 %v3049_v62, %v2788_v61 }
 0x203   : > { %v1452_v40 = vadd.f32 %v1451_v0, %v3810_v13  ;;  %v4034_v61 = vpack.c.bf16 %v818_v55, %v817_v52 }
 0x204   : > { %v2214_v12 = vmax.f32 %v2213_v18, %v2029_v44  ;;  %v2251_v1 = vmax.f32 %v2250_v25, %v2030_v23  ;;  %1778 = vmatpush.bf16.msra.mxu0 %v2789_v7 }
 0x205   : > { %v2039_v50 = vmax.f32 %v1452_v40, 0.0  ;;  %v1540_v51 = vpop.f32.mrf.mxu1 }
 0x206   : > { %v1541_v26 = vadd.f32 %v1540_v51, %v3821_v21  ;;  %3116 = vmatpush.bf16.msrb.mxu3 %v3904_v11  ;;  %v2790_v11 = vld [vmem:[%s4392_s5 + $0x38] sm:$0xf0] }
 0x207   : > { %v2289_v56 = vmax.f32 %v2288_v19, %v2039_v50  ;;  %v1273_v60 = vpop.f32.mrf.mxu2  ;;  %v1362_v38 = vpop.f32.mrf.mxu3  ;;  %v2793_v19 = vor.u32 %v3045_v32, %v2790_v11 }
 0x208   : > { %v2040_v37 = vmax.f32 %v1541_v26, 0.0  ;;  %v1274_v3 = vadd.f32 %v1273_v60, %v3827_v30  ;;  %v1363_v2 = vadd.f32 %v1362_v38, %v3829_v31 }
 0x209   : > { %1867 = vmatpush.bf16.msra.mxu1 %v2793_v19 }
 0x20a   : > { %v2326_v15 = vmax.f32 %v2325_v41, %v2040_v37  ;;  %v2037_v8 = vmax.f32 %v1274_v3, 0.0  ;;  %v2038_v16 = vmax.f32 %v1363_v2, 0.0  ;;  %v1454_v18 = vpop.f32.mrf.mxu0  ;;  %3117 = vmatpush.bf16.msrb.mxu3 %v3967_v53 }
 0x20b   : > { %v1455_v25 = vadd.f32 %v1454_v18, %v3810_v13 }
 0x20c   : > { %v2215_v17 = vmax.f32 %v2214_v12, %v2037_v8  ;;  %v2252_v35 = vmax.f32 %v2251_v1, %v2038_v16  ;;  %1315 = vmatmul.bf16.gmra.mxu2 %v4009_v14  ;;  %1404 = vmatmul.bf16.gmra.mxu3 %v4009_v14 }
 0x20d   : > { %v2047_v20 = vmax.f32 %v1455_v25, 0.0  ;;  %1493 = vmatmul.bf16.gmra.mxu0 %v4009_v14  ;;  %v1543_v22 = vpop.f32.mrf.mxu1 }
 0x20e   : > { %v1544_v28 = vadd.f32 %v1543_v22, %v3821_v21  ;;  %3118 = vmatpush.bf16.msrb.mxu3 %v2793_v19 }
 0x20f   : > { %v2290_v63 = vmax.f32 %v2289_v56, %v2047_v20  ;;  %v1276_v33 = vpop.f32.mrf.mxu2  ;;  %v1365_v57 = vpop.f32.mrf.mxu3 }
 0x210   : > { %v2048_v34 = vmax.f32 %v1544_v28, 0.0  ;;  %v1277_v53 = vadd.f32 %v1276_v33, %v3827_v30  ;;  %v1366_v36 = vadd.f32 %v1365_v57, %v3829_v31  ;;  %1582 = vmatmul.bf16.gmra.mxu1 %v4009_v14 }
 0x212   : > { %v2327_v41 = vmax.f32 %v2326_v15, %v2048_v34  ;;  %v2045_v44 = vmax.f32 %v1277_v53, 0.0  ;;  %v2046_v23 = vmax.f32 %v1366_v36, 0.0  ;;  %v1456_v0 = vpop.f32.mrf.mxu0 }
 0x213   : > { %v1457_v40 = vadd.f32 %v1456_v0, %v3810_v13 }
 0x214   : > { %v2216_v12 = vmax.f32 %v2215_v17, %v2045_v44  ;;  %v2253_v1 = vmax.f32 %v2252_v35, %v2046_v23 }
 0x215   : > { %v2055_v50 = vmax.f32 %v1457_v40, 0.0  ;;  %v1545_v51 = vpop.f32.mrf.mxu1 }
 0x216   : > { %v1546_v26 = vadd.f32 %v1545_v51, %v3821_v21 }
 0x217   : > { %v2291_v56 = vmax.f32 %v2290_v63, %v2055_v50  ;;  %v1278_v60 = vpop.f32.mrf.mxu2  ;;  %v1367_v48 = vpop.f32.mrf.mxu3 }
 0x218   : > { %v2056_v38 = vmax.f32 %v1546_v26, 0.0  ;;  %v1279_v49 = vadd.f32 %v1278_v60, %v3827_v30  ;;  %v1368_v59 = vadd.f32 %v1367_v48, %v3829_v31 }
 0x21a   : > { %v2328_v62 = vmax.f32 %v2327_v41, %v2056_v38  ;;  %v2053_v37 = vmax.f32 %v1279_v49, 0.0  ;;  %v2054_v3 = vmax.f32 %v1368_v59, 0.0  ;;  %v1459_v2 = vpop.f32.mrf.mxu0 }
 0x21b   : > { %v1460_v7 = vadd.f32 %v1459_v2, %v3810_v13 }
 0x21c   : > { %v2217_v15 = vmax.f32 %v2216_v12, %v2053_v37  ;;  %v2254_v8 = vmax.f32 %v2253_v1, %v2054_v3  ;;  %1320 = vmatmul.bf16.gmra.mxu2 %v4034_v61  ;;  %1409 = vmatmul.bf16.gmra.mxu3 %v4034_v61 }
 0x21d   : > { %v2063_v16 = vmax.f32 %v1460_v7, 0.0  ;;  %1498 = vmatmul.bf16.gmra.mxu0 %v4034_v61  ;;  %v1548_v18 = vpop.f32.mrf.mxu1 }
 0x21e   : > { %v1549_v25 = vadd.f32 %v1548_v18, %v3821_v21 }
 0x21f   : > { %v2292_v32 = vmax.f32 %v2291_v56, %v2063_v16  ;;  %v1281_v11 = vpop.f32.mrf.mxu2  ;;  %v1370_v17 = vpop.f32.mrf.mxu3 }
 0x220   : > { %v2064_v35 = vmax.f32 %v1549_v25, 0.0  ;;  %v1282_v19 = vadd.f32 %v1281_v11, %v3827_v30  ;;  %v1371_v20 = vadd.f32 %v1370_v17, %v3829_v31  ;;  %1587 = vmatmul.bf16.gmra.mxu1 %v4034_v61 }
 0x222   : > { %v2329_v22 = vmax.f32 %v2328_v62, %v2064_v35  ;;  %v2061_v28 = vmax.f32 %v1282_v19, 0.0  ;;  %v2062_v63 = vmax.f32 %v1371_v20, 0.0  ;;  %v1461_v33 = vpop.f32.mrf.mxu0 }
 0x223   : > { %v1462_v57 = vadd.f32 %v1461_v33, %v3810_v13 }
 0x224   : > { %v2218_v34 = vmax.f32 %v2217_v15, %v2061_v28  ;;  %v2255_v53 = vmax.f32 %v2254_v8, %v2062_v63 }
 0x225   : > { %v2071_v36 = vmax.f32 %v1462_v57, 0.0  ;;  %v1550_v42 = vpop.f32.mrf.mxu1 }
 0x226   : > { %v1551_v43 = vadd.f32 %v1550_v42, %v3821_v21 }
 0x227   : > { %v2293_v41 = vmax.f32 %v2292_v32, %v2071_v36  ;;  %v1283_v44 = vpop.f32.mrf.mxu2  ;;  %v1372_v23 = vpop.f32.mrf.mxu3 }
 0x228   : > { %v2072_v0 = vmax.f32 %v1551_v43, 0.0  ;;  %v1284_v40 = vadd.f32 %v1283_v44, %v3827_v30  ;;  %v1373_v12 = vadd.f32 %v1372_v23, %v3829_v31 }
 0x22a   : > { %v2330_v1 = vmax.f32 %v2329_v22, %v2072_v0  ;;  %v2069_v50 = vmax.f32 %v1284_v40, 0.0  ;;  %v2070_v51 = vmax.f32 %v1373_v12, 0.0  ;;  %v1464_v52 = vpop.f32.mrf.mxu0 }
 0x22b   : > { %v1465_v55 = vadd.f32 %v1464_v52, %v3810_v13 }
 0x22c   : > { %v2219_v26 = vmax.f32 %v2218_v34, %v2069_v50  ;;  %v2256_v56 = vmax.f32 %v2255_v53, %v2070_v51  ;;  %1601 = vmatmul.bf16.vlgmr.msra.gmra.mxu2 %v3605_v58  ;;  %1690 = vmatmul.bf16.vlgmr.msra.gmra.mxu3 %v3605_v58 }
 0x22d   : > { %v2079_v60 = vmax.f32 %v1465_v55, 0.0  ;;  %1779 = vmatmul.bf16.vlgmr.msra.gmra.mxu0 %v3605_v58  ;;  %v1553_v48 = vpop.f32.mrf.mxu1 }
 0x22e   : > { %v1554_v38 = vadd.f32 %v1553_v48, %v3821_v21 }
 0x22f   : > { %v2294_v49 = vmax.f32 %v2293_v41, %v2079_v60  ;;  %v1286_v59 = vpop.f32.mrf.mxu2  ;;  %v1375_v62 = vpop.f32.mrf.mxu3 }
 0x230   : > { %v2080_v37 = vmax.f32 %v1554_v38, 0.0  ;;  %v1287_v3 = vadd.f32 %v1286_v59, %v3827_v30  ;;  %v1376_v2 = vadd.f32 %v1375_v62, %v3829_v31  ;;  %1868 = vmatmul.bf16.vlgmr.msra.gmra.mxu1 %v3605_v58 }
 0x232   : > { %v2331_v7 = vmax.f32 %v2330_v1, %v2080_v37  ;;  %v2077_v15 = vmax.f32 %v1287_v3, 0.0  ;;  %v2078_v8 = vmax.f32 %v1376_v2, 0.0  ;;  %v1466_v16 = vpop.f32.mrf.mxu0 }
 0x233   : > { %v1467_v18 = vadd.f32 %v1466_v16, %v3810_v13 }
 0x234   : > { %v2220_v25 = vmax.f32 %v2219_v26, %v2077_v15  ;;  %v2257_v32 = vmax.f32 %v2256_v56, %v2078_v8 }
 0x235   : > { %v2087_v11 = vmax.f32 %v1467_v18, 0.0  ;;  %v1555_v17 = vpop.f32.mrf.mxu1 }
 0x236   : > { %v1556_v35 = vadd.f32 %v1555_v17, %v3821_v21 }
 0x237   : > { %v2295_v19 = vmax.f32 %v2294_v49, %v2087_v11  ;;  %v1288_v20 = vpop.f32.mrf.mxu2  ;;  %v1377_v22 = vpop.f32.mrf.mxu3 }
 0x238   : > { %v2088_v28 = vmax.f32 %v1556_v35, 0.0  ;;  %v1289_v63 = vadd.f32 %v1288_v20, %v3827_v30  ;;  %v1378_v58 = vadd.f32 %v1377_v22, %v3829_v31 }
 0x23a   : > { %v2332_v33 = vmax.f32 %v2331_v7, %v2088_v28  ;;  %v2085_v57 = vmax.f32 %v1289_v63, 0.0  ;;  %v2086_v34 = vmax.f32 %v1378_v58, 0.0  ;;  %v1469_v53 = vpop.f32.mrf.mxu0 }
 0x23b   : > { %v1470_v36 = vadd.f32 %v1469_v53, %v3810_v13 }
 0x23c   : > { %v2221_v42 = vmax.f32 %v2220_v25, %v2085_v57  ;;  %v2258_v43 = vmax.f32 %v2257_v32, %v2086_v34  ;;  %1606 = vmatmul.bf16.gmra.mxu2 %v3632_v9  ;;  %1695 = vmatmul.bf16.gmra.mxu3 %v3632_v9 }
 0x23d   : > { %v2095_v41 = vmax.f32 %v1470_v36, 0.0  ;;  %1784 = vmatmul.bf16.gmra.mxu0 %v3632_v9  ;;  %v1558_v44 = vpop.f32.mrf.mxu1 }
 0x23e   : > { %v1559_v23 = vadd.f32 %v1558_v44, %v3821_v21 }
 0x23f   : > { %v2296_v0 = vmax.f32 %v2295_v19, %v2095_v41  ;;  %v1291_v40 = vpop.f32.mrf.mxu2  ;;  %v1380_v12 = vpop.f32.mrf.mxu3 }
 0x240   : > { %v2096_v1 = vmax.f32 %v1559_v23, 0.0  ;;  %v1292_v50 = vadd.f32 %v1291_v40, %v3827_v30  ;;  %v1381_v51 = vadd.f32 %v1380_v12, %v3829_v31  ;;  %1873 = vmatmul.bf16.gmra.mxu1 %v3632_v9 }
 0x242   : > { %v2333_v52 = vmax.f32 %v2332_v33, %v2096_v1  ;;  %v2093_v55 = vmax.f32 %v1292_v50, 0.0  ;;  %v2094_v26 = vmax.f32 %v1381_v51, 0.0  ;;  %v1471_v56 = vpop.f32.mrf.mxu0 }
 0x243   : > { %v1472_v60 = vadd.f32 %v1471_v56, %v3810_v13 }
 0x244   : > { %v2222_v48 = vmax.f32 %v2221_v42, %v2093_v55  ;;  %v2259_v38 = vmax.f32 %v2258_v43, %v2094_v26 }
 0x245   : > { %v2103_v49 = vmax.f32 %v1472_v60, 0.0  ;;  %v1560_v59 = vpop.f32.mrf.mxu1 }
 0x246   : > { %v1561_v62 = vadd.f32 %v1560_v59, %v3821_v21 }
 0x247   : > { %v2297_v37 = vmax.f32 %v2296_v0, %v2103_v49  ;;  %v1293_v3 = vpop.f32.mrf.mxu2  ;;  %v1382_v2 = vpop.f32.mrf.mxu3 }
 0x248   : > { %v2104_v7 = vmax.f32 %v1561_v62, 0.0  ;;  %v1294_v15 = vadd.f32 %v1293_v3, %v3827_v30  ;;  %v1383_v9 = vadd.f32 %v1382_v2, %v3829_v31 }
 0x24a   : > { %v2334_v8 = vmax.f32 %v2333_v52, %v2104_v7  ;;  %v2101_v16 = vmax.f32 %v1294_v15, 0.0  ;;  %v2102_v18 = vmax.f32 %v1383_v9, 0.0  ;;  %v1474_v25 = vpop.f32.mrf.mxu0 }
 0x24b   : > { %v1475_v32 = vadd.f32 %v1474_v25, %v3810_v13 }
 0x24c   : > { %v2223_v11 = vmax.f32 %v2222_v48, %v2101_v16  ;;  %v2260_v17 = vmax.f32 %v2259_v38, %v2102_v18  ;;  %1611 = vmatmul.bf16.gmra.mxu2 %v3654_v24  ;;  %1700 = vmatmul.bf16.gmra.mxu3 %v3654_v24 }
 0x24d   : > { %v2111_v35 = vmax.f32 %v1475_v32, 0.0  ;;  %1789 = vmatmul.bf16.gmra.mxu0 %v3654_v24  ;;  %v1563_v19 = vpop.f32.mrf.mxu1 }
 0x24e   : > { %v1564_v20 = vadd.f32 %v1563_v19, %v3821_v21 }
 0x24f   : > { %v2298_v22 = vmax.f32 %v2297_v37, %v2111_v35  ;;  %v1296_v28 = vpop.f32.mrf.mxu2  ;;  %v1385_v63 = vpop.f32.mrf.mxu3 }
 0x250   : > { %v2112_v58 = vmax.f32 %v1564_v20, 0.0  ;;  %v1297_v33 = vadd.f32 %v1296_v28, %v3827_v30  ;;  %v1386_v57 = vadd.f32 %v1385_v63, %v3829_v31  ;;  %1878 = vmatmul.bf16.gmra.mxu1 %v3654_v24 }
 0x252   : > { %v2335_v34 = vmax.f32 %v2334_v8, %v2112_v58  ;;  %v2109_v53 = vmax.f32 %v1297_v33, 0.0  ;;  %v2110_v36 = vmax.f32 %v1386_v57, 0.0  ;;  %v1476_v42 = vpop.f32.mrf.mxu0 }
 0x253   : > { %v1477_v43 = vadd.f32 %v1476_v42, %v3810_v13 }
 0x254   : > { %v2224_v41 = vmax.f32 %v2223_v11, %v2109_v53  ;;  %v2261_v44 = vmax.f32 %v2260_v17, %v2110_v36 }
 0x255   : > { %v2119_v23 = vmax.f32 %v1477_v43, 0.0  ;;  %v1565_v0 = vpop.f32.mrf.mxu1 }
 0x256   : > { %v1566_v40 = vadd.f32 %v1565_v0, %v3821_v21 }
 0x257   : > { %v2299_v12 = vmax.f32 %v2298_v22, %v2119_v23  ;;  %v1298_v1 = vpop.f32.mrf.mxu2  ;;  %v1387_v50 = vpop.f32.mrf.mxu3 }
 0x258   : > { %v2120_v51 = vmax.f32 %v1566_v40, 0.0  ;;  %v1299_v52 = vadd.f32 %v1298_v1, %v3827_v30  ;;  %v1388_v24 = vadd.f32 %v1387_v50, %v3829_v31 }
 0x25a   : > { %v2336_v55 = vmax.f32 %v2335_v34, %v2120_v51  ;;  %v2117_v26 = vmax.f32 %v1299_v52, 0.0  ;;  %v2118_v56 = vmax.f32 %v1388_v24, 0.0  ;;  %v1479_v60 = vpop.f32.mrf.mxu0 }
 0x25b   : > { %v1480_v48 = vadd.f32 %v1479_v60, %v3810_v13 }
 0x25c   : > { %v2225_v38 = vmax.f32 %v2224_v41, %v2117_v26  ;;  %v2262_v49 = vmax.f32 %v2261_v44, %v2118_v56  ;;  %1616 = vmatmul.bf16.gmra.mxu2 %v3681_v39  ;;  %1705 = vmatmul.bf16.gmra.mxu3 %v3681_v39 }
 0x25d   : > { %v2127_v59 = vmax.f32 %v1480_v48, 0.0  ;;  %1794 = vmatmul.bf16.gmra.mxu0 %v3681_v39  ;;  %v1568_v62 = vpop.f32.mrf.mxu1 }
 0x25e   : > { %v1569_v37 = vadd.f32 %v1568_v62, %v3821_v21 }
 0x25f   : > { %v2300_v3 = vmax.f32 %v2299_v12, %v2127_v59  ;;  %v1301_v2 = vpop.f32.mrf.mxu2  ;;  %v1390_v7 = vpop.f32.mrf.mxu3 }
 0x260   : > { %v2128_v15 = vmax.f32 %v1569_v37, 0.0  ;;  %v1302_v9 = vadd.f32 %v1301_v2, %v3827_v30  ;;  %v1391_v8 = vadd.f32 %v1390_v7, %v3829_v31  ;;  %1883 = vmatmul.bf16.gmra.mxu1 %v3681_v39 }
 0x262   : > { %v2337_v16 = vmax.f32 %v2336_v55, %v2128_v15  ;;  %v2125_v18 = vmax.f32 %v1302_v9, 0.0  ;;  %v2126_v25 = vmax.f32 %v1391_v8, 0.0  ;;  %v1481_v32 = vpop.f32.mrf.mxu0 }
 0x263   : > { %v1482_v11 = vadd.f32 %v1481_v32, %v3810_v13 }
 0x264   : > { %v2226_v17 = vmax.f32 %v2225_v38, %v2125_v18  ;;  %v2263_v35 = vmax.f32 %v2262_v49, %v2126_v25 }
 0x265   : > { %v2135_v19 = vmax.f32 %v1482_v11, 0.0  ;;  %v1570_v20 = vpop.f32.mrf.mxu1 }
 0x266   : > { %v1571_v22 = vadd.f32 %v1570_v20, %v3821_v21 }
 0x267   : > { %v2301_v28 = vmax.f32 %v2300_v3, %v2135_v19  ;;  %v1303_v63 = vpop.f32.mrf.mxu2  ;;  %v1392_v58 = vpop.f32.mrf.mxu3 }
 0x268   : > { %v2136_v33 = vmax.f32 %v1571_v22, 0.0  ;;  %v1304_v57 = vadd.f32 %v1303_v63, %v3827_v30  ;;  %v1393_v39 = vadd.f32 %v1392_v58, %v3829_v31 }
 0x26a   : > { %v2338_v34 = vmax.f32 %v2337_v16, %v2136_v33  ;;  %v2133_v53 = vmax.f32 %v1304_v57, 0.0  ;;  %v2134_v36 = vmax.f32 %v1393_v39, 0.0  ;;  %v1484_v42 = vpop.f32.mrf.mxu0 }
 0x26b   : > { %v1485_v43 = vadd.f32 %v1484_v42, %v3810_v13 }
 0x26c   : > { %v2227_v41 = vmax.f32 %v2226_v17, %v2133_v53  ;;  %v2264_v44 = vmax.f32 %v2263_v35, %v2134_v36  ;;  %1621 = vmatmul.bf16.gmra.mxu2 %v3705_v54  ;;  %1710 = vmatmul.bf16.gmra.mxu3 %v3705_v54 }
 0x26d   : > { %v2143_v23 = vmax.f32 %v1485_v43, 0.0  ;;  %1799 = vmatmul.bf16.gmra.mxu0 %v3705_v54  ;;  %v1573_v0 = vpop.f32.mrf.mxu1 }
 0x26e   : > { %v1574_v40 = vadd.f32 %v1573_v0, %v3821_v21 }
 0x26f   : > { %v2302_v12 = vmax.f32 %v2301_v28, %v2143_v23  ;;  %v1306_v1 = vpop.f32.mrf.mxu2  ;;  %v1395_v50 = vpop.f32.mrf.mxu3 }
 0x270   : > { %v2144_v51 = vmax.f32 %v1574_v40, 0.0  ;;  %v1307_v52 = vadd.f32 %v1306_v1, %v3827_v30  ;;  %v1396_v24 = vadd.f32 %v1395_v50, %v3829_v31  ;;  %1888 = vmatmul.bf16.gmra.mxu1 %v3705_v54 }
 0x272   : > { %v2339_v55 = vmax.f32 %v2338_v34, %v2144_v51  ;;  %v2141_v26 = vmax.f32 %v1307_v52, 0.0  ;;  %v2142_v56 = vmax.f32 %v1396_v24, 0.0  ;;  %v1486_v60 = vpop.f32.mrf.mxu0 }
 0x273   : > { %v1487_v48 = vadd.f32 %v1486_v60, %v3810_v13 }
 0x274   : > { %v2228_v38 = vmax.f32 %v2227_v41, %v2141_v26  ;;  %v2265_v49 = vmax.f32 %v2264_v44, %v2142_v56 }
 0x275   : > { %v2151_v59 = vmax.f32 %v1487_v48, 0.0  ;;  %v1575_v62 = vpop.f32.mrf.mxu1 }
 0x276   : > { %v1576_v37 = vadd.f32 %v1575_v62, %v3821_v21 }
 0x277   : > { %v2303_v3 = vmax.f32 %v2302_v12, %v2151_v59  ;;  %v1308_v2 = vpop.f32.mrf.mxu2  ;;  %v1397_v7 = vpop.f32.mrf.mxu3 }
 0x278   : > { %v2152_v15 = vmax.f32 %v1576_v37, 0.0  ;;  %v1309_v9 = vadd.f32 %v1308_v2, %v3827_v30  ;;  %v1398_v54 = vadd.f32 %v1397_v7, %v3829_v31 }
 0x27a   : > { %v2340_v8 = vmax.f32 %v2339_v55, %v2152_v15  ;;  %v2149_v16 = vmax.f32 %v1309_v9, 0.0  ;;  %v2150_v18 = vmax.f32 %v1398_v54, 0.0  ;;  %v1489_v25 = vpop.f32.mrf.mxu0 }
 0x27b   : > { %v1490_v32 = vadd.f32 %v1489_v25, %v3810_v13 }
 0x27c   : > { %v2229_v11 = vmax.f32 %v2228_v38, %v2149_v16  ;;  %v2266_v17 = vmax.f32 %v2265_v49, %v2150_v18  ;;  %1626 = vmatmul.bf16.gmra.mxu2 %v3730_v10  ;;  %1715 = vmatmul.bf16.gmra.mxu3 %v3730_v10 }
 0x27d   : > { %v2159_v35 = vmax.f32 %v1490_v32, 0.0  ;;  %1804 = vmatmul.bf16.gmra.mxu0 %v3730_v10  ;;  %v1578_v19 = vpop.f32.mrf.mxu1 }
 0x27e   : > { %v1579_v20 = vadd.f32 %v1578_v19, %v3821_v21 }
 0x27f   : > { %v2304_v22 = vmax.f32 %v2303_v3, %v2159_v35  ;;  %v1311_v28 = vpop.f32.mrf.mxu2  ;;  %v1400_v63 = vpop.f32.mrf.mxu3 }
 0x280   : > { %v2160_v58 = vmax.f32 %v1579_v20, 0.0  ;;  %v1312_v33 = vadd.f32 %v1311_v28, %v3827_v30  ;;  %v1401_v57 = vadd.f32 %v1400_v63, %v3829_v31  ;;  %1893 = vmatmul.bf16.gmra.mxu1 %v3730_v10 }
 0x282   : > { %v2341_v39 = vmax.f32 %v2340_v8, %v2160_v58  ;;  %v2157_v34 = vmax.f32 %v1312_v33, 0.0  ;;  %v2158_v53 = vmax.f32 %v1401_v57, 0.0  ;;  %v1491_v36 = vpop.f32.mrf.mxu0 }
 0x283   : > { %v1492_v42 = vadd.f32 %v1491_v36, %v3810_v13 }
 0x284   : > { %v2230_v43 = vmax.f32 %v2229_v11, %v2157_v34  ;;  %v2267_v41 = vmax.f32 %v2266_v17, %v2158_v53 }
 0x285   : > { %v2167_v44 = vmax.f32 %v1492_v42, 0.0  ;;  %v1580_v23 = vpop.f32.mrf.mxu1 }
 0x286   : > { %v1581_v0 = vadd.f32 %v1580_v23, %v3821_v21 }
 0x287   : > { %v2305_v40 = vmax.f32 %v2304_v22, %v2167_v44  ;;  %v1313_v12 = vpop.f32.mrf.mxu2  ;;  %v1402_v1 = vpop.f32.mrf.mxu3 }
 0x288   : > { %v2168_v50 = vmax.f32 %v1581_v0, 0.0  ;;  %v1314_v51 = vadd.f32 %v1313_v12, %v3827_v30  ;;  %v1403_v10 = vadd.f32 %v1402_v1, %v3829_v31 }
 0x28a   : > { %v2342_v52 = vmax.f32 %v2341_v39, %v2168_v50  ;;  %v2165_v24 = vmax.f32 %v1314_v51, 0.0  ;;  %v2166_v55 = vmax.f32 %v1403_v10, 0.0  ;;  %v1494_v26 = vpop.f32.mrf.mxu0 }
 0x28b   : > { %v1495_v56 = vadd.f32 %v1494_v26, %v3810_v13 }
 0x28c   : > { %v2231_v60 = vmax.f32 %v2230_v43, %v2165_v24  ;;  %v2268_v48 = vmax.f32 %v2267_v41, %v2166_v55  ;;  %1631 = vmatmul.bf16.gmra.mxu2 %v3754_v29  ;;  %1720 = vmatmul.bf16.gmra.mxu3 %v3754_v29 }
 0x28d   : > { %v2175_v38 = vmax.f32 %v1495_v56, 0.0  ;;  %1809 = vmatmul.bf16.gmra.mxu0 %v3754_v29  ;;  %v1583_v49 = vpop.f32.mrf.mxu1 }
 0x28e   : > { %v1584_v59 = vadd.f32 %v1583_v49, %v3821_v21 }
 0x28f   : > { %v2306_v62 = vmax.f32 %v2305_v40, %v2175_v38  ;;  %v1316_v37 = vpop.f32.mrf.mxu2  ;;  %v1405_v3 = vpop.f32.mrf.mxu3 }
 0x290   : > { %v2176_v2 = vmax.f32 %v1584_v59, 0.0  ;;  %v1317_v7 = vadd.f32 %v1316_v37, %v3827_v30  ;;  %v1406_v15 = vadd.f32 %v1405_v3, %v3829_v31  ;;  %1898 = vmatmul.bf16.gmra.mxu1 %v3754_v29 }
 0x292   : > { %v2343_v9 = vmax.f32 %v2342_v52, %v2176_v2  ;;  %v2173_v54 = vmax.f32 %v1317_v7, 0.0  ;;  %v2174_v8 = vmax.f32 %v1406_v15, 0.0  ;;  %v1496_v16 = vpop.f32.mrf.mxu0 }
 0x293   : > { %v1497_v18 = vadd.f32 %v1496_v16, %v3810_v13 }
 0x294   : > { %v2232_v25 = vmax.f32 %v2231_v60, %v2173_v54  ;;  %v2269_v32 = vmax.f32 %v2268_v48, %v2174_v8 }
 0x295   : > { %v2183_v11 = vmax.f32 %v1497_v18, 0.0  ;;  %v1585_v17 = vpop.f32.mrf.mxu1 }
 0x296   : > { %v1586_v35 = vadd.f32 %v1585_v17, %v3821_v21 }
 0x297   : > { %v2307_v19 = vmax.f32 %v2306_v62, %v2183_v11  ;;  %v1318_v20 = vpop.f32.mrf.mxu2  ;;  %v1407_v22 = vpop.f32.mrf.mxu3 }
 0x298   : > { %v2184_v28 = vmax.f32 %v1586_v35, 0.0  ;;  %v1319_v63 = vadd.f32 %v1318_v20, %v3827_v30  ;;  %v1408_v29 = vadd.f32 %v1407_v22, %v3829_v31 }
 0x29a   : > { %v2344_v58 = vmax.f32 %v2343_v9, %v2184_v28  ;;  %v2181_v33 = vmax.f32 %v1319_v63, 0.0  ;;  %v2182_v57 = vmax.f32 %v1408_v29, 0.0  ;;  %v1499_v39 = vpop.f32.mrf.mxu0 }
 0x29b   : > { %v1500_v34 = vadd.f32 %v1499_v39, %v3810_v13 }
 0x29c   : > { %v2233_v53 = vmax.f32 %v2232_v25, %v2181_v33  ;;  %v2270_v36 = vmax.f32 %v2269_v32, %v2182_v57  ;;  %1636 = vmatmul.bf16.gmra.mxu2 %v3779_v47  ;;  %1725 = vmatmul.bf16.gmra.mxu3 %v3779_v47 }
 0x29d   : > { %v2191_v42 = vmax.f32 %v1500_v34, 0.0  ;;  %1814 = vmatmul.bf16.gmra.mxu0 %v3779_v47  ;;  %v1588_v43 = vpop.f32.mrf.mxu1 }
 0x29e   : > { %v1589_v41 = vadd.f32 %v1588_v43, %v3821_v21 }
 0x29f   : > { %v2308_v44 = vmax.f32 %v2307_v19, %v2191_v42  ;;  %v1321_v23 = vpop.f32.mrf.mxu2  ;;  %v1410_v0 = vpop.f32.mrf.mxu3 }
 0x2a0   : > { %v2192_v40 = vmax.f32 %v1589_v41, 0.0  ;;  %v1322_v12 = vadd.f32 %v1321_v23, %v3827_v30  ;;  %v1411_v1 = vadd.f32 %v1410_v0, %v3829_v31  ;;  %1903 = vmatmul.bf16.gmra.mxu1 %v3779_v47 }
 0x2a2   : > { %v2345_v50 = vmax.f32 %v2344_v58, %v2192_v40  ;;  %v2189_v51 = vmax.f32 %v1322_v12, 0.0  ;;  %v2190_v10 = vmax.f32 %v1411_v1, 0.0  ;;  %v1501_v52 = vpop.f32.mrf.mxu0 }
 0x2a3   : > { %v1502_v24 = vadd.f32 %v1501_v52, %v3810_v13 }
 0x2a4   : > { %v2234_v55 = vmax.f32 %v2233_v53, %v2189_v51  ;;  %v2271_v26 = vmax.f32 %v2270_v36, %v2190_v10 }
 0x2a5   : > { %v2199_v56 = vmax.f32 %v1502_v24, 0.0  ;;  %v1590_v60 = vpop.f32.mrf.mxu1 }
 0x2a6   : > { %v1591_v48 = vadd.f32 %v1590_v60, %v3821_v21 }
 0x2a7   : > { %v2309_v38 = vmax.f32 %v2308_v44, %v2199_v56  ;;  %v1323_v49 = vpop.f32.mrf.mxu2  ;;  %v1412_v59 = vpop.f32.mrf.mxu3 }
 0x2a8   : > { %v2200_v62 = vmax.f32 %v1591_v48, 0.0  ;;  %v1324_v37 = vadd.f32 %v1323_v49, %v3827_v30  ;;  %v1413_v47 = vadd.f32 %v1412_v59, %v3829_v31  ;;  %v3161_v30 = vld [vmem:[%s4393_s6] sm:$0xff] }
 0x2a9   : > { %v2310_v3 = vrot.slane %v2309_v38, 4  ;;  %v4149_v18 = vperm.slane %v3161_v30, 6  ;;  %v4152_v35 = vperm.slane %v3161_v30, 7  ;;  %v4156_v33 = vperm.slane %v3161_v30, 4 }
 0x2aa   : > { %v2346_v2 = vmax.f32 %v2345_v50, %v2200_v62  ;;  %v2197_v7 = vmax.f32 %v1324_v37, 0.0  ;;  %v2198_v15 = vmax.f32 %v1413_v47, 0.0  ;;  %v1780_v9 = vpop.f32.mrf.mxu0  ;;  %v4161_v43 = vperm.slane %v3161_v30, 5 }
 0x2ab   : > { %v2311_v13 = vmax.f32 %v2309_v38, %v2310_v3  ;;  %v1781_v58 = vadd.f32 %v1780_v9, %v4149_v18 }
 0x2ac   : > { %v2347_v54 = vrot.slane %v2346_v2, 4  ;;  %v2235_v8 = vmax.f32 %v2234_v55, %v2197_v7  ;;  %v2272_v16 = vmax.f32 %v2271_v26, %v2198_v15  ;;  %1641 = vmatmul.bf16.gmra.mxu2 %v3803_v6  ;;  %1730 = vmatmul.bf16.gmra.mxu3 %v3803_v6 }
 0x2ad   : > { %v2312_v21 = vrot.slane %v2311_v13, 2  ;;  %1819 = vmatmul.bf16.gmra.mxu0 %v3803_v6  ;;  %v1869_v31 = vpop.f32.mrf.mxu1  ;;  %v1955_v0 = vmax.f32 %v1781_v58, 0.0 }
 0x2ae   : > { %v2348_v25 = vmax.f32 %v2346_v2, %v2347_v54  ;;  %v2236_v32 = vrot.slane %v2235_v8, 4  ;;  %v2273_v11 = vrot.slane %v2272_v16, 4  ;;  %v1870_v42 = vadd.f32 %v1869_v31, %v4152_v35 }
 0x2af   : > { %v2313_v17 = vmax.f32 %v2311_v13, %v2312_v21  ;;  %v1602_v19 = vpop.f32.mrf.mxu2  ;;  %v1691_v20 = vpop.f32.mrf.mxu3 }
 0x2b0   : > { %v2349_v22 = vrot.slane %v2348_v25, 2  ;;  %v2237_v28 = vmax.f32 %v2235_v8, %v2236_v32  ;;  %v2274_v63 = vmax.f32 %v2272_v16, %v2273_v11  ;;  %1908 = vmatmul.bf16.gmra.mxu1 %v3803_v6  ;;  %v1603_v40 = vadd.f32 %v1602_v19, %v4156_v33 }
 0x2b1   : > { %v2314_v29 = vrot.slane %v2313_v17, 1  ;;  %v1956_v24 = vmax.f32 %v1870_v42, 0.0  ;;  %v1692_v55 = vadd.f32 %v1691_v20, %v4161_v43 }
 0x2b2   : > { %v2350_v57 = vmax.f32 %v2348_v25, %v2349_v22  ;;  %v2238_v39 = vrot.slane %v2237_v28, 2  ;;  %v2275_v34 = vrot.slane %v2274_v63, 2  ;;  %v1782_v53 = vpop.f32.mrf.mxu0  ;;  %v1953_v37 = vmax.f32 %v1603_v40, 0.0 }
 0x2b3   : > { %v4158_v36 = vmax.f32 %v2313_v17, %v2314_v29  ;;  %v1783_v41 = vadd.f32 %v1782_v53, %v4149_v18  ;;  %v1954_v7 = vmax.f32 %v1692_v55, 0.0 }
 0x2b4   : > { %v2351_v44 = vrot.slane %v2350_v57, 1  ;;  %v2239_v23 = vmax.f32 %v2237_v28, %v2238_v39  ;;  %v2276_v6 = vmax.f32 %v2274_v63, %v2275_v34 }
 0x2b5   : > { %v1963_v12 = vmax.f32 %v1783_v41, 0.0  ;;  %v1871_v1 = vpop.f32.mrf.mxu1 }
 0x2b6   : > { %v4165_v50 = vmax.f32 %v2350_v57, %v2351_v44  ;;  %v2240_v51 = vrot.slane %v2239_v23, 1  ;;  %v2277_v10 = vrot.slane %v2276_v6, 1  ;;  %v1872_v52 = vadd.f32 %v1871_v1, %v4152_v35 }
 0x2b7   : > { %v2427_v26 = vmax.f32 %v1955_v0, %v1963_v12  ;;  %v1604_v56 = vpop.f32.mrf.mxu2  ;;  %v1693_v60 = vpop.f32.mrf.mxu3 }
 0x2b8   : > { %v4169_v48 = vmax.f32 %v2239_v23, %v2240_v51  ;;  %v4171_v38 = vmax.f32 %v2276_v6, %v2277_v10  ;;  %v1964_v49 = vmax.f32 %v1872_v52, 0.0  ;;  %v1605_v59 = vadd.f32 %v1604_v56, %v4156_v33 }
 0x2b9   : > { %v1694_v62 = vadd.f32 %v1693_v60, %v4161_v43 }
 0x2ba   : > { %v2464_v47 = vmax.f32 %v1956_v24, %v1964_v49  ;;  %v1961_v3 = vmax.f32 %v1605_v59, 0.0  ;;  %v1785_v2 = vpop.f32.mrf.mxu0 }
 0x2bb   : > { %v1962_v15 = vmax.f32 %v1694_v62, 0.0  ;;  %v1786_v9 = vadd.f32 %v1785_v2, %v4149_v18 }
 0x2bc   : > { %v2353_v13 = vmax.f32 %v1953_v37, %v1961_v3  ;;  %1646 = vmatmul.bf16.gmra.mxu2 %v3847_v4  ;;  %1735 = vmatmul.bf16.gmra.mxu3 %v3847_v4 }
 0x2bd   : > { %v2390_v54 = vmax.f32 %v1954_v7, %v1962_v15  ;;  %v1971_v8 = vmax.f32 %v1786_v9, 0.0  ;;  %1824 = vmatmul.bf16.gmra.mxu0 %v3847_v4  ;;  %v1874_v16 = vpop.f32.mrf.mxu1 }
 0x2be   : > { %v1875_v21 = vadd.f32 %v1874_v16, %v4152_v35 }
 0x2bf   : > { %v2428_v30 = vmax.f32 %v2427_v26, %v1971_v8  ;;  %v1607_v31 = vpop.f32.mrf.mxu2  ;;  %v1696_v25 = vpop.f32.mrf.mxu3 }
 0x2c0   : > { %v1972_v32 = vmax.f32 %v1875_v21, 0.0  ;;  %v1608_v11 = vadd.f32 %v1607_v31, %v4156_v33  ;;  %v1697_v17 = vadd.f32 %v1696_v25, %v4161_v43  ;;  %1913 = vmatmul.bf16.gmra.mxu1 %v3847_v4 }
 0x2c2   : > { %v2465_v19 = vmax.f32 %v2464_v47, %v1972_v32  ;;  %v1969_v20 = vmax.f32 %v1608_v11, 0.0  ;;  %v1970_v22 = vmax.f32 %v1697_v17, 0.0  ;;  %v1787_v28 = vpop.f32.mrf.mxu0 }
 0x2c3   : > { %v1788_v63 = vadd.f32 %v1787_v28, %v4149_v18 }
 0x2c4   : > { %v2354_v29 = vmax.f32 %v2353_v13, %v1969_v20  ;;  %v2391_v58 = vmax.f32 %v2390_v54, %v1970_v22 }
 0x2c5   : > { %v1979_v57 = vmax.f32 %v1788_v63, 0.0  ;;  %v1876_v39 = vpop.f32.mrf.mxu1 }
 0x2c6   : > { %v1877_v34 = vadd.f32 %v1876_v39, %v4152_v35 }
 0x2c7   : > { %v2429_v53 = vmax.f32 %v2428_v30, %v1979_v57  ;;  %v1609_v42 = vpop.f32.mrf.mxu2  ;;  %v1698_v41 = vpop.f32.mrf.mxu3 }
 0x2c8   : > { %v1980_v44 = vmax.f32 %v1877_v34, 0.0  ;;  %v1610_v23 = vadd.f32 %v1609_v42, %v4156_v33  ;;  %v1699_v4 = vadd.f32 %v1698_v41, %v4161_v43 }
 0x2ca   : > { %v2466_v6 = vmax.f32 %v2465_v19, %v1980_v44  ;;  %v1977_v0 = vmax.f32 %v1610_v23, 0.0  ;;  %v1978_v40 = vmax.f32 %v1699_v4, 0.0  ;;  %v1790_v12 = vpop.f32.mrf.mxu0 }
 0x2cb   : > { %v1791_v1 = vadd.f32 %v1790_v12, %v4149_v18 }
 0x2cc   : > { %v2355_v51 = vmax.f32 %v2354_v29, %v1977_v0  ;;  %v2392_v10 = vmax.f32 %v2391_v58, %v1978_v40  ;;  %1651 = vmatmul.bf16.gmra.mxu2 %v3877_v27  ;;  %1740 = vmatmul.bf16.gmra.mxu3 %v3877_v27 }
 0x2cd   : > { %v1987_v52 = vmax.f32 %v1791_v1, 0.0  ;;  %1829 = vmatmul.bf16.gmra.mxu0 %v3877_v27  ;;  %v1879_v24 = vpop.f32.mrf.mxu1 }
 0x2ce   : > { %v1880_v55 = vadd.f32 %v1879_v24, %v4152_v35 }
 0x2cf   : > { %v2430_v26 = vmax.f32 %v2429_v53, %v1987_v52  ;;  %v1612_v56 = vpop.f32.mrf.mxu2  ;;  %v1701_v60 = vpop.f32.mrf.mxu3 }
 0x2d0   : > { %v1988_v49 = vmax.f32 %v1880_v55, 0.0  ;;  %v1613_v59 = vadd.f32 %v1612_v56, %v4156_v33  ;;  %v1702_v62 = vadd.f32 %v1701_v60, %v4161_v43  ;;  %1918 = vmatmul.bf16.gmra.mxu1 %v3877_v27 }
 0x2d2   : > { %v2467_v37 = vmax.f32 %v2466_v6, %v1988_v49  ;;  %v1985_v47 = vmax.f32 %v1613_v59, 0.0  ;;  %v1986_v3 = vmax.f32 %v1702_v62, 0.0  ;;  %v1792_v2 = vpop.f32.mrf.mxu0 }
 0x2d3   : > { %v1793_v7 = vadd.f32 %v1792_v2, %v4149_v18 }
 0x2d4   : > { %v2356_v15 = vmax.f32 %v2355_v51, %v1985_v47  ;;  %v2393_v9 = vmax.f32 %v2392_v10, %v1986_v3 }
 0x2d5   : > { %v1995_v13 = vmax.f32 %v1793_v7, 0.0  ;;  %v1881_v54 = vpop.f32.mrf.mxu1 }
 0x2d6   : > { %v1882_v8 = vadd.f32 %v1881_v54, %v4152_v35 }
 0x2d7   : > { %v2431_v16 = vmax.f32 %v2430_v26, %v1995_v13  ;;  %v1614_v21 = vpop.f32.mrf.mxu2  ;;  %v1703_v30 = vpop.f32.mrf.mxu3 }
 0x2d8   : > { %v1996_v31 = vmax.f32 %v1882_v8, 0.0  ;;  %v1615_v25 = vadd.f32 %v1614_v21, %v4156_v33  ;;  %v1704_v27 = vadd.f32 %v1703_v30, %v4161_v43 }
 0x2da   : > { %v2468_v32 = vmax.f32 %v2467_v37, %v1996_v31  ;;  %v1993_v11 = vmax.f32 %v1615_v25, 0.0  ;;  %v1994_v17 = vmax.f32 %v1704_v27, 0.0  ;;  %v1795_v19 = vpop.f32.mrf.mxu0 }
 0x2db   : > { %v1796_v20 = vadd.f32 %v1795_v19, %v4149_v18 }
 0x2dc   : > { %v2357_v22 = vmax.f32 %v2356_v15, %v1993_v11  ;;  %v2394_v28 = vmax.f32 %v2393_v9, %v1994_v17  ;;  %1656 = vmatmul.bf16.gmra.mxu2 %v3910_v45  ;;  %1745 = vmatmul.bf16.gmra.mxu3 %v3910_v45 }
 0x2dd   : > { %v2003_v63 = vmax.f32 %v1796_v20, 0.0  ;;  %1834 = vmatmul.bf16.gmra.mxu0 %v3910_v45  ;;  %v1884_v29 = vpop.f32.mrf.mxu1 }
 0x2de   : > { %v1885_v58 = vadd.f32 %v1884_v29, %v4152_v35 }
 0x2df   : > { %v2432_v57 = vmax.f32 %v2431_v16, %v2003_v63  ;;  %v1617_v39 = vpop.f32.mrf.mxu2  ;;  %v1706_v34 = vpop.f32.mrf.mxu3 }
 0x2e0   : > { %v2004_v53 = vmax.f32 %v1885_v58, 0.0  ;;  %v1618_v42 = vadd.f32 %v1617_v39, %v4156_v33  ;;  %v1707_v41 = vadd.f32 %v1706_v34, %v4161_v43  ;;  %1923 = vmatmul.bf16.gmra.mxu1 %v3910_v45 }
 0x2e2   : > { %v2469_v44 = vmax.f32 %v2468_v32, %v2004_v53  ;;  %v2001_v23 = vmax.f32 %v1618_v42, 0.0  ;;  %v2002_v4 = vmax.f32 %v1707_v41, 0.0  ;;  %v1797_v6 = vpop.f32.mrf.mxu0 }
 0x2e3   : > { %v1798_v0 = vadd.f32 %v1797_v6, %v4149_v18 }
 0x2e4   : > { %v2358_v40 = vmax.f32 %v2357_v22, %v2001_v23  ;;  %v2395_v12 = vmax.f32 %v2394_v28, %v2002_v4 }
 0x2e5   : > { %v2011_v1 = vmax.f32 %v1798_v0, 0.0  ;;  %v1886_v51 = vpop.f32.mrf.mxu1 }
 0x2e6   : > { %v1887_v10 = vadd.f32 %v1886_v51, %v4152_v35 }
 0x2e7   : > { %v2433_v52 = vmax.f32 %v2432_v57, %v2011_v1  ;;  %v1619_v24 = vpop.f32.mrf.mxu2  ;;  %v1708_v55 = vpop.f32.mrf.mxu3 }
 0x2e8   : > { %v2012_v26 = vmax.f32 %v1887_v10, 0.0  ;;  %v1620_v56 = vadd.f32 %v1619_v24, %v4156_v33  ;;  %v1709_v45 = vadd.f32 %v1708_v55, %v4161_v43 }
 0x2ea   : > { %v2470_v60 = vmax.f32 %v2469_v44, %v2012_v26  ;;  %v2009_v49 = vmax.f32 %v1620_v56, 0.0  ;;  %v2010_v59 = vmax.f32 %v1709_v45, 0.0  ;;  %v1800_v62 = vpop.f32.mrf.mxu0 }
 0x2eb   : > { %v1801_v37 = vadd.f32 %v1800_v62, %v4149_v18 }
 0x2ec   : > { %v2359_v47 = vmax.f32 %v2358_v40, %v2009_v49  ;;  %v2396_v3 = vmax.f32 %v2395_v12, %v2010_v59  ;;  %1661 = vmatmul.bf16.gmra.mxu2 %v3940_v46  ;;  %1750 = vmatmul.bf16.gmra.mxu3 %v3940_v46 }
 0x2ed   : > { %v2019_v2 = vmax.f32 %v1801_v37, 0.0  ;;  %1839 = vmatmul.bf16.gmra.mxu0 %v3940_v46  ;;  %v1889_v7 = vpop.f32.mrf.mxu1 }
 0x2ee   : > { %v1890_v15 = vadd.f32 %v1889_v7, %v4152_v35 }
 0x2ef   : > { %v2434_v9 = vmax.f32 %v2433_v52, %v2019_v2  ;;  %v1622_v13 = vpop.f32.mrf.mxu2  ;;  %v1711_v54 = vpop.f32.mrf.mxu3 }
 0x2f0   : > { %v2020_v8 = vmax.f32 %v1890_v15, 0.0  ;;  %v1623_v16 = vadd.f32 %v1622_v13, %v4156_v33  ;;  %v1712_v21 = vadd.f32 %v1711_v54, %v4161_v43  ;;  %1928 = vmatmul.bf16.gmra.mxu1 %v3940_v46 }
 0x2f2   : > { %v2471_v30 = vmax.f32 %v2470_v60, %v2020_v8  ;;  %v2017_v31 = vmax.f32 %v1623_v16, 0.0  ;;  %v2018_v25 = vmax.f32 %v1712_v21, 0.0  ;;  %v1802_v27 = vpop.f32.mrf.mxu0 }
 0x2f3   : > { %v1803_v32 = vadd.f32 %v1802_v27, %v4149_v18 }
 0x2f4   : > { %v2360_v11 = vmax.f32 %v2359_v47, %v2017_v31  ;;  %v2397_v17 = vmax.f32 %v2396_v3, %v2018_v25 }
 0x2f5   : > { %v2027_v19 = vmax.f32 %v1803_v32, 0.0  ;;  %v1891_v20 = vpop.f32.mrf.mxu1 }
 0x2f6   : > { %v1892_v22 = vadd.f32 %v1891_v20, %v4152_v35 }
 0x2f7   : > { %v2435_v28 = vmax.f32 %v2434_v9, %v2027_v19  ;;  %v1624_v63 = vpop.f32.mrf.mxu2  ;;  %v1713_v29 = vpop.f32.mrf.mxu3 }
 0x2f8   : > { %v2028_v58 = vmax.f32 %v1892_v22, 0.0  ;;  %v1625_v57 = vadd.f32 %v1624_v63, %v4156_v33  ;;  %v1714_v46 = vadd.f32 %v1713_v29, %v4161_v43 }
 0x2fa   : > { %v2472_v39 = vmax.f32 %v2471_v30, %v2028_v58  ;;  %v2025_v34 = vmax.f32 %v1625_v57, 0.0  ;;  %v2026_v53 = vmax.f32 %v1714_v46, 0.0  ;;  %v1805_v42 = vpop.f32.mrf.mxu0 }
 0x2fb   : > { %v1806_v41 = vadd.f32 %v1805_v42, %v4149_v18 }
 0x2fc   : > { %v2361_v44 = vmax.f32 %v2360_v11, %v2025_v34  ;;  %v2398_v23 = vmax.f32 %v2397_v17, %v2026_v53  ;;  %1666 = vmatmul.bf16.gmra.mxu2 %v3975_v5  ;;  %1755 = vmatmul.bf16.gmra.mxu3 %v3975_v5 }
 0x2fd   : > { %v2035_v4 = vmax.f32 %v1806_v41, 0.0  ;;  %1844 = vmatmul.bf16.gmra.mxu0 %v3975_v5  ;;  %v1894_v6 = vpop.f32.mrf.mxu1 }
 0x2fe   : > { %v1895_v0 = vadd.f32 %v1894_v6, %v4152_v35 }
 0x2ff   : > { %v2436_v40 = vmax.f32 %v2435_v28, %v2035_v4  ;;  %v1627_v12 = vpop.f32.mrf.mxu2  ;;  %v1716_v1 = vpop.f32.mrf.mxu3 }
 0x300   : > { %v2036_v51 = vmax.f32 %v1895_v0, 0.0  ;;  %v1628_v10 = vadd.f32 %v1627_v12, %v4156_v33  ;;  %v1717_v52 = vadd.f32 %v1716_v1, %v4161_v43  ;;  %1933 = vmatmul.bf16.gmra.mxu1 %v3975_v5 }
 0x302   : > { %v2473_v24 = vmax.f32 %v2472_v39, %v2036_v51  ;;  %v2033_v55 = vmax.f32 %v1628_v10, 0.0  ;;  %v2034_v26 = vmax.f32 %v1717_v52, 0.0  ;;  %v1807_v56 = vpop.f32.mrf.mxu0 }
 0x303   : > { %v1808_v45 = vadd.f32 %v1807_v56, %v4149_v18 }
 0x304   : > { %v2362_v60 = vmax.f32 %v2361_v44, %v2033_v55  ;;  %v2399_v49 = vmax.f32 %v2398_v23, %v2034_v26 }
 0x305   : > { %v2043_v59 = vmax.f32 %v1808_v45, 0.0  ;;  %v1896_v62 = vpop.f32.mrf.mxu1 }
 0x306   : > { %v1897_v37 = vadd.f32 %v1896_v62, %v4152_v35 }
 0x307   : > { %v2437_v47 = vmax.f32 %v2436_v40, %v2043_v59  ;;  %v1629_v3 = vpop.f32.mrf.mxu2  ;;  %v1718_v2 = vpop.f32.mrf.mxu3 }
 0x308   : > { %v2044_v7 = vmax.f32 %v1897_v37, 0.0  ;;  %v1630_v15 = vadd.f32 %v1629_v3, %v4156_v33  ;;  %v1719_v5 = vadd.f32 %v1718_v2, %v4161_v43 }
 0x30a   : > { %v2474_v9 = vmax.f32 %v2473_v24, %v2044_v7  ;;  %v2041_v13 = vmax.f32 %v1630_v15, 0.0  ;;  %v2042_v54 = vmax.f32 %v1719_v5, 0.0  ;;  %v1810_v8 = vpop.f32.mrf.mxu0 }
 0x30b   : > { %v1811_v16 = vadd.f32 %v1810_v8, %v4149_v18 }
 0x30c   : > { %v2363_v21 = vmax.f32 %v2362_v60, %v2041_v13  ;;  %v2400_v30 = vmax.f32 %v2399_v49, %v2042_v54  ;;  %1671 = vmatmul.bf16.gmra.mxu2 %v4009_v14  ;;  %1760 = vmatmul.bf16.gmra.mxu3 %v4009_v14 }
 0x30d   : > { %v2051_v31 = vmax.f32 %v1811_v16, 0.0  ;;  %1849 = vmatmul.bf16.gmra.mxu0 %v4009_v14  ;;  %v1899_v25 = vpop.f32.mrf.mxu1 }
 0x30e   : > { %v1900_v27 = vadd.f32 %v1899_v25, %v4152_v35 }
 0x30f   : > { %v2438_v32 = vmax.f32 %v2437_v47, %v2051_v31  ;;  %v1632_v11 = vpop.f32.mrf.mxu2  ;;  %v1721_v17 = vpop.f32.mrf.mxu3 }
 0x310   : > { %v2052_v19 = vmax.f32 %v1900_v27, 0.0  ;;  %v1633_v20 = vadd.f32 %v1632_v11, %v4156_v33  ;;  %v1722_v22 = vadd.f32 %v1721_v17, %v4161_v43  ;;  %1938 = vmatmul.bf16.gmra.mxu1 %v4009_v14 }
 0x312   : > { %v2475_v28 = vmax.f32 %v2474_v9, %v2052_v19  ;;  %v2049_v63 = vmax.f32 %v1633_v20, 0.0  ;;  %v2050_v29 = vmax.f32 %v1722_v22, 0.0  ;;  %v1812_v58 = vpop.f32.mrf.mxu0 }
 0x313   : > { %v1813_v57 = vadd.f32 %v1812_v58, %v4149_v18 }
 0x314   : > { %v2364_v46 = vmax.f32 %v2363_v21, %v2049_v63  ;;  %v2401_v39 = vmax.f32 %v2400_v30, %v2050_v29 }
 0x315   : > { %v2059_v34 = vmax.f32 %v1813_v57, 0.0  ;;  %v1901_v53 = vpop.f32.mrf.mxu1 }
 0x316   : > { %v1902_v42 = vadd.f32 %v1901_v53, %v4152_v35 }
 0x317   : > { %v2439_v41 = vmax.f32 %v2438_v32, %v2059_v34  ;;  %v1634_v44 = vpop.f32.mrf.mxu2  ;;  %v1723_v23 = vpop.f32.mrf.mxu3 }
 0x318   : > { %v2060_v4 = vmax.f32 %v1902_v42, 0.0  ;;  %v1635_v6 = vadd.f32 %v1634_v44, %v4156_v33  ;;  %v1724_v14 = vadd.f32 %v1723_v23, %v4161_v43 }
 0x31a   : > { %v2476_v0 = vmax.f32 %v2475_v28, %v2060_v4  ;;  %v2057_v40 = vmax.f32 %v1635_v6, 0.0  ;;  %v2058_v12 = vmax.f32 %v1724_v14, 0.0  ;;  %v1815_v1 = vpop.f32.mrf.mxu0 }
 0x31b   : > { %v1816_v51 = vadd.f32 %v1815_v1, %v4149_v18 }
 0x31c   : > { %v2365_v10 = vmax.f32 %v2364_v46, %v2057_v40  ;;  %v2402_v52 = vmax.f32 %v2401_v39, %v2058_v12  ;;  %1676 = vmatmul.bf16.gmra.mxu2 %v4034_v61  ;;  %1765 = vmatmul.bf16.gmra.mxu3 %v4034_v61 }
 0x31d   : > { %v2067_v24 = vmax.f32 %v1816_v51, 0.0  ;;  %1854 = vmatmul.bf16.gmra.mxu0 %v4034_v61  ;;  %v1904_v55 = vpop.f32.mrf.mxu1 }
 0x31e   : > { %v1905_v26 = vadd.f32 %v1904_v55, %v4152_v35 }
 0x31f   : > { %v2440_v56 = vmax.f32 %v2439_v41, %v2067_v24  ;;  %v1637_v45 = vpop.f32.mrf.mxu2  ;;  %v1726_v60 = vpop.f32.mrf.mxu3 }
 0x320   : > { %v2068_v49 = vmax.f32 %v1905_v26, 0.0  ;;  %v1638_v59 = vadd.f32 %v1637_v45, %v4156_v33  ;;  %v1727_v62 = vadd.f32 %v1726_v60, %v4161_v43 }
 0x322   : > { %v2477_v37 = vmax.f32 %v2476_v0, %v2068_v49  ;;  %v2065_v47 = vmax.f32 %v1638_v59, 0.0  ;;  %v2066_v3 = vmax.f32 %v1727_v62, 0.0  ;;  %v1817_v2 = vpop.f32.mrf.mxu0 }
 0x323   : > { %v1818_v7 = vadd.f32 %v1817_v2, %v4149_v18 }
 0x324   : > { %v2366_v15 = vmax.f32 %v2365_v10, %v2065_v47  ;;  %v2403_v5 = vmax.f32 %v2402_v52, %v2066_v3 }
 0x325   : > { %v2075_v9 = vmax.f32 %v1818_v7, 0.0  ;;  %v1906_v13 = vpop.f32.mrf.mxu1 }
 0x326   : > { %v1907_v54 = vadd.f32 %v1906_v13, %v4152_v35 }
 0x327   : > { %v2441_v8 = vmax.f32 %v2440_v56, %v2075_v9  ;;  %v1639_v16 = vpop.f32.mrf.mxu2  ;;  %v1728_v21 = vpop.f32.mrf.mxu3 }
 0x328   : > { %v2076_v30 = vmax.f32 %v1907_v54, 0.0  ;;  %v1640_v31 = vadd.f32 %v1639_v16, %v4156_v33  ;;  %v1729_v25 = vadd.f32 %v1728_v21, %v4161_v43 }
 0x32a   : > { %v2478_v27 = vmax.f32 %v2477_v37, %v2076_v30  ;;  %v2073_v32 = vmax.f32 %v1640_v31, 0.0  ;;  %v2074_v11 = vmax.f32 %v1729_v25, 0.0  ;;  %v1820_v17 = vpop.f32.mrf.mxu0 }
 0x32b   : > { %v1821_v19 = vadd.f32 %v1820_v17, %v4149_v18 }
 0x32c   : > { %v2367_v20 = vmax.f32 %v2366_v15, %v2073_v32  ;;  %v2404_v22 = vmax.f32 %v2403_v5, %v2074_v11  ;;  %1943 = vmatmul.bf16.vlgmr.msrb.gmra.mxu3 %v4034_v61 }
 0x32d   : > { %v2083_v28 = vmax.f32 %v1821_v19, 0.0  ;;  %v1909_v63 = vpop.f32.mrf.mxu1 }
 0x32e   : > { %v1910_v29 = vadd.f32 %v1909_v63, %v4152_v35 }
 0x32f   : > { %v2442_v58 = vmax.f32 %v2441_v8, %v2083_v28  ;;  %v1642_v57 = vpop.f32.mrf.mxu2  ;;  %v1731_v46 = vpop.f32.mrf.mxu3 }
 0x330   : > { %v2084_v39 = vmax.f32 %v1910_v29, 0.0  ;;  %v1643_v34 = vadd.f32 %v1642_v57, %v4156_v33  ;;  %v1732_v53 = vadd.f32 %v1731_v46, %v4161_v43 }
 0x332   : > { %v2479_v42 = vmax.f32 %v2478_v27, %v2084_v39  ;;  %v2081_v41 = vmax.f32 %v1643_v34, 0.0  ;;  %v2082_v44 = vmax.f32 %v1732_v53, 0.0  ;;  %v1822_v23 = vpop.f32.mrf.mxu0 }
 0x333   : > { %v1823_v4 = vadd.f32 %v1822_v23, %v4149_v18 }
 0x334   : > { %v2368_v6 = vmax.f32 %v2367_v20, %v2081_v41  ;;  %v2405_v61 = vmax.f32 %v2404_v22, %v2082_v44 }
 0x335   : > { %v2091_v14 = vmax.f32 %v1823_v4, 0.0  ;;  %v1911_v0 = vpop.f32.mrf.mxu1 }
 0x336   : > { %v1912_v40 = vadd.f32 %v1911_v0, %v4152_v35 }
 0x337   : > { %v2443_v12 = vmax.f32 %v2442_v58, %v2091_v14  ;;  %v1644_v1 = vpop.f32.mrf.mxu2  ;;  %v1733_v51 = vpop.f32.mrf.mxu3 }
 0x338   : > { %v2092_v10 = vmax.f32 %v1912_v40, 0.0  ;;  %v1645_v52 = vadd.f32 %v1644_v1, %v4156_v33  ;;  %v1734_v24 = vadd.f32 %v1733_v51, %v4161_v43 }
 0x33a   : > { %v2480_v55 = vmax.f32 %v2479_v42, %v2092_v10  ;;  %v2089_v26 = vmax.f32 %v1645_v52, 0.0  ;;  %v2090_v56 = vmax.f32 %v1734_v24, 0.0  ;;  %v1825_v45 = vpop.f32.mrf.mxu0 }
 0x33b   : > { %v1826_v60 = vadd.f32 %v1825_v45, %v4149_v18 }
 0x33c   : > { %v2369_v49 = vmax.f32 %v2368_v6, %v2089_v26  ;;  %v2406_v59 = vmax.f32 %v2405_v61, %v2090_v56 }
 0x33d   : > { %v2099_v62 = vmax.f32 %v1826_v60, 0.0  ;;  %v1914_v37 = vpop.f32.mrf.mxu1 }
 0x33e   : > { %v1915_v47 = vadd.f32 %v1914_v37, %v4152_v35 }
 0x33f   : > { %v2444_v3 = vmax.f32 %v2443_v12, %v2099_v62  ;;  %v1647_v2 = vpop.f32.mrf.mxu2  ;;  %v1736_v7 = vpop.f32.mrf.mxu3 }
 0x340   : > { %v2100_v15 = vmax.f32 %v1915_v47, 0.0  ;;  %v1648_v5 = vadd.f32 %v1647_v2, %v4156_v33  ;;  %v1737_v9 = vadd.f32 %v1736_v7, %v4161_v43 }
 0x342   : > { %v4271_v13 = vmax.f32 %v2480_v55, %v2100_v15  ;;  %v2097_v54 = vmax.f32 %v1648_v5, 0.0  ;;  %v2098_v8 = vmax.f32 %v1737_v9, 0.0  ;;  %v1827_v16 = vpop.f32.mrf.mxu0 }
 0x343   : > { %v1828_v21 = vadd.f32 %v1827_v16, %v4149_v18 }
 0x344   : > { %v2370_v30 = vmax.f32 %v2369_v49, %v2097_v54  ;;  %v2407_v31 = vmax.f32 %v2406_v59, %v2098_v8 }
 0x345   : > { %v2107_v25 = vmax.f32 %v1828_v21, 0.0  ;;  %v4274_v17 = vpop.f32.mrf.mxu1 }
 0x347   : > { %v2445_v27 = vmax.f32 %v2444_v3, %v2107_v25  ;;  %v1649_v32 = vpop.f32.mrf.mxu2  ;;  %v1738_v11 = vpop.f32.mrf.mxu3 }
 0x348   : > { %v1650_v19 = vadd.f32 %v1649_v32, %v4156_v33  ;;  %v1739_v20 = vadd.f32 %v1738_v11, %v4161_v43 }
 0x34a   : > { %v2105_v22 = vmax.f32 %v1650_v19, 0.0  ;;  %v2106_v28 = vmax.f32 %v1739_v20, 0.0  ;;  %v1830_v63 = vpop.f32.mrf.mxu0 }
 0x34b   : > { %v1831_v29 = vadd.f32 %v1830_v63, %v4149_v18 }
 0x34c   : > { %v2371_v58 = vmax.f32 %v2370_v30, %v2105_v22  ;;  %v2408_v57 = vmax.f32 %v2407_v31, %v2106_v28 }
 0x34d   : > { %v2115_v46 = vmax.f32 %v1831_v29, 0.0  ;;  %v1919_v44 = vpop.f32.mrf.mxu1 }
 0x34f   : > { %v2446_v39 = vmax.f32 %v2445_v27, %v2115_v46  ;;  %v1652_v34 = vpop.f32.mrf.mxu2  ;;  %v1741_v53 = vpop.f32.mrf.mxu3  ;;  %v1917_v46 = vadd.f32 %v4274_v17, %v4152_v35 }
 0x350   : > { %v1653_v42 = vadd.f32 %v1652_v34, %v4156_v33  ;;  %v1742_v41 = vadd.f32 %v1741_v53, %v4161_v43 }
 0x352   : > { %v2113_v23 = vmax.f32 %v1653_v42, 0.0  ;;  %v2114_v4 = vmax.f32 %v1742_v41, 0.0  ;;  %v1832_v6 = vpop.f32.mrf.mxu0 }
 0x353   : > { %v1833_v19 = vadd.f32 %v1832_v6, %v4149_v18  ;;  %v1920_v6 = vadd.f32 %v1919_v44, %v4152_v35 }
 0x354   : > { %v2372_v61 = vmax.f32 %v2371_v58, %v2113_v23  ;;  %v2409_v14 = vmax.f32 %v2408_v57, %v2114_v4 }
 0x355   : > { %v4282_v10 = vpop.f32.mrf.mxu1  ;;  %v2123_v63 = vmax.f32 %v1833_v19, 0.0 }
 0x357   : > { %v1654_v0 = vpop.f32.mrf.mxu2  ;;  %v1743_v40 = vpop.f32.mrf.mxu3 }
 0x358   : > { %v1744_v12 = vadd.f32 %v1743_v40, %v4161_v43  ;;  %v1655_v22 = vadd.f32 %v1654_v0, %v4156_v33 }
 0x35a   : > { %v2122_v1 = vmax.f32 %v1744_v12, 0.0  ;;  %v1835_v51 = vpop.f32.mrf.mxu0  ;;  %v2121_v34 = vmax.f32 %v1655_v22, 0.0 }
 0x35b   : > { %v1836_v28 = vadd.f32 %v1835_v51, %v4149_v18 }
 0x35c   : > { %v2410_v52 = vmax.f32 %v2409_v14, %v2122_v1  ;;  %v2447_v14 = vmax.f32 %v2446_v39, %v2123_v63  ;;  %v2373_v17 = vmax.f32 %v2372_v61, %v2121_v34 }
 0x35d   : > { %v4285_v49 = vpop.f32.mrf.mxu1  ;;  %v2131_v53 = vmax.f32 %v1836_v28, 0.0 }
 0x35f   : > { %v1657_v24 = vpop.f32.mrf.mxu2  ;;  %v1746_v55 = vpop.f32.mrf.mxu3 }
 0x360   : > { %v1747_v26 = vadd.f32 %v1746_v55, %v4161_v43  ;;  %v1658_v29 = vadd.f32 %v1657_v24, %v4156_v33  ;;  %v2448_v24 = vmax.f32 %v2447_v14, %v2131_v53 }
 0x362   : > { %v2130_v56 = vmax.f32 %v1747_v26, 0.0  ;;  %v1837_v45 = vpop.f32.mrf.mxu0  ;;  %v2129_v0 = vmax.f32 %v1658_v29, 0.0 }
 0x363   : > { %v1838_v58 = vadd.f32 %v1837_v45, %v4149_v18 }
 0x364   : > { %v2411_v60 = vmax.f32 %v2410_v52, %v2130_v56  ;;  %v2108_v52 = vmax.f32 %v1917_v46, 0.0 }
 0x365   : > { %v4290_v5 = vpop.f32.mrf.mxu1  ;;  %v2139_v40 = vmax.f32 %v1838_v58, 0.0 }
 0x367   : > { %v1659_v59 = vpop.f32.mrf.mxu2  ;;  %v1748_v62 = vpop.f32.mrf.mxu3  ;;  %v2449_v44 = vmax.f32 %v2448_v24, %v2139_v40 }
 0x368   : > { %v1749_v37 = vadd.f32 %v1748_v62, %v4161_v43  ;;  %v1660_v23 = vadd.f32 %v1659_v59, %v4156_v33  ;;  %v2374_v59 = vmax.f32 %v2373_v17, %v2129_v0 }
 0x36a   : > { %v2138_v47 = vmax.f32 %v1749_v37, 0.0  ;;  %v1840_v3 = vpop.f32.mrf.mxu0  ;;  %v2137_v55 = vmax.f32 %v1660_v23, 0.0  ;;  %v2482_v37 = vmax.f32 %v4271_v13, %v2108_v52 }
 0x36b   : > { %v1841_v4 = vadd.f32 %v1840_v3, %v4149_v18 }
 0x36c   : > { %v4288_v2 = vmax.f32 %v2411_v60, %v2138_v47  ;;  %v2116_v60 = vmax.f32 %v1920_v6, 0.0  ;;  %v2375_v19 = vmax.f32 %v2374_v59, %v2137_v55 }
 0x36d   : > { %v4292_v16 = vpop.f32.mrf.mxu1  ;;  %v2147_v26 = vmax.f32 %v1841_v4, 0.0 }
 0x36e   : > { %v2483_v58 = vmax.f32 %v2482_v37, %v2116_v60 }
 0x36f   : > { %v1662_v7 = vpop.f32.mrf.mxu2  ;;  %v1751_v15 = vpop.f32.mrf.mxu3  ;;  %v2450_v22 = vmax.f32 %v2449_v44, %v2147_v26 }
 0x370   : > { %v1663_v12 = vadd.f32 %v1662_v7, %v4156_v33  ;;  %v1752_v56 = vadd.f32 %v1751_v15, %v4161_v43 }
 0x372   : > { %v1842_v9 = vpop.f32.mrf.mxu0  ;;  %v2145_v39 = vmax.f32 %v1663_v12, 0.0  ;;  %v2146_v15 = vmax.f32 %v1752_v56, 0.0  ;;  %v1922_v12 = vadd.f32 %v4282_v10, %v4152_v35 }
 0x373   : > { %v1843_v1 = vadd.f32 %v1842_v9, %v4149_v18 }
 0x374   : > { %v2413_v4 = vmax.f32 %v4288_v2, %v2146_v15 }
 0x375   : > { %v4294_v27 = vpop.f32.mrf.mxu1  ;;  %v2155_v62 = vmax.f32 %v1843_v1, 0.0  ;;  %v1925_v1 = vadd.f32 %v4285_v49, %v4152_v35 }
 0x377   : > { %v1664_v54 = vpop.f32.mrf.mxu2  ;;  %v1753_v8 = vpop.f32.mrf.mxu3  ;;  %v2451_v46 = vmax.f32 %v2450_v22, %v2155_v62 }
 0x378   : > { %v1665_v47 = vadd.f32 %v1664_v54, %v4156_v33  ;;  %v1754_v3 = vadd.f32 %v1753_v8, %v4161_v43  ;;  %v2376_v54 = vmax.f32 %v2375_v19, %v2145_v39 }
 0x37a   : > { %v1845_v21 = vpop.f32.mrf.mxu0  ;;  %v2153_v34 = vmax.f32 %v1665_v47, 0.0  ;;  %v2124_v47 = vmax.f32 %v1922_v12, 0.0 }
 0x37b   : > { %v1846_v45 = vadd.f32 %v1845_v21, %v4149_v18 }
 0x37c   : > { %v2377_v52 = vmax.f32 %v2376_v54, %v2153_v34 }
 0x37d   : > { %v4301_v57 = vpop.f32.mrf.mxu1  ;;  %v2163_v28 = vmax.f32 %v1846_v45, 0.0 }
 0x37f   : > { %v1667_v30 = vpop.f32.mrf.mxu2  ;;  %v1756_v31 = vpop.f32.mrf.mxu3  ;;  %v2452_v6 = vmax.f32 %v2451_v46, %v2163_v28 }
 0x380   : > { %v1668_v21 = vadd.f32 %v1667_v30, %v4156_v33  ;;  %v1757_v63 = vadd.f32 %v1756_v31, %v4161_v43 }
 0x382   : > { %v1847_v25 = vpop.f32.mrf.mxu0  ;;  %v2161_v14 = vmax.f32 %v1668_v21, 0.0  ;;  %v2162_v0 = vmax.f32 %v1757_v63, 0.0  ;;  %v2132_v21 = vmax.f32 %v1925_v1, 0.0  ;;  %v1930_v63 = vadd.f32 %v4292_v16, %v4152_v35 }
 0x383   : > { %v1848_v61 = vadd.f32 %v1847_v25, %v4149_v18  ;;  %v2154_v25 = vmax.f32 %v1754_v3, 0.0  ;;  %v1927_v3 = vadd.f32 %v4290_v5, %v4152_v35 }
 0x384   : > { %v2378_v10 = vmax.f32 %v2377_v52, %v2161_v14 }
 0x385   : > { %v4318_v29 = vpop.f32.mrf.mxu1  ;;  %v2171_v53 = vmax.f32 %v1848_v61, 0.0  ;;  %v2414_v17 = vmax.f32 %v2413_v4, %v2154_v25  ;;  %v2140_v5 = vmax.f32 %v1927_v3, 0.0 }
 0x387   : > { %v1669_v32 = vpop.f32.mrf.mxu2  ;;  %v1758_v11 = vpop.f32.mrf.mxu3  ;;  %v2415_v59 = vmax.f32 %v2414_v17, %v2162_v0 }
 0x388   : > { %v1670_v30 = vadd.f32 %v1669_v32, %v4156_v33  ;;  %v1759_v31 = vadd.f32 %v1758_v11, %v4161_v43  ;;  %v2453_v32 = vmax.f32 %v2452_v6, %v2171_v53  ;;  %v2484_v53 = vmax.f32 %v2483_v58, %v2124_v47 }
 0x38a   : > { %v1850_v20 = vpop.f32.mrf.mxu0  ;;  %v2169_v26 = vmax.f32 %v1670_v30, 0.0  ;;  %v2170_v56 = vmax.f32 %v1759_v31, 0.0  ;;  %v2485_v0 = vmax.f32 %v2484_v53, %v2132_v21 }
 0x38b   : > { %v1851_v13 = vadd.f32 %v1850_v20, %v4149_v18 }
 0x38c   : > { %v2416_v22 = vmax.f32 %v2415_v59, %v2170_v56 }
 0x38d   : > { %v2179_v40 = vmax.f32 %v1851_v13, 0.0  ;;  %v1939_v61 = vpop.f32.mrf.mxu1 }
 0x38e   : > { %v1940_v56 = vadd.f32 %v1939_v61, %v4152_v35 }
 0x38f   : > { %v1672_v42 = vpop.f32.mrf.mxu2  ;;  %v1761_v41 = vpop.f32.mrf.mxu3  ;;  %v2454_v44 = vmax.f32 %v2453_v32, %v2179_v40  ;;  %v2148_v40 = vmax.f32 %v1930_v63, 0.0  ;;  %v1937_v32 = vadd.f32 %v4318_v29, %v4152_v35 }
 0x390   : > { %v1762_v2 = vadd.f32 %v1761_v41, %v4161_v43 }
 0x392   : > { %v1852_v51 = vpop.f32.mrf.mxu0 }
 0x393   : > { %v1853_v23 = vadd.f32 %v1852_v51, %v4149_v18  ;;  %v1673_v51 = vadd.f32 %v1672_v42, %v4156_v33  ;;  %v2178_v42 = vmax.f32 %v1762_v2, 0.0 }
 0x395   : > { %v2187_v24 = vmax.f32 %v1853_v23, 0.0  ;;  %v2177_v39 = vmax.f32 %v1673_v51, 0.0  ;;  %v1932_v23 = vadd.f32 %v4294_v27, %v4152_v35  ;;  %v2486_v27 = vmax.f32 %v2485_v0, %v2140_v5 }
 0x397   : > { %v1674_v7 = vpop.f32.mrf.mxu2  ;;  %v1763_v9 = vpop.f32.mrf.mxu3  ;;  %v2455_v19 = vmax.f32 %v2454_v44, %v2187_v24  ;;  %v2156_v52 = vmax.f32 %v1932_v23, 0.0  ;;  %v2172_v44 = vmax.f32 %v1937_v32, 0.0 }
 0x398   : > { %v1675_v45 = vadd.f32 %v1674_v7, %v4156_v33  ;;  %v1764_v60 = vadd.f32 %v1763_v9, %v4161_v43  ;;  %v2379_v9 = vmax.f32 %v2378_v10, %v2169_v26 }
 0x39a   : > { %v1855_v8 = vpop.f32.mrf.mxu0  ;;  %v2185_v15 = vmax.f32 %v1675_v45, 0.0  ;;  %v2186_v28 = vmax.f32 %v1764_v60, 0.0  ;;  %v2380_v46 = vmax.f32 %v2379_v9, %v2177_v39 }
 0x39b   : > { %v1856_v20 = vadd.f32 %v1855_v8, %v4149_v18  ;;  %v2417_v8 = vmax.f32 %v2416_v22, %v2178_v42 }
 0x39c   : > { %v2381_v30 = vmax.f32 %v2380_v46, %v2185_v15 }
 0x39d   : > { %v2195_v49 = vmax.f32 %v1856_v20, 0.0  ;;  %v2418_v31 = vmax.f32 %v2417_v8, %v2186_v28  ;;  %v1935_v20 = vadd.f32 %v4301_v57, %v4152_v35 }
 0x39f   : > { %v1677_v11 = vpop.f32.mrf.mxu2  ;;  %v1766_v55 = vpop.f32.mrf.mxu3  ;;  %v2456_v13 = vmax.f32 %v2455_v19, %v2195_v49 }
 0x3a0   : > { %v1678_v41 = vadd.f32 %v1677_v11, %v4156_v33  ;;  %v1767_v62 = vadd.f32 %v1766_v55, %v4161_v43  ;;  %v2487_v11 = vmax.f32 %v2486_v27, %v2148_v40  ;;  %v1941_v55 = vpop.f32.mrf.mxu1 }
 0x3a1   : > { %v1942_v49 = vadd.f32 %v1941_v55, %v4152_v35 }
 0x3a2   : > { %v1857_v37 = vpop.f32.mrf.mxu0  ;;  %v2193_v34 = vmax.f32 %v1678_v41, 0.0  ;;  %v2194_v25 = vmax.f32 %v1767_v62, 0.0  ;;  %v2488_v60 = vmax.f32 %v2487_v11, %v2156_v52  ;;  %v2180_v62 = vmax.f32 %v1940_v56, 0.0 }
 0x3a3   : > { %v1858_v7 = vadd.f32 %v1857_v37, %v4149_v18 }
 0x3a4   : > { %v2382_v58 = vmax.f32 %v2381_v30, %v2193_v34  ;;  %v2419_v1 = vmax.f32 %v2418_v31, %v2194_v25 }
 0x3a5   : > { %v2203_v54 = vmax.f32 %v1858_v7, 0.0  ;;  %v2188_v7 = vmax.f32 %v1942_v49, 0.0 }
 0x3a7   : > { %v2457_v18 = vmax.f32 %v2456_v13, %v2203_v54  ;;  %v1679_v4 = vpop.f32.mrf.mxu2  ;;  %v1768_v6 = vpop.f32.mrf.mxu3 }
 0x3a8   : > { %v1680_v14 = vadd.f32 %v1679_v4, %v4156_v33  ;;  %v1769_v16 = vadd.f32 %v1768_v6, %v4161_v43  ;;  %v2164_v43 = vmax.f32 %v1935_v20, 0.0 }
 0x3a9   : > { %v2458_v12 = vrot.slane %v2457_v18, 4 }
 0x3aa   : > { %v2201_v51 = vmax.f32 %v1680_v14, 0.0  ;;  %v2202_v2 = vmax.f32 %v1769_v16, 0.0  ;;  %v2489_v41 = vmax.f32 %v2488_v60, %v2164_v43 }
 0x3ab   : > { %v2459_v17 = vmax.f32 %v2457_v18, %v2458_v12 }
 0x3ac   : > { %v2383_v24 = vmax.f32 %v2382_v58, %v2201_v51  ;;  %v2420_v33 = vmax.f32 %v2419_v1, %v2202_v2  ;;  %v2490_v61 = vmax.f32 %v2489_v41, %v2172_v44 }
 0x3ad   : > { %v2460_v26 = vrot.slane %v2459_v17, 2 }
 0x3ae   : > { %v2384_v57 = vrot.slane %v2383_v24, 4  ;;  %v2421_v45 = vrot.slane %v2420_v33, 4  ;;  %v2491_v15 = vmax.f32 %v2490_v61, %v2180_v62 }
 0x3af   : > { %v2461_v10 = vmax.f32 %v2459_v17, %v2460_v26  ;;  %v1944_v59 = vpop.f32.mrf.mxu3 }
 0x3b0   : > { %v2385_v39 = vmax.f32 %v2383_v24, %v2384_v57  ;;  %v2422_v42 = vmax.f32 %v2420_v33, %v2421_v45  ;;  %v1945_v3 = vadd.f32 %v1944_v59, %v4152_v35  ;;  %v2492_v54 = vmax.f32 %v2491_v15, %v2188_v7 }
 0x3b1   : > { %v2462_v29 = vrot.slane %v2461_v10, 1 }
 0x3b2   : > { %v2386_v37 = vrot.slane %v2385_v39, 2  ;;  %v2423_v47 = vrot.slane %v2422_v42, 2  ;;  %v2196_v63 = vmax.f32 %v1945_v3, 0.0 }
 0x3b3   : > { %v4352_v19 = vmax.f32 %v2461_v10, %v2462_v29 }
 0x3b4   : > { %v2387_v9 = vmax.f32 %v2385_v39, %v2386_v37  ;;  %v2424_v22 = vmax.f32 %v2422_v42, %v2423_v47  ;;  %v2493_v25 = vmax.f32 %v2492_v54, %v2196_v63 }
 0x3b6   : > { %v2388_v28 = vrot.slane %v2387_v9, 1  ;;  %v2425_v21 = vrot.slane %v2424_v22, 1 }
 0x3b7   : > { %v1946_v13 = vpop.f32.mrf.mxu3 }
 0x3b8   : > { %v2389_v46 = vmax.f32 %v2387_v9, %v2388_v28  ;;  %v2426_v8 = vmax.f32 %v2424_v22, %v2425_v21  ;;  %v1947_v34 = vadd.f32 %v1946_v13, %v4152_v35 }
 0x3ba   : > { %v2204_v53 = vmax.f32 %v1947_v34, 0.0 }
 0x3bc   : > { %v2494_v5 = vmax.f32 %v2493_v25, %v2204_v53 }
 0x3be   : > { %v2495_v23 = vrot.slane %v2494_v5, 4 }
 0x3c0   : > { %v2496_v18 = vmax.f32 %v2494_v5, %v2495_v23 }
 0x3c2   : > { %v2497_v4 = vrot.slane %v2496_v18, 2 }
 0x3c4   : > { %v2498_v6 = vmax.f32 %v2496_v18, %v2497_v4  ;;  %2504 = sbr.rel (%p3018_p7) target bundleno = 977 (0x3d1), region = 52 }
 0x3c6   : > { %v2499_v30 = vrot.slane %v2498_v6, 1 }
 0x3c8   : > { %v2500_v31 = vmax.f32 %v2498_v6, %v2499_v30 }
 0x3c9   : > { %v2513_v14 = vrot.slane %v4171_v38, 7  ;;  %v2514_v16 = vrot.slane %v4158_v36, 6  ;;  %v2515_v0 = vrot.slane %v4165_v50, 5  ;;  %v2516_v40 = vrot.slane %v2389_v46, 4 }
 0x3ca   : > { %v2517_v35 = vrot.slane %v2426_v8, 3  ;;  %v2518_v20 = vrot.slane %v4352_v19, 2  ;;  %v2519_v12 = vrot.slane %v2500_v31, 1  ;;  %vm2520_vm3 = vcmask 1040384  }
 0x3cb   : > { %v2521_v58 = vsel %vm2520_vm3, %v4169_v48, %v2513_v14  ;;  %vm2522_vm4 = vcmask 1042434   ;;  %vm2524_vm5 = vcmask 1041408   ;;  %vm2526_vm6 = vcmask 1044484  }
 0x3cc   : > { %v2523_v1 = vsel %vm2522_vm4, %v2514_v16, %v2515_v0  ;;  %v2527_v51 = vsel %vm2526_vm6, %v2516_v40, %v2517_v35  ;;  %vm2528_vm7 = vcmask 1046534   ;;  %vm2530_vm8 = vcmask 1045508  }
 0x3cd   : > { %v2525_v2 = vsel %vm2524_vm5, %v2521_v58, %v2523_v1  ;;  %v2529_v27 = vsel %vm2528_vm7, %v2518_v20, %v2519_v12 }
 0x3ce   : > { %v2531_v52 = vsel %vm2530_vm8, %v2527_v51, %v2529_v27 }
 0x3cf   : > { %v2532_v17 = vsel %vm472_vm0, %v2525_v2, %v2531_v52 }
 0x3d0   : > { %2534 = vst [vmem:[%s3282_s16] sm:$0xff] %v2532_v17 }
 0x3d1 PF: > { %p3019_p8 = scmp.le.s32.totalorder %s3184_s24, 0 }
 0x3d3   : > { %2538 = sbr.rel (%p3019_p8) target bundleno = 994 (0x3e2), region = 56 }
 0x3d8   : > { %v2548_v32 = vrot.slane %v4171_v38, 7  ;;  %v2549_v24 = vrot.slane %v4158_v36, 6  ;;  %v2550_v33 = vrot.slane %v4165_v50, 5  ;;  %v2551_v11 = vrot.slane %v2389_v46, 4  ;;  %v2539_v38 = vld [vmem:[%s3282_s16] sm:$0xff] }
 0x3d9   : > { %v2552_v43 = vrot.slane %v2426_v8, 3  ;;  %v2553_v55 = vrot.slane %v4352_v19, 2  ;;  %v2554_v26 = vrot.slane %v2500_v31, 1  ;;  %vm2555_vm9 = vcmask 1040384  }
 0x3da   : > { %v2556_v56 = vsel %vm2555_vm9, %v4169_v48, %v2548_v32  ;;  %vm2557_vm10 = vcmask 1042434   ;;  %vm2559_vm11 = vcmask 1041408   ;;  %vm2561_vm12 = vcmask 1044484  }
 0x3db   : > { %v2558_v57 = vsel %vm2557_vm10, %v2549_v24, %v2550_v33  ;;  %v2562_v45 = vsel %vm2561_vm12, %v2551_v11, %v2552_v43  ;;  %vm2563_vm13 = vcmask 1046534   ;;  %vm2565_vm14 = vcmask 1045508  }
 0x3dc   : > { %v2560_v36 = vsel %vm2559_vm11, %v2556_v56, %v2558_v57  ;;  %v2564_v60 = vsel %vm2563_vm13, %v2553_v55, %v2554_v26 }
 0x3dd   : > { %v2566_v50 = vsel %vm2565_vm14, %v2562_v45, %v2564_v60 }
 0x3de   : > { %v2567_v10 = vsel %vm472_vm0, %v2560_v36, %v2566_v50 }
 0x3df   : > { %v2569_v59 = vmax.f32 %v2539_v38, %v2567_v10 }
 0x3e1   : > { %2570 = vst [vmem:[%s3282_s16] sm:$0xff] %v2569_v59 }
 0x3e2 PF: > { %s17_s28 = sadd.s32 1, %s3200_s28   ;;  %s4395_s24 = smov %s3192_s26 }
 0x3e3   : > { %p14_p9 = scmp.ge.s32.totalorder %s17_s28, 6   ;;  %s4396_s25 = smov %s3196_s27 }
 0x3e4   : > { %s4397_s26 = smov %s4400_s29  ;;  %s4398_s27 = smov %s4404_s30 }
 0x3e5   :  { %16 = sbr.rel (!%p14_p9) target bundleno = 3 (0x3), region = 86 }

// kernel: tnet_batch_forward.3
= control target key start
LH: loop header
LB: loop body
LE: loop exit
PB: predicated region body
PF: predicated region fallthrough
CT: control target
= control target key end

     0   :  { %12 = vsyncpa [#allocation3], 0  ;;  %s4416_s27 = smov [#allocation2]   ;;  %s4417_s29 = smov 256   ;;  %s4997_s0 = inlined_call_operand.vmem [shape: f32[2,1024], index: 0, kind: input, shape index: {}]   ;;  %s4998_s1 = inlined_call_operand.hbm [shape: bf16[1024,512], index: 1, kind: input, shape index: {}]   ;;  %s4999_s2 = inlined_call_operand.vmem [shape: f32[1,512], index: 2, kind: input, shape index: {}]   ;;  %s5000_s3 = inlined_call_operand.vmem [shape: bf16[512,256], index: 3, kind: input, shape index: {}]   ;;  %s5001_s4 = inlined_call_operand.vmem [shape: f32[1,256], index: 4, kind: input, shape index: {}]   ;;  %s5002_s5 = inlined_call_operand.vmem [shape: bf16[256,128], index: 5, kind: input, shape index: {}]   ;;  %s5003_s6 = inlined_call_operand.vmem [shape: f32[1,128], index: 6, kind: input, shape index: {}]   ;;  %s5004_s7 = inlined_call_operand.vmem [shape: f32[2,128], index: 7, kind: output, shape index: {}]  }
   0x1   :  { %s19_s26 = sshll.u32 %s4998_s1, 4  ;;  %s21_s28 = sshll.u32 %s4416_s27, 4  ;;  %s20_s26 = int_to_ptr.hbm [resolvable:$true] %s19_s26  ;;  %s22_s28 = int_to_ptr.vmem [resolvable:$true] %s21_s28 }
   0x2   :  { %s4418_s30 = smov 16  }
   0x3   :  { %27 = dma.hbm_to_vmem [thread:$0]  %s20_s26, 32768, %s22_s28, [#allocation3], %s4417_s29, %s4417_s29, %s4418_s30  }
   0x4   :  { %4414 = dma.done.wait [#allocation3], 32768  }
   0x5   :  { %4415 = vsyncadd [#allocation3], 4294934528  ;;  %v2819_v0 = vld [vmem:[#allocation2 + $0xe0] sm:$0xf]  ;;  %v4079_v1 = vld [vmem:[#allocation2 + $0xec] sm:$0xf0] }
   0x6   :  { %v2947_v2 = vld [vmem:[#allocation2 + $0x1e0] sm:$0xf]  ;;  %v2820_v3 = vor.u32 %v4079_v1, %v2819_v0  ;;  %v4111_v4 = vld [vmem:[#allocation2 + $0x1ec] sm:$0xf0] }
   0x7   :  { %v3075_v5 = vld [vmem:[#allocation2 + $0x2e0] sm:$0xf]  ;;  %v4143_v6 = vld [vmem:[#allocation2 + $0x2ec] sm:$0xf0]  ;;  %v2948_v7 = vor.u32 %v4111_v4, %v2947_v2 }
   0x8   :  { %v3076_v8 = vor.u32 %v4143_v6, %v3075_v5  ;;  %v3203_v9 = vld [vmem:[#allocation2 + $0x3e0] sm:$0xf]  ;;  %v4175_v10 = vld [vmem:[#allocation2 + $0x3ec] sm:$0xf0]  ;;  %1619 = vmatpush.bf16.msra.mxu0 %v2820_v3 }
   0x9   :  { %v2803_v11 = vld [vmem:[#allocation2 + $0xc0] sm:$0xf]  ;;  %v3204_v12 = vor.u32 %v4175_v10, %v3203_v9  ;;  %v4075_v13 = vld [vmem:[#allocation2 + $0xcc] sm:$0xf0]  ;;  %1632 = vmatpush.bf16.msra.mxu1 %v2948_v7 }
   0xa   :  { %v2931_v14 = vld [vmem:[#allocation2 + $0x1c0] sm:$0xf]  ;;  %v4107_v15 = vld [vmem:[#allocation2 + $0x1cc] sm:$0xf0]  ;;  %1645 = vmatpush.bf16.msra.mxu2 %v3076_v8  ;;  %v2804_v16 = vor.u32 %v4075_v13, %v2803_v11 }
   0xb   :  { %v2932_v17 = vor.u32 %v4107_v15, %v2931_v14  ;;  %v3059_v18 = vld [vmem:[#allocation2 + $0x2c0] sm:$0xf]  ;;  %v4139_v19 = vld [vmem:[#allocation2 + $0x2cc] sm:$0xf0]  ;;  %1658 = vmatpush.bf16.msra.mxu3 %v3204_v12 }
   0xc   :  { %v3187_v20 = vld [vmem:[#allocation2 + $0x3c0] sm:$0xf]  ;;  %v3060_v21 = vor.u32 %v4139_v19, %v3059_v18  ;;  %v4171_v22 = vld [vmem:[#allocation2 + $0x3cc] sm:$0xf0]  ;;  %1620 = vmatpush.bf16.msra.mxu0 %v2804_v16 }
   0xd   :  { %v2787_v23 = vld [vmem:[#allocation2 + $0xa0] sm:$0xf]  ;;  %v4071_v24 = vld [vmem:[#allocation2 + $0xac] sm:$0xf0]  ;;  %v3188_v25 = vor.u32 %v4171_v22, %v3187_v20  ;;  %1633 = vmatpush.bf16.msra.mxu1 %v2932_v17 }
   0xe   :  { %v2915_v26 = vld [vmem:[#allocation2 + $0x1a0] sm:$0xf]  ;;  %v4103_v27 = vld [vmem:[#allocation2 + $0x1ac] sm:$0xf0]  ;;  %v2788_v29 = vor.u32 %v4071_v24, %v2787_v23  ;;  %1646 = vmatpush.bf16.msra.mxu2 %v3060_v21 }
   0xf   :  { %v3043_v28 = vld [vmem:[#allocation2 + $0x2a0] sm:$0xf]  ;;  %v4135_v30 = vld [vmem:[#allocation2 + $0x2ac] sm:$0xf0]  ;;  %v2916_v33 = vor.u32 %v4103_v27, %v2915_v26  ;;  %1659 = vmatpush.bf16.msra.mxu3 %v3188_v25 }
  0x10   :  { %v3171_v31 = vld [vmem:[#allocation2 + $0x3a0] sm:$0xf]  ;;  %v4167_v32 = vld [vmem:[#allocation2 + $0x3ac] sm:$0xf0]  ;;  %v3044_v34 = vor.u32 %v4135_v30, %v3043_v28  ;;  %1621 = vmatpush.bf16.msra.mxu0 %v2788_v29 }
  0x11   :  { %v2771_v35 = vld [vmem:[#allocation2 + $0x80] sm:$0xf]  ;;  %v4067_v36 = vld [vmem:[#allocation2 + $0x8c] sm:$0xf0]  ;;  %v3172_v38 = vor.u32 %v4167_v32, %v3171_v31  ;;  %1634 = vmatpush.bf16.msra.mxu1 %v2916_v33 }
  0x12   :  { %v2899_v37 = vld [vmem:[#allocation2 + $0x180] sm:$0xf]  ;;  %v4099_v39 = vld [vmem:[#allocation2 + $0x18c] sm:$0xf0]  ;;  %v2772_v44 = vor.u32 %v4067_v36, %v2771_v35  ;;  %1647 = vmatpush.bf16.msra.mxu2 %v3044_v34 }
  0x13   :  { %v3027_v40 = vld [vmem:[#allocation2 + $0x280] sm:$0xf]  ;;  %v4131_v41 = vld [vmem:[#allocation2 + $0x28c] sm:$0xf0]  ;;  %v2900_v45 = vor.u32 %v4099_v39, %v2899_v37  ;;  %1660 = vmatpush.bf16.msra.mxu3 %v3172_v38 }
  0x14   :  { %v3155_v42 = vld [vmem:[#allocation2 + $0x380] sm:$0xf]  ;;  %v4163_v43 = vld [vmem:[#allocation2 + $0x38c] sm:$0xf0]  ;;  %v3028_v46 = vor.u32 %v4131_v41, %v3027_v40  ;;  %1622 = vmatpush.bf16.msra.mxu0 %v2772_v44 }
  0x15   :  { %v2755_v47 = vld [vmem:[#allocation2 + $0x60] sm:$0xf]  ;;  %v4063_v48 = vld [vmem:[#allocation2 + $0x6c] sm:$0xf0]  ;;  %v3156_v50 = vor.u32 %v4163_v43, %v3155_v42  ;;  %1635 = vmatpush.bf16.msra.mxu1 %v2900_v45 }
  0x16   :  { %v2883_v49 = vld [vmem:[#allocation2 + $0x160] sm:$0xf]  ;;  %v4095_v51 = vld [vmem:[#allocation2 + $0x16c] sm:$0xf0]  ;;  %v2756_v56 = vor.u32 %v4063_v48, %v2755_v47  ;;  %1648 = vmatpush.bf16.msra.mxu2 %v3028_v46 }
  0x17   :  { %v3011_v52 = vld [vmem:[#allocation2 + $0x260] sm:$0xf]  ;;  %v4127_v53 = vld [vmem:[#allocation2 + $0x26c] sm:$0xf0]  ;;  %v2884_v57 = vor.u32 %v4095_v51, %v2883_v49  ;;  %1661 = vmatpush.bf16.msra.mxu3 %v3156_v50 }
  0x18   :  { %v3139_v54 = vld [vmem:[#allocation2 + $0x360] sm:$0xf]  ;;  %v4159_v55 = vld [vmem:[#allocation2 + $0x36c] sm:$0xf0]  ;;  %v3012_v58 = vor.u32 %v4127_v53, %v3011_v52  ;;  %1623 = vmatpush.bf16.msra.mxu0 %v2756_v56 }
  0x19   :  { %v2739_v59 = vld [vmem:[#allocation2 + $0x40] sm:$0xf]  ;;  %v4059_v60 = vld [vmem:[#allocation2 + $0x4c] sm:$0xf0]  ;;  %v3140_v62 = vor.u32 %v4159_v55, %v3139_v54  ;;  %1636 = vmatpush.bf16.msra.mxu1 %v2884_v57 }
  0x1a   :  { %v2867_v61 = vld [vmem:[#allocation2 + $0x140] sm:$0xf]  ;;  %v4091_v63 = vld [vmem:[#allocation2 + $0x14c] sm:$0xf0]  ;;  %v2740_v4 = vor.u32 %v4059_v60, %v2739_v59  ;;  %1649 = vmatpush.bf16.msra.mxu2 %v3012_v58 }
  0x1b   :  { %v2995_v0 = vld [vmem:[#allocation2 + $0x240] sm:$0xf]  ;;  %v4123_v1 = vld [vmem:[#allocation2 + $0x24c] sm:$0xf0]  ;;  %v2868_v5 = vor.u32 %v4091_v63, %v2867_v61  ;;  %1662 = vmatpush.bf16.msra.mxu3 %v3140_v62 }
  0x1c   :  { %v3123_v2 = vld [vmem:[#allocation2 + $0x340] sm:$0xf]  ;;  %v4155_v3 = vld [vmem:[#allocation2 + $0x34c] sm:$0xf0]  ;;  %v2996_v6 = vor.u32 %v4123_v1, %v2995_v0  ;;  %1624 = vmatpush.bf16.msra.mxu0 %v2740_v4 }
  0x1d   :  { %v2723_v7 = vld [vmem:[#allocation2 + $0x20] sm:$0xf]  ;;  %v4055_v8 = vld [vmem:[#allocation2 + $0x2c] sm:$0xf0]  ;;  %v3124_v10 = vor.u32 %v4155_v3, %v3123_v2  ;;  %1637 = vmatpush.bf16.msra.mxu1 %v2868_v5  ;;  %v42_v2 = vld [vmem:[%s4997_s0] sm:$0xff] }
  0x1e   :  { %v2851_v9 = vld [vmem:[#allocation2 + $0x120] sm:$0xf]  ;;  %v4087_v11 = vld [vmem:[#allocation2 + $0x12c] sm:$0xf0]  ;;  %v2724_v16 = vor.u32 %v4055_v8, %v2723_v7  ;;  %1650 = vmatpush.bf16.msra.mxu2 %v2996_v6  ;;  %46 = vst [vmem:[#allocation1] ss:$4 sm:$0xff] %v42_v2 }
  0x1f   :  { %v2979_v12 = vld [vmem:[#allocation2 + $0x220] sm:$0xf]  ;;  %v4119_v13 = vld [vmem:[#allocation2 + $0x22c] sm:$0xf0]  ;;  %v2852_v19 = vor.u32 %v4087_v11, %v2851_v9  ;;  %1663 = vmatpush.bf16.msra.mxu3 %v3124_v10 }
  0x20   :  { %v3107_v14 = vld [vmem:[#allocation2 + $0x320] sm:$0xf]  ;;  %v4151_v15 = vld [vmem:[#allocation2 + $0x32c] sm:$0xf0]  ;;  %v2980_v20 = vor.u32 %v4119_v13, %v2979_v12  ;;  %1625 = vmatpush.bf16.msra.mxu0 %v2724_v16 }
  0x21   :  { %v2707_v17 = vld [vmem:[#allocation2] sm:$0xf]  ;;  %v4051_v18 = vld [vmem:[#allocation2 + $0xc] sm:$0xf0]  ;;  %v3108_v24 = vor.u32 %v4151_v15, %v3107_v14  ;;  %1638 = vmatpush.bf16.msra.mxu1 %v2852_v19 }
  0x22   :  { %v2835_v21 = vld [vmem:[#allocation2 + $0x100] sm:$0xf]  ;;  %v4083_v22 = vld [vmem:[#allocation2 + $0x10c] sm:$0xf0]  ;;  %v2708_v31 = vor.u32 %v4051_v18, %v2707_v17  ;;  %1651 = vmatpush.bf16.msra.mxu2 %v2980_v20 }
  0x23   :  { %v2963_v23 = vld [vmem:[#allocation2 + $0x200] sm:$0xf]  ;;  %v4115_v25 = vld [vmem:[#allocation2 + $0x20c] sm:$0xf0]  ;;  %v2836_v35 = vor.u32 %v4083_v22, %v2835_v21  ;;  %1664 = vmatpush.bf16.msra.mxu3 %v3108_v24 }
  0x24   :  { %v3091_v26 = vld [vmem:[#allocation2 + $0x300] sm:$0xf]  ;;  %v4147_v27 = vld [vmem:[#allocation2 + $0x30c] sm:$0xf0]  ;;  %v2964_v36 = vor.u32 %v4115_v25, %v2963_v23  ;;  %1626 = vmatpush.bf16.msra.mxu0 %v2708_v31 }
  0x25   :  { %v3331_v28 = vld [vmem:[#allocation2 + $0x4e0] sm:$0xf]  ;;  %v4207_v29 = vld [vmem:[#allocation2 + $0x4ec] sm:$0xf0]  ;;  %v3092_v39 = vor.u32 %v4147_v27, %v3091_v26  ;;  %1639 = vmatpush.bf16.msra.mxu1 %v2836_v35 }
  0x26   :  { %v3459_v30 = vld [vmem:[#allocation2 + $0x5e0] sm:$0xf]  ;;  %v4239_v32 = vld [vmem:[#allocation2 + $0x5ec] sm:$0xf0]  ;;  %v3332_v40 = vor.u32 %v4207_v29, %v3331_v28  ;;  %1652 = vmatpush.bf16.msra.mxu2 %v2964_v36 }
  0x27   :  { %v3587_v33 = vld [vmem:[#allocation2 + $0x6e0] sm:$0xf]  ;;  %v4271_v34 = vld [vmem:[#allocation2 + $0x6ec] sm:$0xf0]  ;;  %v3460_v41 = vor.u32 %v4239_v32, %v3459_v30  ;;  %1665 = vmatpush.bf16.msra.mxu3 %v3092_v39 }
  0x28   :  { %v3715_v37 = vld [vmem:[#allocation2 + $0x7e0] sm:$0xf]  ;;  %v4303_v38 = vld [vmem:[#allocation2 + $0x7ec] sm:$0xf0]  ;;  %v3588_v42 = vor.u32 %v4271_v34, %v3587_v33  ;;  %1671 = vmatpush.bf16.msrb.mxu0 %v3332_v40 }
  0x29   :  { %v3315_v43 = vld [vmem:[#allocation2 + $0x4c0] sm:$0xf]  ;;  %v4203_v44 = vld [vmem:[#allocation2 + $0x4cc] sm:$0xf0]  ;;  %v3716_v46 = vor.u32 %v4303_v38, %v3715_v37  ;;  %1684 = vmatpush.bf16.msrb.mxu1 %v3460_v41 }
  0x2a   :  { %v3443_v45 = vld [vmem:[#allocation2 + $0x5c0] sm:$0xf]  ;;  %v4235_v47 = vld [vmem:[#allocation2 + $0x5cc] sm:$0xf0]  ;;  %v3316_v52 = vor.u32 %v4203_v44, %v3315_v43  ;;  %1697 = vmatpush.bf16.msrb.mxu2 %v3588_v42 }
  0x2b   :  { %v3571_v48 = vld [vmem:[#allocation2 + $0x6c0] sm:$0xf]  ;;  %v4267_v49 = vld [vmem:[#allocation2 + $0x6cc] sm:$0xf0]  ;;  %v3444_v53 = vor.u32 %v4235_v47, %v3443_v45  ;;  %1710 = vmatpush.bf16.msrb.mxu3 %v3716_v46 }
  0x2c   :  { %v3699_v50 = vld [vmem:[#allocation2 + $0x7c0] sm:$0xf]  ;;  %v4299_v51 = vld [vmem:[#allocation2 + $0x7cc] sm:$0xf0]  ;;  %v3572_v54 = vor.u32 %v4267_v49, %v3571_v48  ;;  %1672 = vmatpush.bf16.msrb.mxu0 %v3316_v52 }
  0x2d   :  { %v3299_v55 = vld [vmem:[#allocation2 + $0x4a0] sm:$0xf]  ;;  %v4199_v56 = vld [vmem:[#allocation2 + $0x4ac] sm:$0xf0]  ;;  %v3700_v58 = vor.u32 %v4299_v51, %v3699_v50  ;;  %1685 = vmatpush.bf16.msrb.mxu1 %v3444_v53 }
  0x2e   :  { %v3427_v57 = vld [vmem:[#allocation2 + $0x5a0] sm:$0xf]  ;;  %v4231_v59 = vld [vmem:[#allocation2 + $0x5ac] sm:$0xf0]  ;;  %v3300_v0 = vor.u32 %v4199_v56, %v3299_v55  ;;  %1698 = vmatpush.bf16.msrb.mxu2 %v3572_v54 }
  0x2f   :  { %v3555_v60 = vld [vmem:[#allocation2 + $0x6a0] sm:$0xf]  ;;  %v4263_v61 = vld [vmem:[#allocation2 + $0x6ac] sm:$0xf0]  ;;  %v3428_v3 = vor.u32 %v4231_v59, %v3427_v57  ;;  %1711 = vmatpush.bf16.msrb.mxu3 %v3700_v58 }
  0x30   :  { %v3683_v62 = vld [vmem:[#allocation2 + $0x7a0] sm:$0xf]  ;;  %v4295_v63 = vld [vmem:[#allocation2 + $0x7ac] sm:$0xf0]  ;;  %v3556_v4 = vor.u32 %v4263_v61, %v3555_v60  ;;  %1673 = vmatpush.bf16.msrb.mxu0 %v3300_v0 }
  0x31   :  { %v3283_v1 = vld [vmem:[#allocation2 + $0x480] sm:$0xf]  ;;  %v4195_v5 = vld [vmem:[#allocation2 + $0x48c] sm:$0xf0]  ;;  %v3684_v7 = vor.u32 %v4295_v63, %v3683_v62  ;;  %1686 = vmatpush.bf16.msrb.mxu1 %v3428_v3 }
  0x32   :  { %v3411_v6 = vld [vmem:[#allocation2 + $0x580] sm:$0xf]  ;;  %v4227_v8 = vld [vmem:[#allocation2 + $0x58c] sm:$0xf0]  ;;  %v3284_v13 = vor.u32 %v4195_v5, %v3283_v1  ;;  %1699 = vmatpush.bf16.msrb.mxu2 %v3556_v4 }
  0x33   :  { %v3539_v9 = vld [vmem:[#allocation2 + $0x680] sm:$0xf]  ;;  %v4259_v10 = vld [vmem:[#allocation2 + $0x68c] sm:$0xf0]  ;;  %v3412_v15 = vor.u32 %v4227_v8, %v3411_v6  ;;  %1712 = vmatpush.bf16.msrb.mxu3 %v3684_v7  ;;  %v4077_v6 = vld [vmem:[#allocation2 + $0xe4] sm:$0xf] }
  0x34   :  { %v3667_v11 = vld [vmem:[#allocation2 + $0x780] sm:$0xf]  ;;  %v4291_v12 = vld [vmem:[#allocation2 + $0x78c] sm:$0xf0]  ;;  %v3540_v16 = vor.u32 %v4259_v10, %v3539_v9  ;;  %1674 = vmatpush.bf16.msrb.mxu0 %v3284_v13  ;;  %v2821_v7 = vld [vmem:[#allocation2 + $0xf0] sm:$0xf0] }
  0x35   :  { %v3267_v14 = vld [vmem:[#allocation2 + $0x460] sm:$0xf]  ;;  %v4191_v17 = vld [vmem:[#allocation2 + $0x46c] sm:$0xf0]  ;;  %v3668_v20 = vor.u32 %v4291_v12, %v3667_v11  ;;  %1687 = vmatpush.bf16.msrb.mxu1 %v3412_v15  ;;  %v4109_v8 = vld [vmem:[#allocation2 + $0x1e4] sm:$0xf] }
  0x36   :  { %v3395_v18 = vld [vmem:[#allocation2 + $0x560] sm:$0xf]  ;;  %v4223_v19 = vld [vmem:[#allocation2 + $0x56c] sm:$0xf0]  ;;  %v3268_v27 = vor.u32 %v4191_v17, %v3267_v14  ;;  %1700 = vmatpush.bf16.msrb.mxu2 %v3540_v16  ;;  %v2949_v9 = vld [vmem:[#allocation2 + $0x1f0] sm:$0xf0] }
  0x37   :  { %v3523_v21 = vld [vmem:[#allocation2 + $0x660] sm:$0xf]  ;;  %v4255_v22 = vld [vmem:[#allocation2 + $0x66c] sm:$0xf0]  ;;  %v3396_v28 = vor.u32 %v4223_v19, %v3395_v18  ;;  %1713 = vmatpush.bf16.msrb.mxu3 %v3668_v20  ;;  %v4141_v10 = vld [vmem:[#allocation2 + $0x2e4] sm:$0xf] }
  0x38   :  { %v3651_v23 = vld [vmem:[#allocation2 + $0x760] sm:$0xf]  ;;  %v4287_v24 = vld [vmem:[#allocation2 + $0x76c] sm:$0xf0]  ;;  %v3524_v32 = vor.u32 %v4255_v22, %v3523_v21  ;;  %1675 = vmatpush.bf16.msrb.mxu0 %v3268_v27  ;;  %v3077_v12 = vld [vmem:[#allocation2 + $0x2f0] sm:$0xf0]  ;;  %v2824_v21 = vor.u32 %v4077_v6, %v2821_v7 }
  0x39   :  { %v3251_v25 = vld [vmem:[#allocation2 + $0x440] sm:$0xf]  ;;  %v4187_v26 = vld [vmem:[#allocation2 + $0x44c] sm:$0xf0]  ;;  %v3652_v37 = vor.u32 %v4287_v24, %v3651_v23  ;;  %1688 = vmatpush.bf16.msrb.mxu1 %v3396_v28  ;;  %v4173_v13 = vld [vmem:[#allocation2 + $0x3e4] sm:$0xf]  ;;  %v2952_v24 = vor.u32 %v4109_v8, %v2949_v9 }
  0x3a   :  { %v3379_v29 = vld [vmem:[#allocation2 + $0x540] sm:$0xf]  ;;  %v51_v30 = vld.sshfl [vmem:[#allocation1 + $0x10] sm:$0xff pattern:$0x73625140]  ;;  %v3252_v45 = vor.u32 %v4187_v26, %v3251_v25  ;;  %1701 = vmatpush.bf16.msrb.mxu2 %v3524_v32  ;;  %v3080_v25 = vor.u32 %v4141_v10, %v3077_v12 }
  0x3b   :  { %v49_v31 = vld.sshfl [vmem:[#allocation1] sm:$0xff pattern:$0x73625140]  ;;  %v4465_v33 = vpack.c.bf16 %v51_v30, %v51_v30  ;;  %v52_v35 = vld.sshfl [vmem:[#allocation1 + $0x18] sm:$0xff pattern:$0x73625140]  ;;  %1714 = vmatpush.bf16.msrb.mxu3 %v3652_v37 }
  0x3c   :  { %v4467_v34 = vpack.c.bf16 %v49_v31, %v49_v31  ;;  %v50_v36 = vld.sshfl [vmem:[#allocation1 + $0x8] sm:$0xff pattern:$0x73625140]  ;;  %v4219_v38 = vld [vmem:[#allocation2 + $0x54c] sm:$0xf0]  ;;  %v4469_v41 = vpack.c.bf16 %v52_v35, %v52_v35  ;;  %1676 = vmatpush.bf16.msrb.mxu0 %v3252_v45 }
  0x3d   :  { %v3507_v39 = vld [vmem:[#allocation2 + $0x640] sm:$0xf]  ;;  %v4251_v40 = vld [vmem:[#allocation2 + $0x64c] sm:$0xf0]  ;;  %v4471_v42 = vpack.c.bf16 %v50_v36, %v50_v36  ;;  %1653 = vmatmul.bf16.vlgmr.msra.gmra.mxu2 %v4465_v33  ;;  %v3380_v48 = vor.u32 %v4219_v38, %v3379_v29  ;;  %v3205_v14 = vld [vmem:[#allocation2 + $0x3f0] sm:$0xf0] }
  0x3e   :  { %v3635_v43 = vld [vmem:[#allocation2 + $0x740] sm:$0xf]  ;;  %v4283_v44 = vld [vmem:[#allocation2 + $0x74c] sm:$0xf0]  ;;  %1627 = vmatmul.bf16.vlgmr.msra.gmra.mxu0 %v4467_v34  ;;  %1666 = vmatmul.bf16.vlgmr.msra.gmra.mxu3 %v4469_v41  ;;  %v3508_v49 = vor.u32 %v4251_v40, %v3507_v39  ;;  %v4073_v17 = vld [vmem:[#allocation2 + $0xc4] sm:$0xf]  ;;  %v3208_v28 = vor.u32 %v4173_v13, %v3205_v14 }
  0x3f   :  { %v3235_v46 = vld [vmem:[#allocation2 + $0x420] sm:$0xf]  ;;  %v4183_v47 = vld [vmem:[#allocation2 + $0x42c] sm:$0xf0]  ;;  %v3636_v53 = vor.u32 %v4283_v44, %v3635_v43  ;;  %1640 = vmatmul.bf16.vlgmr.msra.gmra.mxu1 %v4471_v42  ;;  %v2805_v18 = vld [vmem:[#allocation2 + $0xd0] sm:$0xf0] }
  0x40   :  { %v3363_v50 = vld [vmem:[#allocation2 + $0x520] sm:$0xf]  ;;  %v4215_v51 = vld [vmem:[#allocation2 + $0x52c] sm:$0xf0]  ;;  %v3236_v59 = vor.u32 %v4183_v47, %v3235_v46  ;;  %1689 = vmatpush.bf16.msrb.mxu1 %v3380_v48  ;;  %1702 = vmatpush.bf16.msrb.mxu2 %v3508_v49  ;;  %v4105_v26 = vld [vmem:[#allocation2 + $0x1c4] sm:$0xf]  ;;  %v2808_v39 = vor.u32 %v4073_v17, %v2805_v18 }
  0x41   :  { %v43_v52 = vld [vmem:[%s4997_s0 + $0x8] sm:$0xff]  ;;  %v4247_v55 = vld [vmem:[#allocation2 + $0x62c] sm:$0xf0]  ;;  %v3364_v63 = vor.u32 %v4215_v51, %v3363_v50  ;;  %1715 = vmatpush.bf16.msrb.mxu3 %v3636_v53  ;;  %v2933_v29 = vld [vmem:[#allocation2 + $0x1d0] sm:$0xf0] }
  0x42   :  { %v3491_v54 = vld [vmem:[#allocation2 + $0x620] sm:$0xf]  ;;  %48 = vst [vmem:[#allocation1 + $0x20] ss:$4 sm:$0xff] %v43_v52  ;;  %v4279_v57 = vld [vmem:[#allocation2 + $0x72c] sm:$0xf0]  ;;  %1677 = vmatpush.bf16.msrb.mxu0 %v3236_v59  ;;  %v2936_v43 = vor.u32 %v4105_v26, %v2933_v29 }
  0x43   :  { %v3619_v56 = vld [vmem:[#allocation2 + $0x720] sm:$0xf]  ;;  %v4179_v60 = vld [vmem:[#allocation2 + $0x40c] sm:$0xf0]  ;;  %v3492_v0 = vor.u32 %v4247_v55, %v3491_v54  ;;  %v4137_v30 = vld [vmem:[#allocation2 + $0x2c4] sm:$0xf] }
  0x44   :  { %v3219_v58 = vld [vmem:[#allocation2 + $0x400] sm:$0xf]  ;;  %v4211_v62 = vld [vmem:[#allocation2 + $0x50c] sm:$0xf0]  ;;  %v3620_v4 = vor.u32 %v4279_v57, %v3619_v56  ;;  %1690 = vmatpush.bf16.msrb.mxu1 %v3364_v63  ;;  %v3061_v31 = vld [vmem:[#allocation2 + $0x2d0] sm:$0xf0] }
  0x45   :  { %v3347_v61 = vld [vmem:[#allocation2 + $0x500] sm:$0xf]  ;;  %v4243_v2 = vld [vmem:[#allocation2 + $0x60c] sm:$0xf0]  ;;  %v3220_v11 = vor.u32 %v4179_v60, %v3219_v58  ;;  %1703 = vmatpush.bf16.msrb.mxu2 %v3492_v0  ;;  %v4169_v35 = vld [vmem:[#allocation2 + $0x3c4] sm:$0xf]  ;;  %v3064_v44 = vor.u32 %v4137_v30, %v3061_v31 }
  0x46   :  { %v3475_v1 = vld [vmem:[#allocation2 + $0x600] sm:$0xf]  ;;  %v4275_v5 = vld [vmem:[#allocation2 + $0x70c] sm:$0xf0]  ;;  %v3348_v15 = vor.u32 %v4211_v62, %v3347_v61  ;;  %1716 = vmatpush.bf16.msrb.mxu3 %v3620_v4  ;;  %v3189_v36 = vld [vmem:[#allocation2 + $0x3d0] sm:$0xf0] }
  0x47   :  { %v3603_v3 = vld [vmem:[#allocation2 + $0x700] sm:$0xf]  ;;  %v3476_v16 = vor.u32 %v4243_v2, %v3475_v1  ;;  %1678 = vmatpush.bf16.msrb.mxu0 %v3220_v11  ;;  %v4069_v45 = vld [vmem:[#allocation2 + $0xa4] sm:$0xf]  ;;  %v2789_v46 = vld [vmem:[#allocation2 + $0xb0] sm:$0xf0]  ;;  %v3192_v48 = vor.u32 %v4169_v35, %v3189_v36 }
  0x48   :  { %v3604_v20 = vor.u32 %v4275_v5, %v3603_v3  ;;  %1691 = vmatpush.bf16.msrb.mxu1 %v3348_v15  ;;  %v4101_v47 = vld [vmem:[#allocation2 + $0x1a4] sm:$0xf]  ;;  %v2917_v49 = vld [vmem:[#allocation2 + $0x1b0] sm:$0xf0]  ;;  %v2792_v54 = vor.u32 %v4069_v45, %v2789_v46 }
  0x49   :  { %v55_v19 = vld.sshfl [vmem:[#allocation1 + $0x30] sm:$0xff pattern:$0x73625140]  ;;  %v53_v22 = vld.sshfl [vmem:[#allocation1 + $0x20] sm:$0xff pattern:$0x73625140]  ;;  %1704 = vmatpush.bf16.msrb.mxu2 %v3476_v16  ;;  %v2920_v55 = vor.u32 %v4101_v47, %v2917_v49 }
  0x4a   :  { %v56_v23 = vld.sshfl [vmem:[#allocation1 + $0x38] sm:$0xff pattern:$0x73625140]  ;;  %v54_v27 = vld.sshfl [vmem:[#allocation1 + $0x28] sm:$0xff pattern:$0x73625140]  ;;  %v4480_v32 = vpack.c.bf16 %v55_v19, %v55_v19  ;;  %v4482_v37 = vpack.c.bf16 %v53_v22, %v53_v22  ;;  %1717 = vmatpush.bf16.msrb.mxu3 %v3604_v20 }
  0x4b   :  { %v4484_v38 = vpack.c.bf16 %v56_v23, %v56_v23  ;;  %1723 = vmatpush.bf16.msra.mxu0 %v2824_v21  ;;  %v4486_v40 = vpack.c.bf16 %v54_v27, %v54_v27  ;;  %v4133_v50 = vld [vmem:[#allocation2 + $0x2a4] sm:$0xf]  ;;  %v3045_v51 = vld [vmem:[#allocation2 + $0x2b0] sm:$0xf0] }
  0x4c   :  { %1736 = vmatpush.bf16.msra.mxu1 %v2952_v24  ;;  %v4165_v52 = vld [vmem:[#allocation2 + $0x3a4] sm:$0xf]  ;;  %v3173_v53 = vld [vmem:[#allocation2 + $0x3b0] sm:$0xf0]  ;;  %v3048_v56 = vor.u32 %v4133_v50, %v3045_v51 }
  0x4d   :  { %1749 = vmatpush.bf16.msra.mxu2 %v3080_v25  ;;  %v4065_v57 = vld [vmem:[#allocation2 + $0x84] sm:$0xf]  ;;  %v2773_v58 = vld [vmem:[#allocation2 + $0x90] sm:$0xf0]  ;;  %v3176_v60 = vor.u32 %v4165_v52, %v3173_v53 }
  0x4e   :  { %1762 = vmatpush.bf16.msra.mxu3 %v3208_v28  ;;  %1705 = vmatmul.bf16.vlgmr.msrb.gmra.mxu2 %v4480_v32  ;;  %v4097_v59 = vld [vmem:[#allocation2 + $0x184] sm:$0xf]  ;;  %v2901_v61 = vld [vmem:[#allocation2 + $0x190] sm:$0xf0]  ;;  %v2776_v2 = vor.u32 %v4065_v57, %v2773_v58 }
  0x4f   :  { %1679 = vmatmul.bf16.vlgmr.msrb.gmra.mxu0 %v4482_v37  ;;  %1718 = vmatmul.bf16.vlgmr.msrb.gmra.mxu3 %v4484_v38  ;;  %v4129_v62 = vld [vmem:[#allocation2 + $0x284] sm:$0xf]  ;;  %v3029_v63 = vld [vmem:[#allocation2 + $0x290] sm:$0xf0]  ;;  %v2904_v3 = vor.u32 %v4097_v59, %v2901_v61 }
  0x50   :  { %1724 = vmatpush.bf16.msra.mxu0 %v2808_v39  ;;  %1692 = vmatmul.bf16.vlgmr.msrb.gmra.mxu1 %v4486_v40  ;;  %v4161_v0 = vld [vmem:[#allocation2 + $0x384] sm:$0xf]  ;;  %v3157_v1 = vld [vmem:[#allocation2 + $0x390] sm:$0xf0]  ;;  %v3032_v4 = vor.u32 %v4129_v62, %v3029_v63 }
  0x51   :  { %1737 = vmatpush.bf16.msra.mxu1 %v2936_v43  ;;  %1750 = vmatpush.bf16.msra.mxu2 %v3064_v44  ;;  %v4061_v5 = vld [vmem:[#allocation2 + $0x64] sm:$0xf]  ;;  %v2757_v6 = vld [vmem:[#allocation2 + $0x70] sm:$0xf0]  ;;  %v3160_v8 = vor.u32 %v4161_v0, %v3157_v1 }
  0x52   :  { %1763 = vmatpush.bf16.msra.mxu3 %v3192_v48  ;;  %v4093_v7 = vld [vmem:[#allocation2 + $0x164] sm:$0xf]  ;;  %v2885_v9 = vld [vmem:[#allocation2 + $0x170] sm:$0xf0]  ;;  %v2760_v14 = vor.u32 %v4061_v5, %v2757_v6 }
  0x53   :  { %v4125_v10 = vld [vmem:[#allocation2 + $0x264] sm:$0xf]  ;;  %v3013_v11 = vld [vmem:[#allocation2 + $0x270] sm:$0xf0]  ;;  %v2888_v15 = vor.u32 %v4093_v7, %v2885_v9 }
  0x54   :  { %1725 = vmatpush.bf16.msra.mxu0 %v2792_v54  ;;  %v4157_v12 = vld [vmem:[#allocation2 + $0x364] sm:$0xf]  ;;  %v3141_v13 = vld [vmem:[#allocation2 + $0x370] sm:$0xf0]  ;;  %v3016_v16 = vor.u32 %v4125_v10, %v3013_v11 }
  0x55   :  { %1738 = vmatpush.bf16.msra.mxu1 %v2920_v55  ;;  %1751 = vmatpush.bf16.msra.mxu2 %v3048_v56  ;;  %v4057_v17 = vld [vmem:[#allocation2 + $0x44] sm:$0xf]  ;;  %v2741_v18 = vld [vmem:[#allocation2 + $0x50] sm:$0xf0]  ;;  %v3144_v20 = vor.u32 %v4157_v12, %v3141_v13 }
  0x56   :  { %1764 = vmatpush.bf16.msra.mxu3 %v3176_v60  ;;  %v4089_v19 = vld [vmem:[#allocation2 + $0x144] sm:$0xf]  ;;  %v2869_v21 = vld [vmem:[#allocation2 + $0x150] sm:$0xf0]  ;;  %v2744_v26 = vor.u32 %v4057_v17, %v2741_v18 }
  0x57   :  { %v4121_v22 = vld [vmem:[#allocation2 + $0x244] sm:$0xf]  ;;  %v2997_v23 = vld [vmem:[#allocation2 + $0x250] sm:$0xf0]  ;;  %v2872_v27 = vor.u32 %v4089_v19, %v2869_v21 }
  0x58   :  { %1726 = vmatpush.bf16.msra.mxu0 %v2776_v2  ;;  %v4153_v24 = vld [vmem:[#allocation2 + $0x344] sm:$0xf]  ;;  %v3125_v25 = vld [vmem:[#allocation2 + $0x350] sm:$0xf0]  ;;  %v3000_v28 = vor.u32 %v4121_v22, %v2997_v23 }
  0x59   :  { %1739 = vmatpush.bf16.msra.mxu1 %v2904_v3  ;;  %1752 = vmatpush.bf16.msra.mxu2 %v3032_v4  ;;  %v4053_v29 = vld [vmem:[#allocation2 + $0x24] sm:$0xf]  ;;  %v2725_v30 = vld [vmem:[#allocation2 + $0x30] sm:$0xf0]  ;;  %v3128_v35 = vor.u32 %v4153_v24, %v3125_v25 }
  0x5a   :  { %1765 = vmatpush.bf16.msra.mxu3 %v3160_v8  ;;  %v4085_v31 = vld [vmem:[#allocation2 + $0x124] sm:$0xf]  ;;  %v2853_v36 = vld [vmem:[#allocation2 + $0x130] sm:$0xf0]  ;;  %v2728_v46 = vor.u32 %v4053_v29, %v2725_v30 }
  0x5b   :  { %v4117_v39 = vld [vmem:[#allocation2 + $0x224] sm:$0xf]  ;;  %v2981_v43 = vld [vmem:[#allocation2 + $0x230] sm:$0xf0]  ;;  %v2856_v49 = vor.u32 %v4085_v31, %v2853_v36 }
  0x5c   :  { %1727 = vmatpush.bf16.msra.mxu0 %v2760_v14  ;;  %v4149_v44 = vld [vmem:[#allocation2 + $0x324] sm:$0xf]  ;;  %v3109_v45 = vld [vmem:[#allocation2 + $0x330] sm:$0xf0]  ;;  %v2984_v50 = vor.u32 %v4117_v39, %v2981_v43 }
  0x5d   :  { %1740 = vmatpush.bf16.msra.mxu1 %v2888_v15  ;;  %1753 = vmatpush.bf16.msra.mxu2 %v3016_v16  ;;  %v4049_v47 = vld [vmem:[#allocation2 + $0x4] sm:$0xf]  ;;  %v2709_v48 = vld [vmem:[#allocation2 + $0x10] sm:$0xf0]  ;;  %v3112_v54 = vor.u32 %v4149_v44, %v3109_v45 }
  0x5e   :  { %1766 = vmatpush.bf16.msra.mxu3 %v3144_v20  ;;  %v4081_v51 = vld [vmem:[#allocation2 + $0x104] sm:$0xf]  ;;  %v2837_v52 = vld [vmem:[#allocation2 + $0x110] sm:$0xf0]  ;;  %v2712_v61 = vor.u32 %v4049_v47, %v2709_v48 }
  0x5f   :  { %v4113_v53 = vld [vmem:[#allocation2 + $0x204] sm:$0xf]  ;;  %v2965_v55 = vld [vmem:[#allocation2 + $0x210] sm:$0xf0]  ;;  %v2840_v1 = vor.u32 %v4081_v51, %v2837_v52 }
  0x60   :  { %1728 = vmatpush.bf16.msra.mxu0 %v2744_v26  ;;  %v4145_v56 = vld [vmem:[#allocation2 + $0x304] sm:$0xf]  ;;  %v3093_v57 = vld [vmem:[#allocation2 + $0x310] sm:$0xf0]  ;;  %v2968_v2 = vor.u32 %v4113_v53, %v2965_v55 }
  0x61   :  { %1741 = vmatpush.bf16.msra.mxu1 %v2872_v27  ;;  %1754 = vmatpush.bf16.msra.mxu2 %v3000_v28  ;;  %v4205_v58 = vld [vmem:[#allocation2 + $0x4e4] sm:$0xf]  ;;  %v3333_v59 = vld [vmem:[#allocation2 + $0x4f0] sm:$0xf0]  ;;  %v3096_v5 = vor.u32 %v4145_v56, %v3093_v57 }
  0x62   :  { %1767 = vmatpush.bf16.msra.mxu3 %v3128_v35  ;;  %v4237_v60 = vld [vmem:[#allocation2 + $0x5e4] sm:$0xf]  ;;  %v3461_v62 = vld [vmem:[#allocation2 + $0x5f0] sm:$0xf0]  ;;  %v3336_v6 = vor.u32 %v4205_v58, %v3333_v59 }
  0x63   :  { %v4269_v63 = vld [vmem:[#allocation2 + $0x6e4] sm:$0xf]  ;;  %v3589_v0 = vld [vmem:[#allocation2 + $0x6f0] sm:$0xf0]  ;;  %v3464_v7 = vor.u32 %v4237_v60, %v3461_v62 }
  0x64   :  { %1729 = vmatpush.bf16.msra.mxu0 %v2728_v46  ;;  %v4301_v3 = vld [vmem:[#allocation2 + $0x7e4] sm:$0xf]  ;;  %v3717_v4 = vld [vmem:[#allocation2 + $0x7f0] sm:$0xf0]  ;;  %v3592_v8 = vor.u32 %v4269_v63, %v3589_v0 }
  0x65   :  { %1742 = vmatpush.bf16.msra.mxu1 %v2856_v49  ;;  %1755 = vmatpush.bf16.msra.mxu2 %v2984_v50  ;;  %v4201_v9 = vld [vmem:[#allocation2 + $0x4c4] sm:$0xf]  ;;  %v3317_v10 = vld [vmem:[#allocation2 + $0x4d0] sm:$0xf0]  ;;  %v3720_v12 = vor.u32 %v4301_v3, %v3717_v4 }
  0x66   :  { %1768 = vmatpush.bf16.msra.mxu3 %v3112_v54  ;;  %v4233_v11 = vld [vmem:[#allocation2 + $0x5c4] sm:$0xf]  ;;  %v3445_v13 = vld [vmem:[#allocation2 + $0x5d0] sm:$0xf0]  ;;  %v3320_v18 = vor.u32 %v4201_v9, %v3317_v10 }
  0x67   :  { %v4265_v14 = vld [vmem:[#allocation2 + $0x6c4] sm:$0xf]  ;;  %v3573_v15 = vld [vmem:[#allocation2 + $0x6d0] sm:$0xf0]  ;;  %v3448_v19 = vor.u32 %v4233_v11, %v3445_v13 }
  0x68   :  { %1730 = vmatpush.bf16.msra.mxu0 %v2712_v61  ;;  %v4297_v16 = vld [vmem:[#allocation2 + $0x7c4] sm:$0xf]  ;;  %v3701_v17 = vld [vmem:[#allocation2 + $0x7d0] sm:$0xf0]  ;;  %v3576_v20 = vor.u32 %v4265_v14, %v3573_v15 }
  0x69   :  { %1743 = vmatpush.bf16.msra.mxu1 %v2840_v1  ;;  %1756 = vmatpush.bf16.msra.mxu2 %v2968_v2  ;;  %v4197_v21 = vld [vmem:[#allocation2 + $0x4a4] sm:$0xf]  ;;  %v3301_v22 = vld [vmem:[#allocation2 + $0x4b0] sm:$0xf0]  ;;  %v3704_v24 = vor.u32 %v4297_v16, %v3701_v17 }
  0x6a   :  { %1769 = vmatpush.bf16.msra.mxu3 %v3096_v5  ;;  %v4229_v23 = vld [vmem:[#allocation2 + $0x5a4] sm:$0xf]  ;;  %v3429_v25 = vld [vmem:[#allocation2 + $0x5b0] sm:$0xf0]  ;;  %v3304_v30 = vor.u32 %v4197_v21, %v3301_v22 }
  0x6b   :  { %v4261_v26 = vld [vmem:[#allocation2 + $0x6a4] sm:$0xf]  ;;  %v3557_v27 = vld [vmem:[#allocation2 + $0x6b0] sm:$0xf0]  ;;  %1731 = vmatmul.bf16.vlgmr.msra.gmra.mxu0 %v4467_v34  ;;  %v3432_v31 = vor.u32 %v4229_v23, %v3429_v25 }
  0x6c   :  { %1775 = vmatpush.bf16.msrb.mxu0 %v3336_v6  ;;  %1757 = vmatmul.bf16.vlgmr.msra.gmra.mxu2 %v4465_v33  ;;  %v4293_v28 = vld [vmem:[#allocation2 + $0x7a4] sm:$0xf]  ;;  %v3685_v29 = vld [vmem:[#allocation2 + $0x7b0] sm:$0xf0]  ;;  %v3560_v35 = vor.u32 %v4261_v26, %v3557_v27 }
  0x6d   :  { %1788 = vmatpush.bf16.msrb.mxu1 %v3464_v7  ;;  %1801 = vmatpush.bf16.msrb.mxu2 %v3592_v8  ;;  %v4193_v36 = vld [vmem:[#allocation2 + $0x484] sm:$0xf]  ;;  %v3285_v39 = vld [vmem:[#allocation2 + $0x490] sm:$0xf0]  ;;  %v3688_v44 = vor.u32 %v4293_v28, %v3685_v29 }
  0x6e   :  { %1814 = vmatpush.bf16.msrb.mxu3 %v3720_v12  ;;  %1744 = vmatmul.bf16.vlgmr.msra.gmra.mxu1 %v4471_v42  ;;  %v4225_v43 = vld [vmem:[#allocation2 + $0x584] sm:$0xf]  ;;  %v3413_v45 = vld [vmem:[#allocation2 + $0x590] sm:$0xf0]  ;;  %v3288_v50 = vor.u32 %v4193_v36, %v3285_v39  ;;  %v2827_v39 = vld [vmem:[#allocation2 + $0xe8] sm:$0xf] }
  0x6f   :  { %1770 = vmatmul.bf16.vlgmr.msra.gmra.mxu3 %v4469_v41  ;;  %v4257_v46 = vld [vmem:[#allocation2 + $0x684] sm:$0xf]  ;;  %v3541_v47 = vld [vmem:[#allocation2 + $0x690] sm:$0xf0]  ;;  %v3416_v51 = vor.u32 %v4225_v43, %v3413_v45  ;;  %v4080_v43 = vld [vmem:[#allocation2 + $0xf4] sm:$0xf0] }
  0x70   :  { %1776 = vmatpush.bf16.msrb.mxu0 %v3320_v18  ;;  %v4289_v48 = vld [vmem:[#allocation2 + $0x784] sm:$0xf]  ;;  %v3669_v49 = vld [vmem:[#allocation2 + $0x790] sm:$0xf0]  ;;  %v3544_v52 = vor.u32 %v4257_v46, %v3541_v47  ;;  %v4112_v46 = vld [vmem:[#allocation2 + $0x1f4] sm:$0xf0] }
  0x71   :  { %1789 = vmatpush.bf16.msrb.mxu1 %v3448_v19  ;;  %1802 = vmatpush.bf16.msrb.mxu2 %v3576_v20  ;;  %v4189_v53 = vld [vmem:[#allocation2 + $0x464] sm:$0xf]  ;;  %v3269_v54 = vld [vmem:[#allocation2 + $0x470] sm:$0xf0]  ;;  %v3672_v56 = vor.u32 %v4289_v48, %v3669_v49  ;;  %v3083_v47 = vld [vmem:[#allocation2 + $0x2e8] sm:$0xf] }
  0x72   :  { %1815 = vmatpush.bf16.msrb.mxu3 %v3704_v24  ;;  %v4221_v55 = vld [vmem:[#allocation2 + $0x564] sm:$0xf]  ;;  %v3397_v57 = vld [vmem:[#allocation2 + $0x570] sm:$0xf0]  ;;  %v3272_v62 = vor.u32 %v4189_v53, %v3269_v54  ;;  %v4144_v48 = vld [vmem:[#allocation2 + $0x2f4] sm:$0xf0]  ;;  %v2828_v54 = vor.u32 %v4080_v43, %v2827_v39 }
  0x73   :  { %v4253_v58 = vld [vmem:[#allocation2 + $0x664] sm:$0xf]  ;;  %v3525_v59 = vld [vmem:[#allocation2 + $0x670] sm:$0xf0]  ;;  %v3400_v63 = vor.u32 %v4221_v55, %v3397_v57  ;;  %v2811_v57 = vld [vmem:[#allocation2 + $0xc8] sm:$0xf] }
  0x74   :  { %1777 = vmatpush.bf16.msrb.mxu0 %v3304_v30  ;;  %v4285_v60 = vld [vmem:[#allocation2 + $0x764] sm:$0xf]  ;;  %v3653_v61 = vld [vmem:[#allocation2 + $0x770] sm:$0xf0]  ;;  %v3528_v0 = vor.u32 %v4253_v58, %v3525_v59  ;;  %v4076_v58 = vld [vmem:[#allocation2 + $0xd4] sm:$0xf0] }
  0x75   :  { %1790 = vmatpush.bf16.msrb.mxu1 %v3432_v31  ;;  %1803 = vmatpush.bf16.msrb.mxu2 %v3560_v35  ;;  %v4185_v1 = vld [vmem:[#allocation2 + $0x444] sm:$0xf]  ;;  %v3253_v2 = vld [vmem:[#allocation2 + $0x450] sm:$0xf0]  ;;  %v3656_v4 = vor.u32 %v4285_v60, %v3653_v61  ;;  %v2939_v59 = vld [vmem:[#allocation2 + $0x1c8] sm:$0xf] }
  0x76   :  { %1816 = vmatpush.bf16.msrb.mxu3 %v3688_v44  ;;  %v4217_v3 = vld [vmem:[#allocation2 + $0x544] sm:$0xf]  ;;  %v3381_v5 = vld [vmem:[#allocation2 + $0x550] sm:$0xf0]  ;;  %v3256_v10 = vor.u32 %v4185_v1, %v3253_v2  ;;  %v2955_v44 = vld [vmem:[#allocation2 + $0x1e8] sm:$0xf]  ;;  %v2812_v2 = vor.u32 %v4076_v58, %v2811_v57 }
  0x77   :  { %v4249_v6 = vld [vmem:[#allocation2 + $0x644] sm:$0xf]  ;;  %v3509_v7 = vld [vmem:[#allocation2 + $0x650] sm:$0xf0]  ;;  %v3384_v11 = vor.u32 %v4217_v3, %v3381_v5  ;;  %v2956_v55 = vor.u32 %v4112_v46, %v2955_v44  ;;  %v4108_v61 = vld [vmem:[#allocation2 + $0x1d4] sm:$0xf0] }
  0x78   :  { %1778 = vmatpush.bf16.msrb.mxu0 %v3288_v50  ;;  %v4281_v8 = vld [vmem:[#allocation2 + $0x744] sm:$0xf]  ;;  %v3637_v9 = vld [vmem:[#allocation2 + $0x750] sm:$0xf0]  ;;  %v3512_v12 = vor.u32 %v4249_v6, %v3509_v7  ;;  %v4172_v1 = vld [vmem:[#allocation2 + $0x3d4] sm:$0xf0]  ;;  %v2940_v3 = vor.u32 %v4108_v61, %v2939_v59 }
  0x79   :  { %1791 = vmatpush.bf16.msrb.mxu1 %v3416_v51  ;;  %1804 = vmatpush.bf16.msrb.mxu2 %v3544_v52  ;;  %v4181_v13 = vld [vmem:[#allocation2 + $0x424] sm:$0xf]  ;;  %v3237_v14 = vld [vmem:[#allocation2 + $0x430] sm:$0xf0]  ;;  %v3640_v16 = vor.u32 %v4281_v8, %v3637_v9  ;;  %v3211_v51 = vld [vmem:[#allocation2 + $0x3e8] sm:$0xf] }
  0x7a   :  { %1817 = vmatpush.bf16.msrb.mxu3 %v3672_v56  ;;  %v4213_v15 = vld [vmem:[#allocation2 + $0x524] sm:$0xf]  ;;  %v3365_v17 = vld [vmem:[#allocation2 + $0x530] sm:$0xf0]  ;;  %v3240_v22 = vor.u32 %v4181_v13, %v3237_v14  ;;  %v4176_v52 = vld [vmem:[#allocation2 + $0x3f4] sm:$0xf0]  ;;  %v3084_v56 = vor.u32 %v4144_v48, %v3083_v47 }
  0x7b   :  { %v4245_v18 = vld [vmem:[#allocation2 + $0x624] sm:$0xf]  ;;  %v3493_v19 = vld [vmem:[#allocation2 + $0x630] sm:$0xf0]  ;;  %v3368_v25 = vor.u32 %v4213_v15, %v3365_v17  ;;  %v3212_v60 = vor.u32 %v4176_v52, %v3211_v51  ;;  %v2795_v5 = vld [vmem:[#allocation2 + $0xa8] sm:$0xf] }
  0x7c   :  { %1779 = vmatpush.bf16.msrb.mxu0 %v3272_v62  ;;  %v4277_v20 = vld [vmem:[#allocation2 + $0x724] sm:$0xf]  ;;  %v3621_v21 = vld [vmem:[#allocation2 + $0x730] sm:$0xf0]  ;;  %v3496_v26 = vor.u32 %v4245_v18, %v3493_v19  ;;  %v3067_v62 = vld [vmem:[#allocation2 + $0x2c8] sm:$0xf] }
  0x7d   :  { %1792 = vmatpush.bf16.msrb.mxu1 %v3400_v63  ;;  %1805 = vmatpush.bf16.msrb.mxu2 %v3528_v0  ;;  %v4177_v23 = vld [vmem:[#allocation2 + $0x404] sm:$0xf]  ;;  %v3221_v24 = vld [vmem:[#allocation2 + $0x410] sm:$0xf0]  ;;  %v3624_v30 = vor.u32 %v4277_v20, %v3621_v21  ;;  %v4140_v63 = vld [vmem:[#allocation2 + $0x2d4] sm:$0xf0] }
  0x7e   :  { %1818 = vmatpush.bf16.msrb.mxu3 %v3656_v4  ;;  %v4209_v27 = vld [vmem:[#allocation2 + $0x504] sm:$0xf]  ;;  %v3349_v28 = vld [vmem:[#allocation2 + $0x510] sm:$0xf0]  ;;  %v3224_v45 = vor.u32 %v4177_v23, %v3221_v24  ;;  %v3195_v0 = vld [vmem:[#allocation2 + $0x3c8] sm:$0xf]  ;;  %v3068_v4 = vor.u32 %v4140_v63, %v3067_v62 }
  0x7f   :  { %v4241_v29 = vld [vmem:[#allocation2 + $0x604] sm:$0xf]  ;;  %v3477_v31 = vld [vmem:[#allocation2 + $0x610] sm:$0xf0]  ;;  %v3352_v49 = vor.u32 %v4209_v27, %v3349_v28  ;;  %v4072_v6 = vld [vmem:[#allocation2 + $0xb4] sm:$0xf0]  ;;  %v3196_v8 = vor.u32 %v4172_v1, %v3195_v0 }
  0x80   :  { %1780 = vmatpush.bf16.msrb.mxu0 %v3256_v10  ;;  %v4273_v35 = vld [vmem:[#allocation2 + $0x704] sm:$0xf]  ;;  %v3605_v36 = vld [vmem:[#allocation2 + $0x710] sm:$0xf0]  ;;  %v3480_v50 = vor.u32 %v4241_v29, %v3477_v31  ;;  %v2923_v7 = vld [vmem:[#allocation2 + $0x1a8] sm:$0xf]  ;;  %v2796_v14 = vor.u32 %v4072_v6, %v2795_v5 }
  0x81   :  { %1793 = vmatpush.bf16.msrb.mxu1 %v3384_v11  ;;  %1806 = vmatpush.bf16.msrb.mxu2 %v3512_v12  ;;  %v3608_v53 = vor.u32 %v4273_v35, %v3605_v36  ;;  %v4104_v9 = vld [vmem:[#allocation2 + $0x1b4] sm:$0xf0]  ;;  %v3051_v10 = vld [vmem:[#allocation2 + $0x2a8] sm:$0xf] }
  0x82   :  { %1819 = vmatpush.bf16.msrb.mxu3 %v3640_v16  ;;  %v4136_v11 = vld [vmem:[#allocation2 + $0x2b4] sm:$0xf0]  ;;  %v3179_v12 = vld [vmem:[#allocation2 + $0x3a8] sm:$0xf]  ;;  %v2924_v15 = vor.u32 %v4104_v9, %v2923_v7 }
  0x83   :  { %v4168_v13 = vld [vmem:[#allocation2 + $0x3b4] sm:$0xf0]  ;;  %v3052_v16 = vor.u32 %v4136_v11, %v3051_v10  ;;  %v2779_v17 = vld [vmem:[#allocation2 + $0x88] sm:$0xf] }
  0x84   :  { %1781 = vmatpush.bf16.msrb.mxu0 %v3240_v22  ;;  %v4068_v18 = vld [vmem:[#allocation2 + $0x94] sm:$0xf0]  ;;  %v2907_v19 = vld [vmem:[#allocation2 + $0x188] sm:$0xf]  ;;  %v3180_v20 = vor.u32 %v4168_v13, %v3179_v12 }
  0x85   :  { %1794 = vmatpush.bf16.msrb.mxu1 %v3368_v25  ;;  %1807 = vmatpush.bf16.msrb.mxu2 %v3496_v26  ;;  %v4100_v21 = vld [vmem:[#allocation2 + $0x194] sm:$0xf0]  ;;  %v3035_v22 = vld [vmem:[#allocation2 + $0x288] sm:$0xf]  ;;  %v2780_v26 = vor.u32 %v4068_v18, %v2779_v17 }
  0x86   :  { %1820 = vmatpush.bf16.msrb.mxu3 %v3624_v30  ;;  %v4132_v23 = vld [vmem:[#allocation2 + $0x294] sm:$0xf0]  ;;  %v3163_v24 = vld [vmem:[#allocation2 + $0x388] sm:$0xf]  ;;  %v2908_v27 = vor.u32 %v4100_v21, %v2907_v19 }
  0x87   :  { %v4164_v25 = vld [vmem:[#allocation2 + $0x394] sm:$0xf0]  ;;  %v3036_v28 = vor.u32 %v4132_v23, %v3035_v22  ;;  %v2763_v29 = vld [vmem:[#allocation2 + $0x68] sm:$0xf] }
  0x88   :  { %1782 = vmatpush.bf16.msrb.mxu0 %v3224_v45  ;;  %v4064_v30 = vld [vmem:[#allocation2 + $0x74] sm:$0xf0]  ;;  %v2891_v31 = vld [vmem:[#allocation2 + $0x168] sm:$0xf]  ;;  %v3164_v35 = vor.u32 %v4164_v25, %v3163_v24 }
  0x89   :  { %1795 = vmatpush.bf16.msrb.mxu1 %v3352_v49  ;;  %1808 = vmatpush.bf16.msrb.mxu2 %v3480_v50  ;;  %v4096_v36 = vld [vmem:[#allocation2 + $0x174] sm:$0xf0]  ;;  %v3019_v39 = vld [vmem:[#allocation2 + $0x268] sm:$0xf]  ;;  %v2764_v46 = vor.u32 %v4064_v30, %v2763_v29 }
  0x8a   :  { %1821 = vmatpush.bf16.msrb.mxu3 %v3608_v53  ;;  %v4128_v43 = vld [vmem:[#allocation2 + $0x274] sm:$0xf0]  ;;  %v3147_v44 = vld [vmem:[#allocation2 + $0x368] sm:$0xf]  ;;  %v2892_v47 = vor.u32 %v4096_v36, %v2891_v31 }
  0x8b   :  { %1783 = vmatmul.bf16.vlgmr.msrb.gmra.mxu0 %v4482_v37  ;;  %v4160_v45 = vld [vmem:[#allocation2 + $0x374] sm:$0xf0]  ;;  %v3020_v48 = vor.u32 %v4128_v43, %v3019_v39  ;;  %v2747_v49 = vld [vmem:[#allocation2 + $0x48] sm:$0xf] }
  0x8c   :  { %1827 = vmatpush.bf16.msra.mxu0 %v2828_v54  ;;  %1809 = vmatmul.bf16.vlgmr.msrb.gmra.mxu2 %v4480_v32  ;;  %v4060_v50 = vld [vmem:[#allocation2 + $0x54] sm:$0xf0]  ;;  %v2875_v51 = vld [vmem:[#allocation2 + $0x148] sm:$0xf]  ;;  %v3148_v52 = vor.u32 %v4160_v45, %v3147_v44 }
  0x8d   :  { %1840 = vmatpush.bf16.msra.mxu1 %v2956_v55  ;;  %1853 = vmatpush.bf16.msra.mxu2 %v3084_v56  ;;  %v4092_v53 = vld [vmem:[#allocation2 + $0x154] sm:$0xf0]  ;;  %v3003_v54 = vld [vmem:[#allocation2 + $0x248] sm:$0xf]  ;;  %v2748_v58 = vor.u32 %v4060_v50, %v2747_v49 }
  0x8e   :  { %1866 = vmatpush.bf16.msra.mxu3 %v3212_v60  ;;  %1796 = vmatmul.bf16.vlgmr.msrb.gmra.mxu1 %v4486_v40  ;;  %v4124_v55 = vld [vmem:[#allocation2 + $0x254] sm:$0xf0]  ;;  %v3131_v56 = vld [vmem:[#allocation2 + $0x348] sm:$0xf]  ;;  %v2876_v59 = vor.u32 %v4092_v53, %v2875_v51 }
  0x8f   :  { %1822 = vmatmul.bf16.vlgmr.msrb.gmra.mxu3 %v4484_v38  ;;  %v4156_v57 = vld [vmem:[#allocation2 + $0x354] sm:$0xf0]  ;;  %v3004_v60 = vor.u32 %v4124_v55, %v3003_v54  ;;  %v2731_v61 = vld [vmem:[#allocation2 + $0x28] sm:$0xf] }
  0x90   :  { %1828 = vmatpush.bf16.msra.mxu0 %v2812_v2  ;;  %v4056_v62 = vld [vmem:[#allocation2 + $0x34] sm:$0xf0]  ;;  %v2859_v63 = vld [vmem:[#allocation2 + $0x128] sm:$0xf]  ;;  %v3132_v0 = vor.u32 %v4156_v57, %v3131_v56 }
  0x91   :  { %1841 = vmatpush.bf16.msra.mxu1 %v2940_v3  ;;  %1854 = vmatpush.bf16.msra.mxu2 %v3068_v4  ;;  %v4088_v1 = vld [vmem:[#allocation2 + $0x134] sm:$0xf0]  ;;  %v2987_v2 = vld [vmem:[#allocation2 + $0x228] sm:$0xf]  ;;  %v2732_v6 = vor.u32 %v4056_v62, %v2731_v61 }
  0x92   :  { %1867 = vmatpush.bf16.msra.mxu3 %v3196_v8  ;;  %v4120_v3 = vld [vmem:[#allocation2 + $0x234] sm:$0xf0]  ;;  %v3115_v4 = vld [vmem:[#allocation2 + $0x328] sm:$0xf]  ;;  %v2860_v9 = vor.u32 %v4088_v1, %v2859_v63 }
  0x93   :  { %v4152_v5 = vld [vmem:[#allocation2 + $0x334] sm:$0xf0]  ;;  %v2715_v7 = vld [vmem:[#allocation2 + $0x8] sm:$0xf]  ;;  %v2988_v10 = vor.u32 %v4120_v3, %v2987_v2 }
  0x94   :  { %1829 = vmatpush.bf16.msra.mxu0 %v2796_v14  ;;  %v4052_v8 = vld [vmem:[#allocation2 + $0x14] sm:$0xf0]  ;;  %v2843_v11 = vld [vmem:[#allocation2 + $0x108] sm:$0xf]  ;;  %v3116_v14 = vor.u32 %v4152_v5, %v3115_v4 }
  0x95   :  { %1842 = vmatpush.bf16.msra.mxu1 %v2924_v15  ;;  %1855 = vmatpush.bf16.msra.mxu2 %v3052_v16  ;;  %v4084_v12 = vld [vmem:[#allocation2 + $0x114] sm:$0xf0]  ;;  %v2971_v13 = vld [vmem:[#allocation2 + $0x208] sm:$0xf]  ;;  %v2716_v21 = vor.u32 %v4052_v8, %v2715_v7 }
  0x96   :  { %1868 = vmatpush.bf16.msra.mxu3 %v3180_v20  ;;  %v4116_v15 = vld [vmem:[#allocation2 + $0x214] sm:$0xf0]  ;;  %v3099_v16 = vld [vmem:[#allocation2 + $0x308] sm:$0xf]  ;;  %v2844_v25 = vor.u32 %v4084_v12, %v2843_v11 }
  0x97   :  { %v4148_v17 = vld [vmem:[#allocation2 + $0x314] sm:$0xf0]  ;;  %v3339_v18 = vld [vmem:[#allocation2 + $0x4e8] sm:$0xf] }
  0x98   :  { %1830 = vmatpush.bf16.msra.mxu0 %v2780_v26  ;;  %v4208_v19 = vld [vmem:[#allocation2 + $0x4f4] sm:$0xf0]  ;;  %v3467_v20 = vld [vmem:[#allocation2 + $0x5e8] sm:$0xf]  ;;  %v2972_v26 = vor.u32 %v4116_v15, %v2971_v13  ;;  %v3100_v29 = vor.u32 %v4148_v17, %v3099_v16 }
  0x99   :  { %1843 = vmatpush.bf16.msra.mxu1 %v2908_v27  ;;  %1856 = vmatpush.bf16.msra.mxu2 %v3036_v28  ;;  %v4240_v22 = vld [vmem:[#allocation2 + $0x5f4] sm:$0xf0]  ;;  %v3595_v23 = vld [vmem:[#allocation2 + $0x6e8] sm:$0xf]  ;;  %v3340_v30 = vor.u32 %v4208_v19, %v3339_v18 }
  0x9a   :  { %1869 = vmatpush.bf16.msra.mxu3 %v3164_v35  ;;  %v4272_v24 = vld [vmem:[#allocation2 + $0x6f4] sm:$0xf0]  ;;  %v3723_v27 = vld [vmem:[#allocation2 + $0x7e8] sm:$0xf]  ;;  %v3468_v31 = vor.u32 %v4240_v22, %v3467_v20 }
  0x9b   :  { %v4304_v28 = vld [vmem:[#allocation2 + $0x7f4] sm:$0xf0]  ;;  %v3596_v35 = vor.u32 %v4272_v24, %v3595_v23  ;;  %v3323_v36 = vld [vmem:[#allocation2 + $0x4c8] sm:$0xf] }
  0x9c   :  { %1831 = vmatpush.bf16.msra.mxu0 %v2764_v46  ;;  %v4204_v39 = vld [vmem:[#allocation2 + $0x4d4] sm:$0xf0]  ;;  %v3451_v43 = vld [vmem:[#allocation2 + $0x5c8] sm:$0xf]  ;;  %v3724_v44 = vor.u32 %v4304_v28, %v3723_v27 }
  0x9d   :  { %1844 = vmatpush.bf16.msra.mxu1 %v2892_v47  ;;  %1857 = vmatpush.bf16.msra.mxu2 %v3020_v48  ;;  %v4236_v45 = vld [vmem:[#allocation2 + $0x5d4] sm:$0xf0]  ;;  %v3579_v46 = vld [vmem:[#allocation2 + $0x6c8] sm:$0xf]  ;;  %v3324_v50 = vor.u32 %v4204_v39, %v3323_v36 }
  0x9e   :  { %1870 = vmatpush.bf16.msra.mxu3 %v3148_v52  ;;  %v4268_v47 = vld [vmem:[#allocation2 + $0x6d4] sm:$0xf0]  ;;  %v3707_v48 = vld [vmem:[#allocation2 + $0x7c8] sm:$0xf]  ;;  %v3452_v51 = vor.u32 %v4236_v45, %v3451_v43 }
  0x9f   :  { %v4300_v49 = vld [vmem:[#allocation2 + $0x7d4] sm:$0xf0]  ;;  %v3580_v52 = vor.u32 %v4268_v47, %v3579_v46  ;;  %v3307_v53 = vld [vmem:[#allocation2 + $0x4a8] sm:$0xf] }
  0xa0   :  { %1832 = vmatpush.bf16.msra.mxu0 %v2748_v58  ;;  %v4200_v54 = vld [vmem:[#allocation2 + $0x4b4] sm:$0xf0]  ;;  %v3435_v55 = vld [vmem:[#allocation2 + $0x5a8] sm:$0xf]  ;;  %v3708_v56 = vor.u32 %v4300_v49, %v3707_v48 }
  0xa1   :  { %1845 = vmatpush.bf16.msra.mxu1 %v2876_v59  ;;  %1858 = vmatpush.bf16.msra.mxu2 %v3004_v60  ;;  %v4232_v57 = vld [vmem:[#allocation2 + $0x5b4] sm:$0xf0]  ;;  %v3563_v58 = vld [vmem:[#allocation2 + $0x6a8] sm:$0xf]  ;;  %v3308_v62 = vor.u32 %v4200_v54, %v3307_v53 }
  0xa2   :  { %1871 = vmatpush.bf16.msra.mxu3 %v3132_v0  ;;  %v4264_v59 = vld [vmem:[#allocation2 + $0x6b4] sm:$0xf0]  ;;  %v3691_v60 = vld [vmem:[#allocation2 + $0x7a8] sm:$0xf]  ;;  %v3436_v63 = vor.u32 %v4232_v57, %v3435_v55 }
  0xa3   :  { %v4296_v61 = vld [vmem:[#allocation2 + $0x7b4] sm:$0xf0]  ;;  %v3564_v0 = vor.u32 %v4264_v59, %v3563_v58  ;;  %v3291_v1 = vld [vmem:[#allocation2 + $0x488] sm:$0xf] }
  0xa4   :  { %1833 = vmatpush.bf16.msra.mxu0 %v2732_v6  ;;  %v4196_v2 = vld [vmem:[#allocation2 + $0x494] sm:$0xf0]  ;;  %v3419_v3 = vld [vmem:[#allocation2 + $0x588] sm:$0xf]  ;;  %v3692_v4 = vor.u32 %v4296_v61, %v3691_v60 }
  0xa5   :  { %1846 = vmatpush.bf16.msra.mxu1 %v2860_v9  ;;  %1859 = vmatpush.bf16.msra.mxu2 %v2988_v10  ;;  %v4228_v5 = vld [vmem:[#allocation2 + $0x594] sm:$0xf0]  ;;  %v3547_v6 = vld [vmem:[#allocation2 + $0x688] sm:$0xf]  ;;  %v3292_v10 = vor.u32 %v4196_v2, %v3291_v1 }
  0xa6   :  { %1872 = vmatpush.bf16.msra.mxu3 %v3116_v14  ;;  %v4260_v7 = vld [vmem:[#allocation2 + $0x694] sm:$0xf0]  ;;  %v3675_v8 = vld [vmem:[#allocation2 + $0x788] sm:$0xf]  ;;  %v3420_v11 = vor.u32 %v4228_v5, %v3419_v3 }
  0xa7   :  { %v4292_v9 = vld [vmem:[#allocation2 + $0x794] sm:$0xf0]  ;;  %v3548_v12 = vor.u32 %v4260_v7, %v3547_v6  ;;  %v3275_v13 = vld [vmem:[#allocation2 + $0x468] sm:$0xf]  ;;  %v4078_v6 = vld [vmem:[#allocation2 + $0xec] sm:$0xf] }
  0xa8   :  { %1834 = vmatpush.bf16.msra.mxu0 %v2716_v21  ;;  %v4192_v14 = vld [vmem:[#allocation2 + $0x474] sm:$0xf0]  ;;  %v3403_v15 = vld [vmem:[#allocation2 + $0x568] sm:$0xf]  ;;  %v3676_v16 = vor.u32 %v4292_v9, %v3675_v8  ;;  %v2829_v7 = vld [vmem:[#allocation2 + $0xf8] sm:$0xf0] }
  0xa9   :  { %1847 = vmatpush.bf16.msra.mxu1 %v2844_v25  ;;  %1860 = vmatpush.bf16.msra.mxu2 %v2972_v26  ;;  %v4224_v17 = vld [vmem:[#allocation2 + $0x574] sm:$0xf0]  ;;  %v3531_v18 = vld [vmem:[#allocation2 + $0x668] sm:$0xf]  ;;  %v3276_v22 = vor.u32 %v4192_v14, %v3275_v13  ;;  %v4110_v8 = vld [vmem:[#allocation2 + $0x1ec] sm:$0xf] }
  0xaa   :  { %1873 = vmatpush.bf16.msra.mxu3 %v3100_v29  ;;  %v4256_v19 = vld [vmem:[#allocation2 + $0x674] sm:$0xf0]  ;;  %v3659_v20 = vld [vmem:[#allocation2 + $0x768] sm:$0xf]  ;;  %v3404_v24 = vor.u32 %v4224_v17, %v3403_v15  ;;  %v3085_v13 = vld [vmem:[#allocation2 + $0x2f8] sm:$0xf0] }
  0xab   :  { %1835 = vmatmul.bf16.vlgmr.msra.gmra.mxu0 %v4467_v34  ;;  %v4288_v21 = vld [vmem:[#allocation2 + $0x774] sm:$0xf0]  ;;  %v3259_v23 = vld [vmem:[#allocation2 + $0x448] sm:$0xf]  ;;  %v3532_v25 = vor.u32 %v4256_v19, %v3531_v18  ;;  %v4174_v17 = vld [vmem:[#allocation2 + $0x3ec] sm:$0xf] }
  0xac   :  { %1879 = vmatpush.bf16.msrb.mxu0 %v3340_v30  ;;  %1861 = vmatmul.bf16.vlgmr.msra.gmra.mxu2 %v4465_v33  ;;  %v4188_v26 = vld [vmem:[#allocation2 + $0x454] sm:$0xf0]  ;;  %v3387_v27 = vld [vmem:[#allocation2 + $0x548] sm:$0xf]  ;;  %v3660_v29 = vor.u32 %v4288_v21, %v3659_v20  ;;  %v3213_v18 = vld [vmem:[#allocation2 + $0x3f8] sm:$0xf0]  ;;  %v2832_v20 = vor.u32 %v4078_v6, %v2829_v7 }
  0xad   :  { %1892 = vmatpush.bf16.msrb.mxu1 %v3468_v31  ;;  %1905 = vmatpush.bf16.msrb.mxu2 %v3596_v35  ;;  %v4220_v28 = vld [vmem:[#allocation2 + $0x554] sm:$0xf0]  ;;  %v3515_v30 = vld [vmem:[#allocation2 + $0x648] sm:$0xf]  ;;  %v3260_v43 = vor.u32 %v4188_v26, %v3259_v23  ;;  %v4106_v26 = vld [vmem:[#allocation2 + $0x1cc] sm:$0xf] }
  0xae   :  { %1918 = vmatpush.bf16.msrb.mxu3 %v3724_v44  ;;  %1848 = vmatmul.bf16.vlgmr.msra.gmra.mxu1 %v4471_v42  ;;  %v4252_v31 = vld [vmem:[#allocation2 + $0x654] sm:$0xf0]  ;;  %v3643_v36 = vld [vmem:[#allocation2 + $0x748] sm:$0xf]  ;;  %v3388_v45 = vor.u32 %v4220_v28, %v3387_v27  ;;  %v3037_v6 = vld [vmem:[#allocation2 + $0x298] sm:$0xf0] }
  0xaf   :  { %1874 = vmatmul.bf16.vlgmr.msra.gmra.mxu3 %v4469_v41  ;;  %v4507_v35 = vld [vmem:[%s4999_s2] sm:$0xf]  ;;  %v3243_v44 = vld [vmem:[#allocation2 + $0x428] sm:$0xf]  ;;  %v3516_v46 = vor.u32 %v4252_v31, %v3515_v30  ;;  %v2941_v30 = vld [vmem:[#allocation2 + $0x1d8] sm:$0xf0] }
  0xb0   :  { %1880 = vmatpush.bf16.msrb.mxu0 %v3324_v50  ;;  %v4284_v39 = vld [vmem:[#allocation2 + $0x754] sm:$0xf0]  ;;  %v3371_v48 = vld [vmem:[#allocation2 + $0x528] sm:$0xf]  ;;  %v331_v49 = vperm.slane %v4507_v35, 0 }
  0xb1   :  { %1893 = vmatpush.bf16.msrb.mxu1 %v3452_v51  ;;  %1906 = vmatpush.bf16.msrb.mxu2 %v3580_v52  ;;  %v4184_v47 = vld [vmem:[#allocation2 + $0x434] sm:$0xf0]  ;;  %v3644_v50 = vor.u32 %v4284_v39, %v3643_v36  ;;  %v3499_v52 = vld [vmem:[#allocation2 + $0x628] sm:$0xf]  ;;  %v4138_v31 = vld [vmem:[#allocation2 + $0x2cc] sm:$0xf] }
  0xb2   :  { %1919 = vmatpush.bf16.msrb.mxu3 %v3708_v56  ;;  %v4216_v51 = vld [vmem:[#allocation2 + $0x534] sm:$0xf0]  ;;  %v3627_v54 = vld [vmem:[#allocation2 + $0x728] sm:$0xf]  ;;  %v3244_v56 = vor.u32 %v4184_v47, %v3243_v44  ;;  %v3069_v36 = vld [vmem:[#allocation2 + $0x2d8] sm:$0xf0]  ;;  %v2944_v47 = vor.u32 %v4106_v26, %v2941_v30 }
  0xb3   :  { %v4248_v53 = vld [vmem:[#allocation2 + $0x634] sm:$0xf0]  ;;  %v3227_v57 = vld [vmem:[#allocation2 + $0x408] sm:$0xf]  ;;  %v3372_v60 = vor.u32 %v4216_v51, %v3371_v48  ;;  %v3197_v44 = vld [vmem:[#allocation2 + $0x3d8] sm:$0xf0]  ;;  %v3072_v48 = vor.u32 %v4138_v31, %v3069_v36 }
  0xb4   :  { %1881 = vmatpush.bf16.msrb.mxu0 %v3308_v62  ;;  %v4280_v55 = vld [vmem:[#allocation2 + $0x734] sm:$0xf0]  ;;  %v3500_v61 = vor.u32 %v4248_v53, %v3499_v52  ;;  %v3355_v62 = vld [vmem:[#allocation2 + $0x508] sm:$0xf]  ;;  %v4102_v51 = vld [vmem:[#allocation2 + $0x1ac] sm:$0xf] }
  0xb5   :  { %1894 = vmatpush.bf16.msrb.mxu1 %v3436_v63  ;;  %1907 = vmatpush.bf16.msrb.mxu2 %v3564_v0  ;;  %v4180_v58 = vld [vmem:[#allocation2 + $0x414] sm:$0xf0]  ;;  %v3483_v0 = vld [vmem:[#allocation2 + $0x608] sm:$0xf]  ;;  %v3628_v2 = vor.u32 %v4280_v55, %v3627_v54  ;;  %v2925_v54 = vld [vmem:[#allocation2 + $0x1b8] sm:$0xf0] }
  0xb6   :  { %1920 = vmatpush.bf16.msrb.mxu3 %v3692_v4  ;;  %v4212_v63 = vld [vmem:[#allocation2 + $0x514] sm:$0xf0]  ;;  %v3611_v4 = vld [vmem:[#allocation2 + $0x708] sm:$0xf]  ;;  %v4134_v55 = vld [vmem:[#allocation2 + $0x2ac] sm:$0xf] }
  0xb7   :  { %v4244_v3 = vld [vmem:[#allocation2 + $0x614] sm:$0xf0]  ;;  %v3356_v15 = vor.u32 %v4212_v63, %v3355_v62  ;;  %v4066_v63 = vld [vmem:[#allocation2 + $0x8c] sm:$0xf] }
  0xb8   :  { %1882 = vmatpush.bf16.msrb.mxu0 %v3292_v10  ;;  %v4276_v5 = vld [vmem:[#allocation2 + $0x714] sm:$0xf0]  ;;  %v3228_v10 = vor.u32 %v4180_v58, %v3227_v57  ;;  %v4166_v57 = vld [vmem:[#allocation2 + $0x3ac] sm:$0xf]  ;;  %v3181_v58 = vld [vmem:[#allocation2 + $0x3b8] sm:$0xf0] }
  0xb9   :  { %1895 = vmatpush.bf16.msrb.mxu1 %v3420_v11  ;;  %1908 = vmatpush.bf16.msrb.mxu2 %v3548_v12  ;;  %v2957_v11 = vld [vmem:[#allocation2 + $0x1f8] sm:$0xf0]  ;;  %v4142_v12 = vld [vmem:[#allocation2 + $0x2ec] sm:$0xf]  ;;  %v3612_v19 = vor.u32 %v4276_v5, %v3611_v4 }
  0xba   :  { %1921 = vmatpush.bf16.msrb.mxu3 %v3676_v16  ;;  %v3484_v16 = vor.u32 %v4244_v3, %v3483_v0  ;;  %v3088_v23 = vor.u32 %v4142_v12, %v3085_v13  ;;  %v2781_v0 = vld [vmem:[#allocation2 + $0x98] sm:$0xf0]  ;;  %v3184_v3 = vor.u32 %v4166_v57, %v3181_v58  ;;  %v4130_v5 = vld [vmem:[#allocation2 + $0x28c] sm:$0xf] }
  0xbb   :  { %v1628_v59 = vpop.f32.mrf.mxu0  ;;  %v2909_v4 = vld [vmem:[#allocation2 + $0x198] sm:$0xf0]  ;;  %v4162_v7 = vld [vmem:[#allocation2 + $0x38c] sm:$0xf]  ;;  %v3040_v12 = vor.u32 %v4130_v5, %v3037_v6 }
  0xbc   :  { %1883 = vmatpush.bf16.msrb.mxu0 %v3276_v22  ;;  %v1629_v1 = vadd.f32 %v1628_v59, %v331_v49  ;;  %v1641_v9 = vpop.f32.mrf.mxu1  ;;  %v2960_v22 = vor.u32 %v4110_v8, %v2957_v11  ;;  %v4070_v49 = vld [vmem:[#allocation2 + $0xac] sm:$0xf]  ;;  %v3165_v8 = vld [vmem:[#allocation2 + $0x398] sm:$0xf0] }
  0xbd   :  { %1896 = vmatpush.bf16.msrb.mxu1 %v3404_v24  ;;  %1909 = vmatpush.bf16.msrb.mxu2 %v3532_v25  ;;  %v4074_v24 = vld [vmem:[#allocation2 + $0xcc] sm:$0xf]  ;;  %v2813_v25 = vld [vmem:[#allocation2 + $0xd8] sm:$0xf0] }
  0xbe   :  { %1922 = vmatpush.bf16.msrb.mxu3 %v3660_v29  ;;  %v1642_v14 = vadd.f32 %v1641_v9, %v1629_v1  ;;  %v3216_v29 = vor.u32 %v4174_v17, %v3213_v18  ;;  %v4098_v1 = vld [vmem:[#allocation2 + $0x18c] sm:$0xf]  ;;  %v2784_v9 = vor.u32 %v4066_v63, %v2781_v0  ;;  %v3168_v18 = vor.u32 %v4162_v7, %v3165_v8  ;;  %v3117_v63 = vld [vmem:[#allocation2 + $0x338] sm:$0xf0] }
  0xbf   :  { %v2912_v11 = vor.u32 %v4098_v1, %v2909_v4  ;;  %v4062_v13 = vld [vmem:[#allocation2 + $0x6c] sm:$0xf]  ;;  %v2845_v6 = vld [vmem:[#allocation2 + $0x118] sm:$0xf0] }
  0xc0   :  { %1884 = vmatpush.bf16.msrb.mxu0 %v3260_v43  ;;  %v1654_v21 = vpop.f32.mrf.mxu2  ;;  %v4170_v43 = vld [vmem:[#allocation2 + $0x3cc] sm:$0xf] }
  0xc1   :  { %1897 = vmatpush.bf16.msrb.mxu1 %v3388_v45  ;;  %1910 = vmatpush.bf16.msrb.mxu2 %v3516_v46  ;;  %v1655_v27 = vadd.f32 %v1654_v21, %v1642_v14  ;;  %v1667_v28 = vpop.f32.mrf.mxu3  ;;  %v2816_v46 = vor.u32 %v4074_v24, %v2813_v25  ;;  %v3200_v53 = vor.u32 %v4170_v43, %v3197_v44  ;;  %v2765_v14 = vld [vmem:[#allocation2 + $0x78] sm:$0xf0]  ;;  %v4090_v30 = vld [vmem:[#allocation2 + $0x14c] sm:$0xf] }
  0xc2   :  { %1923 = vmatpush.bf16.msrb.mxu3 %v3644_v50  ;;  %v2797_v50 = vld [vmem:[#allocation2 + $0xb8] sm:$0xf0]  ;;  %v2768_v25 = vor.u32 %v4062_v13, %v2765_v14  ;;  %v4122_v43 = vld [vmem:[#allocation2 + $0x24c] sm:$0xf] }
  0xc3   :  { %v1630_v39 = vpop.f32.mrf.mxu0  ;;  %v1668_v45 = vadd.f32 %v1667_v28, %v1655_v27  ;;  %v2800_v59 = vor.u32 %v4070_v49, %v2797_v50  ;;  %v3021_v21 = vld [vmem:[#allocation2 + $0x278] sm:$0xf0]  ;;  %v4058_v28 = vld [vmem:[#allocation2 + $0x4c] sm:$0xf] }
  0xc4   :  { %1885 = vmatpush.bf16.msrb.mxu0 %v3244_v56  ;;  %v1643_v52 = vpop.f32.mrf.mxu1  ;;  %v3053_v56 = vld [vmem:[#allocation2 + $0x2b8] sm:$0xf0]  ;;  %v4050_v1 = vld [vmem:[#allocation2 + $0xc] sm:$0xf] }
  0xc5   :  { %1898 = vmatpush.bf16.msrb.mxu1 %v3372_v60  ;;  %1911 = vmatpush.bf16.msrb.mxu2 %v3500_v61  ;;  %v2928_v61 = vor.u32 %v4102_v51, %v2925_v54  ;;  %v3056_v62 = vor.u32 %v4134_v55, %v3053_v56  ;;  %v2877_v39 = vld [vmem:[#allocation2 + $0x158] sm:$0xf0]  ;;  %v4054_v54 = vld [vmem:[#allocation2 + $0x2c] sm:$0xf] }
  0xc6   :  { %1924 = vmatpush.bf16.msrb.mxu3 %v3628_v2  ;;  %v3005_v44 = vld [vmem:[#allocation2 + $0x258] sm:$0xf0]  ;;  %v2880_v52 = vor.u32 %v4090_v30, %v2877_v39  ;;  %v4086_v56 = vld [vmem:[#allocation2 + $0x12c] sm:$0xf] }
  0xc7   :  { %v2733_v55 = vld [vmem:[#allocation2 + $0x38] sm:$0xf0]  ;;  %v4082_v5 = vld [vmem:[#allocation2 + $0x10c] sm:$0xf] }
  0xc8   :  { %1886 = vmatpush.bf16.msrb.mxu0 %v3228_v10  ;;  %v1656_v60 = vpop.f32.mrf.mxu2  ;;  %v2736_v0 = vor.u32 %v4054_v54, %v2733_v55  ;;  %v4114_v7 = vld [vmem:[#allocation2 + $0x20c] sm:$0xf]  ;;  %v3325_v30 = vld [vmem:[#allocation2 + $0x4d8] sm:$0xf0] }
  0xc9   :  { %1899 = vmatpush.bf16.msrb.mxu1 %v3356_v15  ;;  %1912 = vmatpush.bf16.msrb.mxu2 %v3484_v16  ;;  %v1669_v2 = vpop.f32.mrf.mxu3  ;;  %v4094_v15 = vld [vmem:[#allocation2 + $0x16c] sm:$0xf]  ;;  %v3453_v39 = vld [vmem:[#allocation2 + $0x5d8] sm:$0xf0] }
  0xca   :  { %1925 = vmatpush.bf16.msrb.mxu3 %v3612_v19  ;;  %v2893_v19 = vld [vmem:[#allocation2 + $0x178] sm:$0xf0]  ;;  %v4118_v60 = vld [vmem:[#allocation2 + $0x22c] sm:$0xf] }
  0xcb   :  { %1887 = vmatmul.bf16.vlgmr.msrb.gmra.mxu0 %v4482_v37  ;;  %v2896_v26 = vor.u32 %v4094_v15, %v2893_v19  ;;  %v2717_v2 = vld [vmem:[#allocation2 + $0x18] sm:$0xf0]  ;;  %v4206_v14 = vld [vmem:[#allocation2 + $0x4ec] sm:$0xf] }
  0xcc   :  { %1931 = vmatpush.bf16.msra.mxu0 %v2832_v20  ;;  %1913 = vmatmul.bf16.vlgmr.msrb.gmra.mxu2 %v4480_v32  ;;  %v1680_v10 = vpop.f32.mrf.mxu0  ;;  %v4126_v20 = vld [vmem:[#allocation2 + $0x26c] sm:$0xf]  ;;  %v3341_v15 = vld [vmem:[#allocation2 + $0x4f8] sm:$0xf0] }
  0xcd   :  { %1944 = vmatpush.bf16.msra.mxu1 %v2960_v22  ;;  %1957 = vmatpush.bf16.msra.mxu2 %v3088_v23  ;;  %v1681_v16 = vadd.f32 %v1680_v10, %v1668_v45  ;;  %v1693_v17 = vpop.f32.mrf.mxu1  ;;  %v4158_v22 = vld [vmem:[#allocation2 + $0x36c] sm:$0xf]  ;;  %v3149_v23 = vld [vmem:[#allocation2 + $0x378] sm:$0xf0]  ;;  %v3024_v27 = vor.u32 %v4126_v20, %v3021_v21  ;;  %v2848_v21 = vor.u32 %v4082_v5, %v2845_v6 }
  0xce   :  { %1970 = vmatpush.bf16.msra.mxu3 %v3216_v29  ;;  %1900 = vmatmul.bf16.vlgmr.msrb.gmra.mxu1 %v4486_v40  ;;  %v2749_v29 = vld [vmem:[#allocation2 + $0x58] sm:$0xf0]  ;;  %v3152_v36 = vor.u32 %v4158_v22, %v3149_v23  ;;  %v4270_v19 = vld [vmem:[#allocation2 + $0x6ec] sm:$0xf] }
  0xcf   :  { %1926 = vmatmul.bf16.vlgmr.msrb.gmra.mxu3 %v4484_v38  ;;  %v1694_v24 = vadd.f32 %v1693_v17, %v1681_v16  ;;  %v2752_v49 = vor.u32 %v4058_v28, %v2749_v29  ;;  %v2973_v10 = vld [vmem:[#allocation2 + $0x218] sm:$0xf0]  ;;  %v4238_v16 = vld [vmem:[#allocation2 + $0x5ec] sm:$0xf]  ;;  %v2720_v17 = vor.u32 %v4050_v1, %v2717_v2 }
  0xd0   :  { %1932 = vmatpush.bf16.msra.mxu0 %v2816_v46  ;;  %v3597_v20 = vld [vmem:[#allocation2 + $0x6f8] sm:$0xf0]  ;;  %v2976_v22 = vor.u32 %v4114_v7, %v2973_v10  ;;  %v4302_v23 = vld [vmem:[#allocation2 + $0x7ec] sm:$0xf] }
  0xd1   :  { %1945 = vmatpush.bf16.msra.mxu1 %v2944_v47  ;;  %1958 = vmatpush.bf16.msra.mxu2 %v3072_v48  ;;  %v1706_v31 = vpop.f32.mrf.mxu2  ;;  %v4154_v47 = vld [vmem:[#allocation2 + $0x34c] sm:$0xf]  ;;  %v3133_v48 = vld [vmem:[#allocation2 + $0x358] sm:$0xf0]  ;;  %v3600_v28 = vor.u32 %v4270_v19, %v3597_v20 }
  0xd2   :  { %1971 = vmatpush.bf16.msra.mxu3 %v3200_v53  ;;  %v1707_v45 = vadd.f32 %v1706_v31, %v1694_v24  ;;  %v1719_v46 = vpop.f32.mrf.mxu3  ;;  %v3008_v53 = vor.u32 %v4122_v43, %v3005_v44  ;;  %v3136_v58 = vor.u32 %v4154_v47, %v3133_v48  ;;  %v3725_v24 = vld [vmem:[#allocation2 + $0x7f8] sm:$0xf0]  ;;  %v4202_v29 = vld [vmem:[#allocation2 + $0x4cc] sm:$0xf] }
  0xd3   :  { %v4234_v31 = vld [vmem:[#allocation2 + $0x5cc] sm:$0xf]  ;;  %v3581_v44 = vld [vmem:[#allocation2 + $0x6d8] sm:$0xf0]  ;;  %v3328_v47 = vor.u32 %v4202_v29, %v3325_v30 }
  0xd4   :  { %1933 = vmatpush.bf16.msra.mxu0 %v2800_v59  ;;  %v4514_v50 = vadd.f32 %v1719_v46, %v1707_v45  ;;  %v1682_v51 = vpop.f32.mrf.mxu0  ;;  %v2861_v59 = vld [vmem:[#allocation2 + $0x138] sm:$0xf0]  ;;  %v4266_v43 = vld [vmem:[#allocation2 + $0x6cc] sm:$0xf]  ;;  %v3456_v48 = vor.u32 %v4234_v31, %v3453_v39 }
  0xd5   :  { %1946 = vmatpush.bf16.msra.mxu1 %v2928_v61  ;;  %1959 = vmatpush.bf16.msra.mxu2 %v3056_v62  ;;  %v1695_v57 = vpop.f32.mrf.mxu1  ;;  %v2989_v61 = vld [vmem:[#allocation2 + $0x238] sm:$0xf0]  ;;  %v4150_v62 = vld [vmem:[#allocation2 + $0x32c] sm:$0xf] }
  0xd6   :  { %1972 = vmatpush.bf16.msra.mxu3 %v3184_v3  ;;  %v2864_v3 = vor.u32 %v4086_v56, %v2861_v59  ;;  %v2992_v4 = vor.u32 %v4118_v60, %v2989_v61  ;;  %v4298_v45 = vld [vmem:[#allocation2 + $0x7cc] sm:$0xf]  ;;  %v3709_v46 = vld [vmem:[#allocation2 + $0x7d8] sm:$0xf0] }
  0xd7   :  { %v4198_v51 = vld [vmem:[#allocation2 + $0x4ac] sm:$0xf]  ;;  %v3712_v54 = vor.u32 %v4298_v45, %v3709_v46  ;;  %v3437_v55 = vld [vmem:[#allocation2 + $0x5b8] sm:$0xf0] }
  0xd8   :  { %1934 = vmatpush.bf16.msra.mxu0 %v2784_v9  ;;  %v3120_v9 = vor.u32 %v4150_v62, %v3117_v63  ;;  %v4262_v56 = vld [vmem:[#allocation2 + $0x6ac] sm:$0xf]  ;;  %v3565_v57 = vld [vmem:[#allocation2 + $0x6b8] sm:$0xf0] }
  0xd9   :  { %1947 = vmatpush.bf16.msra.mxu1 %v2912_v11  ;;  %1960 = vmatpush.bf16.msra.mxu2 %v3040_v12  ;;  %v1708_v8 = vpop.f32.mrf.mxu2  ;;  %v4146_v11 = vld [vmem:[#allocation2 + $0x30c] sm:$0xf]  ;;  %v3101_v12 = vld [vmem:[#allocation2 + $0x318] sm:$0xf0]  ;;  %v3568_v62 = vor.u32 %v4262_v56, %v3565_v57  ;;  %v332_v56 = vperm.slane %v4507_v35, 1 }
  0xda   :  { %1973 = vmatpush.bf16.msra.mxu3 %v3168_v18  ;;  %v1721_v13 = vpop.f32.mrf.mxu3  ;;  %v3469_v18 = vld [vmem:[#allocation2 + $0x5f8] sm:$0xf0]  ;;  %v4194_v63 = vld [vmem:[#allocation2 + $0x48c] sm:$0xf]  ;;  %v3787_v35 = vld [vmem:[%s5000_s3 + $0x70] sm:$0xf] }
  0xdb   :  { %v3693_v59 = vld [vmem:[#allocation2 + $0x7b8] sm:$0xf0]  ;;  %v4290_v5 = vld [vmem:[#allocation2 + $0x78c] sm:$0xf] }
  0xdc   :  { %1935 = vmatpush.bf16.msra.mxu0 %v2768_v25  ;;  %v3104_v25 = vor.u32 %v4146_v11, %v3101_v12  ;;  %v3421_v2 = vld [vmem:[#allocation2 + $0x598] sm:$0xf0]  ;;  %v4190_v8 = vld [vmem:[#allocation2 + $0x46c] sm:$0xf] }
  0xdd   :  { %1948 = vmatpush.bf16.msra.mxu1 %v2896_v26  ;;  %1961 = vmatpush.bf16.msra.mxu2 %v3024_v27  ;;  %v3344_v26 = vor.u32 %v4206_v14, %v3341_v15  ;;  %v3472_v27 = vor.u32 %v4238_v16, %v3469_v18  ;;  %v4222_v10 = vld [vmem:[#allocation2 + $0x56c] sm:$0xf]  ;;  %v3405_v13 = vld [vmem:[#allocation2 + $0x578] sm:$0xf0] }
  0xde   :  { %1974 = vmatpush.bf16.msra.mxu3 %v3152_v36  ;;  %v3728_v36 = vor.u32 %v4302_v23, %v3725_v24  ;;  %v4254_v14 = vld [vmem:[#allocation2 + $0x66c] sm:$0xf]  ;;  %v3533_v15 = vld [vmem:[#allocation2 + $0x678] sm:$0xf0]  ;;  %v3408_v19 = vor.u32 %v4222_v10, %v3405_v13 }
  0xdf   :  { %v4286_v16 = vld [vmem:[#allocation2 + $0x76c] sm:$0xf]  ;;  %v3536_v20 = vor.u32 %v4254_v14, %v3533_v15  ;;  %v3645_v31 = vld [vmem:[#allocation2 + $0x758] sm:$0xf0]  ;;  %v3779_v15 = vld [vmem:[%s5000_s3 + $0x60] sm:$0xf] }
  0xe0   :  { %1936 = vmatpush.bf16.msra.mxu0 %v2752_v49  ;;  %v3584_v49 = vor.u32 %v4266_v43, %v3581_v44  ;;  %v4218_v23 = vld [vmem:[#allocation2 + $0x54c] sm:$0xf]  ;;  %v3245_v46 = vld [vmem:[#allocation2 + $0x438] sm:$0xf0] }
  0xe1   :  { %1949 = vmatpush.bf16.msra.mxu1 %v2880_v52  ;;  %1962 = vmatpush.bf16.msra.mxu2 %v3008_v53  ;;  %v3309_v52 = vld [vmem:[#allocation2 + $0x4b8] sm:$0xf0]  ;;  %v4230_v53 = vld [vmem:[#allocation2 + $0x5ac] sm:$0xf] }
  0xe2   :  { %1975 = vmatpush.bf16.msra.mxu3 %v3136_v58  ;;  %v4294_v58 = vld [vmem:[#allocation2 + $0x7ac] sm:$0xf]  ;;  %v3312_v60 = vor.u32 %v4198_v51, %v3309_v52  ;;  %v3440_v61 = vor.u32 %v4230_v53, %v3437_v55  ;;  %v3373_v51 = vld [vmem:[#allocation2 + $0x538] sm:$0xf0] }
  0xe3   :  { %v3696_v1 = vor.u32 %v4294_v58, %v3693_v59  ;;  %v4282_v30 = vld [vmem:[#allocation2 + $0x74c] sm:$0xf]  ;;  %v3501_v53 = vld [vmem:[#allocation2 + $0x638] sm:$0xf0] }
  0xe4   :  { %1937 = vmatpush.bf16.msra.mxu0 %v2736_v0  ;;  %v3293_v0 = vld [vmem:[#allocation2 + $0x498] sm:$0xf0]  ;;  %v4182_v45 = vld [vmem:[#allocation2 + $0x42c] sm:$0xf] }
  0xe5   :  { %1950 = vmatpush.bf16.msra.mxu1 %v2864_v3  ;;  %1963 = vmatpush.bf16.msra.mxu2 %v2992_v4  ;;  %v4258_v3 = vld [vmem:[#allocation2 + $0x68c] sm:$0xf]  ;;  %v3549_v4 = vld [vmem:[#allocation2 + $0x698] sm:$0xf0]  ;;  %v3248_v57 = vor.u32 %v4182_v45, %v3245_v46  ;;  %v3819_v45 = vld [vmem:[%s5000_s3 + $0xb0] sm:$0xf] }
  0xe6   :  { %1976 = vmatpush.bf16.msra.mxu3 %v3120_v9  ;;  %v3552_v7 = vor.u32 %v4258_v3, %v3549_v4  ;;  %v3277_v9 = vld [vmem:[#allocation2 + $0x478] sm:$0xf0]  ;;  %v4246_v52 = vld [vmem:[#allocation2 + $0x62c] sm:$0xf] }
  0xe7   :  { %v3280_v18 = vor.u32 %v4190_v8, %v3277_v9  ;;  %v3629_v55 = vld [vmem:[#allocation2 + $0x738] sm:$0xf0]  ;;  %v4178_v58 = vld [vmem:[#allocation2 + $0x40c] sm:$0xf]  ;;  %v4336_v8 = vld [vmem:[%s5000_s3 + $0xf4] sm:$0xf0] }
  0xe8   :  { %1938 = vmatpush.bf16.msra.mxu0 %v2720_v17  ;;  %v4520_v6 = vpop.f32.mrf.mxu0  ;;  %v3661_v17 = vld [vmem:[#allocation2 + $0x778] sm:$0xf0]  ;;  %v4274_v3 = vld [vmem:[#allocation2 + $0x70c] sm:$0xf] }
  0xe9   :  { %1951 = vmatpush.bf16.msra.mxu1 %v2848_v21  ;;  %1964 = vmatpush.bf16.msra.mxu2 %v2976_v22  ;;  %v4186_v21 = vld [vmem:[#allocation2 + $0x44c] sm:$0xf]  ;;  %v3261_v22 = vld [vmem:[#allocation2 + $0x458] sm:$0xf0] }
  0xea   :  { %1977 = vmatpush.bf16.msra.mxu3 %v3104_v25  ;;  %v3664_v25 = vor.u32 %v4286_v16, %v3661_v17  ;;  %v4318_v16 = vld [vmem:[%s5000_s3 + $0x64] sm:$0xf0]  ;;  %v3843_v17 = vld [vmem:[%s5000_s3 + $0xe0] sm:$0xf] }
  0xeb   :  { %1939 = vmatmul.bf16.vlgmr.msra.gmra.mxu0 %v4467_v34  ;;  %v3677_v34 = vld [vmem:[#allocation2 + $0x798] sm:$0xf0]  ;;  %v4522_v11 = vpop.f32.mrf.mxu1 }
  0xec   :  { %1983 = vmatpush.bf16.msrb.mxu0 %v3344_v26  ;;  %1965 = vmatmul.bf16.vlgmr.msra.gmra.mxu2 %v4465_v33  ;;  %v4226_v33 = vld [vmem:[#allocation2 + $0x58c] sm:$0xf]  ;;  %v3680_v12 = vor.u32 %v4290_v5, %v3677_v34  ;;  %v3389_v26 = vld [vmem:[#allocation2 + $0x558] sm:$0xf0]  ;;  %v4320_v34 = vld [vmem:[%s5000_s3 + $0x74] sm:$0xf0] }
  0xed   :  { %1996 = vmatpush.bf16.msrb.mxu1 %v3472_v27  ;;  %2009 = vmatpush.bf16.msrb.mxu2 %v3600_v28  ;;  %v4250_v27 = vld [vmem:[#allocation2 + $0x64c] sm:$0xf]  ;;  %v3517_v28 = vld [vmem:[#allocation2 + $0x658] sm:$0xf0]  ;;  %v3392_v43 = vor.u32 %v4218_v23, %v3389_v26  ;;  %v3788_v13 = vor.u32 %v4320_v34, %v3787_v35  ;;  %v3835_v23 = vld [vmem:[%s5000_s3 + $0xd0] sm:$0xf] }
  0xee   :  { %2022 = vmatpush.bf16.msrb.mxu3 %v3728_v36  ;;  %1952 = vmatmul.bf16.vlgmr.msra.gmra.mxu1 %v4471_v42  ;;  %v3424_v42 = vor.u32 %v4226_v33, %v3421_v2  ;;  %v3264_v36 = vor.u32 %v4186_v21, %v3261_v22  ;;  %v3520_v44 = vor.u32 %v4250_v27, %v3517_v28  ;;  %v3485_v2 = vld [vmem:[#allocation2 + $0x618] sm:$0xf0]  ;;  %v3771_v21 = vld [vmem:[%s5000_s3 + $0x50] sm:$0xf]  ;;  %v4316_v22 = vld [vmem:[%s5000_s3 + $0x54] sm:$0xf0] }
  0xef   :  { %1978 = vmatmul.bf16.vlgmr.msra.gmra.mxu3 %v4469_v41  ;;  %v3296_v41 = vor.u32 %v4194_v63, %v3293_v0  ;;  %v4524_v24 = vpop.f32.mrf.mxu2  ;;  %v3357_v63 = vld [vmem:[#allocation2 + $0x518] sm:$0xf0]  ;;  %v3827_v27 = vld [vmem:[%s5000_s3 + $0xc0] sm:$0xf]  ;;  %v3915_v28 = vld [vmem:[%s5000_s3 + $0x170] sm:$0xf] }
  0xf0   :  { %1984 = vmatpush.bf16.msrb.mxu0 %v3328_v47  ;;  %v1734_v39 = vpop.f32.mrf.mxu0  ;;  %v4214_v47 = vld [vmem:[#allocation2 + $0x52c] sm:$0xf]  ;;  %v3613_v5 = vld [vmem:[#allocation2 + $0x718] sm:$0xf0]  ;;  %v3803_v35 = vld [vmem:[%s5000_s3 + $0x90] sm:$0xf] }
  0xf1   :  { %1997 = vmatpush.bf16.msrb.mxu1 %v3456_v48  ;;  %2010 = vmatpush.bf16.msrb.mxu2 %v3584_v49  ;;  %v3648_v49 = vor.u32 %v4282_v30, %v3645_v31  ;;  %v3376_v59 = vor.u32 %v4214_v47, %v3373_v51  ;;  %v4350_v51 = vld [vmem:[%s5000_s3 + $0x164] sm:$0xf0] }
  0xf2   :  { %2023 = vmatpush.bf16.msrb.mxu3 %v3712_v54  ;;  %v4526_v29 = vpop.f32.mrf.mxu3  ;;  %v4278_v54 = vld [vmem:[#allocation2 + $0x72c] sm:$0xf] }
  0xf3   :  { %v1747_v48 = vpop.f32.mrf.mxu1  ;;  %v3632_v33 = vor.u32 %v4278_v54, %v3629_v55 }
  0xf4   :  { %1985 = vmatpush.bf16.msrb.mxu0 %v3312_v60  ;;  %v3504_v60 = vor.u32 %v4246_v52, %v3501_v53  ;;  %v4328_v48 = vld [vmem:[%s5000_s3 + $0xb4] sm:$0xf0] }
  0xf5   :  { %1998 = vmatpush.bf16.msrb.mxu1 %v3440_v61  ;;  %2011 = vmatpush.bf16.msrb.mxu2 %v3568_v62  ;;  %v3229_v61 = vld [vmem:[#allocation2 + $0x418] sm:$0xf0]  ;;  %v4210_v62 = vld [vmem:[#allocation2 + $0x50c] sm:$0xf]  ;;  %v3820_v55 = vor.u32 %v4328_v48, %v3819_v45  ;;  %v4340_v45 = vld [vmem:[%s5000_s3 + $0x114] sm:$0xf0] }
  0xf6   :  { %2024 = vmatpush.bf16.msrb.mxu3 %v3696_v1  ;;  %v4242_v1 = vld [vmem:[#allocation2 + $0x60c] sm:$0xf]  ;;  %v3360_v9 = vor.u32 %v4210_v62, %v3357_v63  ;;  %v3899_v62 = vld [vmem:[%s5000_s3 + $0x150] sm:$0xf]  ;;  %v4348_v63 = vld [vmem:[%s5000_s3 + $0x154] sm:$0xf0] }
  0xf7   :  { %v1760_v0 = vpop.f32.mrf.mxu2  ;;  %v3488_v10 = vor.u32 %v4242_v1, %v3485_v2  ;;  %v3773_v48 = vld [vmem:[%s5000_s3 + $0x58] sm:$0xf0] }
  0xf8   :  { %1986 = vmatpush.bf16.msrb.mxu0 %v3296_v41  ;;  %v1733_v41 = vadd.f32 %v4520_v6, %v332_v56  ;;  %v3747_v56 = vld [vmem:[%s5000_s3 + $0x20] sm:$0xf]  ;;  %v3900_v0 = vor.u32 %v4348_v63, %v3899_v62  ;;  %v4329_v62 = vld [vmem:[%s5000_s3 + $0xc4] sm:$0xf]  ;;  %v3829_v63 = vld [vmem:[%s5000_s3 + $0xc8] sm:$0xf0] }
  0xf9   :  { %1999 = vmatpush.bf16.msrb.mxu1 %v3424_v42  ;;  %2012 = vmatpush.bf16.msrb.mxu2 %v3552_v7  ;;  %v3232_v42 = vor.u32 %v4178_v58, %v3229_v61  ;;  %v3851_v7 = vld [vmem:[%s5000_s3 + $0xf0] sm:$0xf]  ;;  %v3811_v58 = vld [vmem:[%s5000_s3 + $0xa0] sm:$0xf] }
  0xfa   :  { %2025 = vmatpush.bf16.msrb.mxu3 %v3680_v12  ;;  %v1773_v4 = vpop.f32.mrf.mxu3  ;;  %v3616_v12 = vor.u32 %v4274_v3, %v3613_v5  ;;  %v3852_v14 = vor.u32 %v4336_v8, %v3851_v7  ;;  %v1746_v6 = vadd.f32 %v4522_v11, %v1733_v41  ;;  %v3780_v11 = vor.u32 %v4318_v16, %v3779_v15  ;;  %v4308_v5 = vld [vmem:[%s5000_s3 + $0x14] sm:$0xf0]  ;;  %v4346_v7 = vld [vmem:[%s5000_s3 + $0x144] sm:$0xf0]  ;;  %v4319_v16 = vld [vmem:[%s5000_s3 + $0x74] sm:$0xf] }
  0xfb   :  { %v3739_v4 = vld [vmem:[%s5000_s3 + $0x10] sm:$0xf]  ;;  %v4324_v41 = vld [vmem:[%s5000_s3 + $0x94] sm:$0xf0]  ;;  %v4322_v15 = vld [vmem:[%s5000_s3 + $0x84] sm:$0xf0] }
  0xfc   :  { %1987 = vmatpush.bf16.msrb.mxu0 %v3280_v18  ;;  %v4334_v18 = vld [vmem:[%s5000_s3 + $0xe4] sm:$0xf0] }
  0xfd   :  { %2000 = vmatpush.bf16.msrb.mxu1 %v3408_v19  ;;  %2013 = vmatpush.bf16.msrb.mxu2 %v3536_v20  ;;  %v3844_v19 = vor.u32 %v4334_v18, %v3843_v17  ;;  %v1759_v20 = vadd.f32 %v4524_v24, %v1746_v6  ;;  %v3772_v24 = vor.u32 %v4316_v22, %v3771_v21  ;;  %v3795_v6 = vld [vmem:[%s5000_s3 + $0x80] sm:$0xf]  ;;  %v3789_v18 = vld [vmem:[%s5000_s3 + $0x78] sm:$0xf0]  ;;  %v4335_v21 = vld [vmem:[%s5000_s3 + $0xf4] sm:$0xf] }
  0xfe   :  { %2026 = vmatpush.bf16.msrb.mxu3 %v3664_v25  ;;  %v3853_v22 = vld [vmem:[%s5000_s3 + $0xf8] sm:$0xf0] }
  0xff   :  { %v1772_v25 = vadd.f32 %v4526_v29, %v1759_v20  ;;  %v4352_v29 = vld [vmem:[%s5000_s3 + $0x174] sm:$0xf0] }
 0x100   :  { %1988 = vmatpush.bf16.msrb.mxu0 %v3264_v36  ;;  %v3916_v30 = vor.u32 %v4352_v29, %v3915_v28  ;;  %v4344_v20 = vld [vmem:[%s5000_s3 + $0x134] sm:$0xf0]  ;;  %v3875_v28 = vld [vmem:[%s5000_s3 + $0x120] sm:$0xf]  ;;  %v4333_v29 = vld [vmem:[%s5000_s3 + $0xe4] sm:$0xf] }
 0x101   :  { %2001 = vmatpush.bf16.msrb.mxu1 %v3392_v43  ;;  %2014 = vmatpush.bf16.msrb.mxu2 %v3520_v44  ;;  %v3755_v43 = vld [vmem:[%s5000_s3 + $0x30] sm:$0xf]  ;;  %v4312_v44 = vld [vmem:[%s5000_s3 + $0x34] sm:$0xf0] }
 0x102   :  { %2027 = vmatpush.bf16.msrb.mxu3 %v3648_v49  ;;  %v3907_v49 = vld [vmem:[%s5000_s3 + $0x160] sm:$0xf]  ;;  %v3756_v53 = vor.u32 %v4312_v44, %v3755_v43  ;;  %v3867_v44 = vld [vmem:[%s5000_s3 + $0x110] sm:$0xf] }
 0x103   :  { %v3908_v52 = vor.u32 %v4350_v51, %v3907_v49  ;;  %v4331_v49 = vld [vmem:[%s5000_s3 + $0xd4] sm:$0xf]  ;;  %v3868_v51 = vor.u32 %v4340_v45, %v3867_v44  ;;  %v3797_v44 = vld [vmem:[%s5000_s3 + $0x88] sm:$0xf0] }
 0x104   :  { %1989 = vmatpush.bf16.msrb.mxu0 %v3248_v57  ;;  %v4310_v57 = vld [vmem:[%s5000_s3 + $0x24] sm:$0xf0] }
 0x105   :  { %2002 = vmatpush.bf16.msrb.mxu1 %v3376_v59  ;;  %2015 = vmatpush.bf16.msrb.mxu2 %v3504_v60  ;;  %v4326_v60 = vld [vmem:[%s5000_s3 + $0xa4] sm:$0xf0] }
 0x106   :  { %2028 = vmatpush.bf16.msrb.mxu3 %v3632_v33  ;;  %v3748_v33 = vor.u32 %v4310_v57, %v3747_v56  ;;  %v3812_v3 = vor.u32 %v4326_v60, %v3811_v58  ;;  %v3917_v56 = vld [vmem:[%s5000_s3 + $0x178] sm:$0xf0]  ;;  %v3765_v60 = vld [vmem:[%s5000_s3 + $0x48] sm:$0xf0] }
 0x108   :  { %1990 = vmatpush.bf16.msrb.mxu0 %v3232_v42  ;;  %v1784_v36 = vpop.f32.mrf.mxu0  ;;  %v3891_v42 = vld [vmem:[%s5000_s3 + $0x140] sm:$0xf] }
 0x109   :  { %2003 = vmatpush.bf16.msrb.mxu1 %v3360_v9  ;;  %2016 = vmatpush.bf16.msrb.mxu2 %v3488_v10  ;;  %v1785_v46 = vadd.f32 %v1784_v36, %v1772_v25  ;;  %v3892_v8 = vor.u32 %v4346_v7, %v3891_v42  ;;  %v3740_v10 = vor.u32 %v4308_v5, %v3739_v4  ;;  %v2035_v25 = vmax.f32 %v4514_v50, 0.0  ;;  %v4342_v50 = vld [vmem:[%s5000_s3 + $0x124] sm:$0xf0]  ;;  %v4327_v4 = vld [vmem:[%s5000_s3 + $0xb4] sm:$0xf] }
 0x10a   :  { %2029 = vmatpush.bf16.msrb.mxu3 %v3616_v12  ;;  %v3731_v12 = vld [vmem:[%s5000_s3] sm:$0xf]  ;;  %v3909_v42 = vld [vmem:[%s5000_s3 + $0x168] sm:$0xf0] }
 0x10b   :  { %1991 = vmatmul.bf16.vlgmr.msrb.gmra.mxu0 %v4482_v37  ;;  %v4332_v37 = vld [vmem:[%s5000_s3 + $0xd4] sm:$0xf0]  ;;  %v1797_v47 = vpop.f32.mrf.mxu1 }
 0x10c   :  { %2433 = vmatpush.bf16.msra.mxu0 %v3788_v13  ;;  %2004 = vmatmul.bf16.vlgmr.msrb.gmra.mxu1 %v4486_v40  ;;  %v3836_v26 = vor.u32 %v4332_v37, %v3835_v23  ;;  %v4314_v40 = vld [vmem:[%s5000_s3 + $0x44] sm:$0xf0]  ;;  %v1798_v54 = vadd.f32 %v1797_v47, %v1785_v46  ;;  %v4315_v47 = vld [vmem:[%s5000_s3 + $0x54] sm:$0xf] }
 0x10d   :  { %2446 = vmatpush.bf16.msra.mxu1 %v3852_v14  ;;  %2017 = vmatmul.bf16.vlgmr.msrb.gmra.mxu2 %v4480_v32  ;;  %v3763_v32 = vld [vmem:[%s5000_s3 + $0x40] sm:$0xf]  ;;  %v4306_v13 = vld [vmem:[%s5000_s3 + $0x4] sm:$0xf0]  ;;  %v3804_v14 = vor.u32 %v4324_v41, %v3803_v35  ;;  %v3776_v57 = vor.u32 %v4315_v47, %v3773_v48  ;;  %v3821_v35 = vld [vmem:[%s5000_s3 + $0xb8] sm:$0xf0] }
 0x10e   :  { %2030 = vmatmul.bf16.vlgmr.msrb.gmra.mxu3 %v4484_v38  ;;  %v4330_v38 = vld [vmem:[%s5000_s3 + $0xc4] sm:$0xf0]  ;;  %v3764_v31 = vor.u32 %v4314_v40, %v3763_v32  ;;  %2459 = vmatpush.bf16.msra.mxu2 %v3916_v30  ;;  %v3792_v32 = vor.u32 %v4319_v16, %v3789_v18  ;;  %v4317_v40 = vld [vmem:[%s5000_s3 + $0x64] sm:$0xf]  ;;  %v3845_v30 = vld [vmem:[%s5000_s3 + $0xe8] sm:$0xf0] }
 0x10f   :  { %v3828_v39 = vor.u32 %v4330_v38, %v3827_v27  ;;  %v1810_v59 = vpop.f32.mrf.mxu2  ;;  %v3856_v27 = vor.u32 %v4335_v21, %v3853_v22  ;;  %v3781_v38 = vld [vmem:[%s5000_s3 + $0x68] sm:$0xf0]  ;;  %v3848_v46 = vor.u32 %v4333_v29, %v3845_v30  ;;  %v4349_v41 = vld [vmem:[%s5000_s3 + $0x164] sm:$0xf]  ;;  %v3901_v16 = vld [vmem:[%s5000_s3 + $0x158] sm:$0xf0] }
 0x110   :  { %2434 = vmatpush.bf16.msra.mxu0 %v3780_v11  ;;  %v1811_v1 = vadd.f32 %v1810_v59, %v1798_v54  ;;  %v1786_v2 = vpop.f32.mrf.mxu0  ;;  %v3784_v43 = vor.u32 %v4317_v40, %v3781_v38  ;;  %v4338_v54 = vld [vmem:[%s5000_s3 + $0x104] sm:$0xf0]  ;;  %v4313_v59 = vld [vmem:[%s5000_s3 + $0x44] sm:$0xf]  ;;  %v3912_v7 = vor.u32 %v4349_v41, %v3909_v42  ;;  %v3741_v21 = vld [vmem:[%s5000_s3 + $0x18] sm:$0xf0] }
 0x111   :  { %2447 = vmatpush.bf16.msra.mxu1 %v3844_v19  ;;  %v3883_v19 = vld [vmem:[%s5000_s3 + $0x130] sm:$0xf]  ;;  %v4311_v2 = vld [vmem:[%s5000_s3 + $0x34] sm:$0xf]  ;;  %v3733_v29 = vld [vmem:[%s5000_s3 + $0x8] sm:$0xf0] }
 0x112   :  { %2460 = vmatpush.bf16.msra.mxu2 %v3908_v52  ;;  %v1823_v61 = vpop.f32.mrf.mxu3  ;;  %v3884_v23 = vor.u32 %v4344_v20, %v3883_v19  ;;  %v3837_v52 = vld [vmem:[%s5000_s3 + $0xd8] sm:$0xf0]  ;;  %v4307_v20 = vld [vmem:[%s5000_s3 + $0x14] sm:$0xf]  ;;  %v4341_v48 = vld [vmem:[%s5000_s3 + $0x124] sm:$0xf] }
 0x113   :  { %v1799_v34 = vpop.f32.mrf.mxu1  ;;  %v1824_v9 = vadd.f32 %v1823_v61, %v1811_v1  ;;  %v3840_v58 = vor.u32 %v4331_v49, %v3837_v52  ;;  %v3832_v1 = vor.u32 %v4329_v62, %v3829_v63  ;;  %v4323_v22 = vld [vmem:[%s5000_s3 + $0x94] sm:$0xf]  ;;  %v3744_v40 = vor.u32 %v4307_v20, %v3741_v21  ;;  %v3877_v49 = vld [vmem:[%s5000_s3 + $0x128] sm:$0xf0]  ;;  %v4337_v62 = vld [vmem:[%s5000_s3 + $0x104] sm:$0xf] }
 0x114   :  { %2435 = vmatpush.bf16.msra.mxu0 %v3772_v24  ;;  %v3732_v24 = vor.u32 %v4306_v13, %v3731_v12  ;;  %v3749_v12 = vld [vmem:[%s5000_s3 + $0x28] sm:$0xf0]  ;;  %v4325_v13 = vld [vmem:[%s5000_s3 + $0xa4] sm:$0xf]  ;;  %v4343_v30 = vld [vmem:[%s5000_s3 + $0x134] sm:$0xf] }
 0x115   :  { %2448 = vmatpush.bf16.msra.mxu1 %v3836_v26  ;;  %v2036_v37 = vmax.f32 %v1824_v9, 0.0  ;;  %v3796_v26 = vor.u32 %v4322_v15, %v3795_v6  ;;  %v3824_v9 = vor.u32 %v4327_v4, %v3821_v35  ;;  %v4347_v15 = vld [vmem:[%s5000_s3 + $0x154] sm:$0xf]  ;;  %v3861_v63 = vld [vmem:[%s5000_s3 + $0x108] sm:$0xf0] }
 0x116   :  { %2461 = vmatpush.bf16.msra.mxu2 %v3900_v0  ;;  %v3904_v18 = vor.u32 %v4347_v15, %v3901_v16  ;;  %v3963_v4 = vld [vmem:[%s5000_s3 + $0x1d0] sm:$0xf]  ;;  %v4358_v20 = vld [vmem:[%s5000_s3 + $0x1a4] sm:$0xf0] }
 0x117   :  { %v1812_v17 = vpop.f32.mrf.mxu2  ;;  %v4694_v36 = vpack.c.bf16 %v2036_v37, %v2036_v37  ;;  %v3805_v37 = vld [vmem:[%s5000_s3 + $0x98] sm:$0xf0] }
 0x118   :  { %2436 = vmatpush.bf16.msra.mxu0 %v3764_v31  ;;  %v3876_v31 = vor.u32 %v4342_v50, %v3875_v28  ;;  %v4305_v28 = vld [vmem:[%s5000_s3 + $0x4] sm:$0xf]  ;;  %v3808_v50 = vor.u32 %v4323_v22, %v3805_v37 }
 0x119   :  { %2449 = vmatpush.bf16.msra.mxu1 %v3828_v39  ;;  %v4696_v39 = vpack.c.bf16 %v2035_v25, %v2035_v25  ;;  %v4345_v25 = vld [vmem:[%s5000_s3 + $0x144] sm:$0xf] }
 0x11a   :  { %2462 = vmatpush.bf16.msra.mxu2 %v3892_v8  ;;  %v1825_v11 = vpop.f32.mrf.mxu3 }
 0x11c   :  { %2437 = vmatpush.bf16.msra.mxu0 %v3756_v53  ;;  %v3859_v53 = vld [vmem:[%s5000_s3 + $0x100] sm:$0xf] }
 0x11d   :  { %2450 = vmatpush.bf16.msra.mxu1 %v3820_v55  ;;  %v4351_v55 = vld [vmem:[%s5000_s3 + $0x174] sm:$0xf]  ;;  %v3860_v61 = vor.u32 %v4338_v54, %v3859_v53  ;;  %v3736_v53 = vor.u32 %v4305_v28, %v3733_v29  ;;  %v4368_v54 = vld [vmem:[%s5000_s3 + $0x1f4] sm:$0xf0] }
 0x11e   :  { %2463 = vmatpush.bf16.msra.mxu2 %v3884_v23  ;;  %v3920_v0 = vor.u32 %v4351_v55, %v3917_v56  ;;  %v4367_v28 = vld [vmem:[%s5000_s3 + $0x1f4] sm:$0xf] }
 0x120   :  { %2438 = vmatpush.bf16.msra.mxu0 %v3748_v33  ;;  %v3768_v33 = vor.u32 %v4313_v59, %v3765_v60  ;;  %v3869_v59 = vld [vmem:[%s5000_s3 + $0x118] sm:$0xf0] }
 0x121   :  { %2451 = vmatpush.bf16.msra.mxu1 %v3812_v3  ;;  %v3757_v3 = vld [vmem:[%s5000_s3 + $0x38] sm:$0xf0] }
 0x122   :  { %2464 = vmatpush.bf16.msra.mxu2 %v3876_v31  ;;  %v3760_v8 = vor.u32 %v4311_v2, %v3757_v3  ;;  %v3885_v31 = vld [vmem:[%s5000_s3 + $0x138] sm:$0xf0]  ;;  %v3971_v2 = vld [vmem:[%s5000_s3 + $0x1e0] sm:$0xf] }
 0x124   :  { %2439 = vmatpush.bf16.msra.mxu0 %v3740_v10  ;;  %v4309_v10 = vld [vmem:[%s5000_s3 + $0x24] sm:$0xf] }
 0x125   :  { %2452 = vmatpush.bf16.msra.mxu1 %v3804_v14  ;;  %v3813_v14 = vld [vmem:[%s5000_s3 + $0xa8] sm:$0xf0]  ;;  %v3752_v11 = vor.u32 %v4309_v10, %v3749_v12 }
 0x126   :  { %2465 = vmatpush.bf16.msra.mxu2 %v3868_v51  ;;  %v3816_v19 = vor.u32 %v4325_v13, %v3813_v14  ;;  %v3979_v51 = vld [vmem:[%s5000_s3 + $0x1f0] sm:$0xf] }
 0x127   :  { %v3980_v56 = vor.u32 %v4368_v54, %v3979_v51  ;;  %v3947_v14 = vld [vmem:[%s5000_s3 + $0x1b0] sm:$0xf] }
 0x128   :  { %2440 = vmatpush.bf16.msra.mxu0 %v3732_v24  ;;  %v1836_v5 = vpop.f32.mrf.mxu0 }
 0x129   :  { %2453 = vmatpush.bf16.msra.mxu1 %v3796_v26  ;;  %v3893_v26 = vld [vmem:[%s5000_s3 + $0x148] sm:$0xf0]  ;;  %2472 = vmatpush.bf16.msra.mxu3 %v3980_v56 }
 0x12a   :  { %2466 = vmatpush.bf16.msra.mxu2 %v3860_v61 }
 0x12b   :  { %2441 = vmatmul.bf16.vlgmr.msra.gmra.mxu0 %v4696_v39  ;;  %v4754_v34 = vpop.f32.mrf.mxu1 }
 0x12c   :  { %2485 = vmatpush.bf16.msrb.mxu0 %v3792_v32  ;;  %2454 = vmatmul.bf16.vlgmr.msra.gmra.mxu1 %v4694_v36  ;;  %v3896_v32 = vor.u32 %v4345_v25, %v3893_v26  ;;  %v4356_v25 = vld [vmem:[%s5000_s3 + $0x194] sm:$0xf0] }
 0x12d   :  { %2498 = vmatpush.bf16.msrb.mxu1 %v3856_v27  ;;  %v4801_v27 = vld [vmem:[%s4999_s2] sm:$0xf] }
 0x12e   :  { %2511 = vmatpush.bf16.msrb.mxu2 %v3920_v0  ;;  %v333_v38 = vperm.slane %v4801_v27, 2 }
 0x12f   :  { %v1862_v6 = vpop.f32.mrf.mxu2 }
 0x130   :  { %2486 = vmatpush.bf16.msrb.mxu0 %v3784_v43  ;;  %v1838_v23 = vpop.f32.mrf.mxu0  ;;  %v4321_v43 = vld [vmem:[%s5000_s3 + $0x84] sm:$0xf]  ;;  %v1837_v52 = vadd.f32 %v1836_v5, %v333_v38 }
 0x131   :  { %2499 = vmatpush.bf16.msrb.mxu1 %v3848_v46  ;;  %v3888_v46 = vor.u32 %v4343_v30, %v3885_v31  ;;  %v3800_v55 = vor.u32 %v4321_v43, %v3797_v44  ;;  %v4365_v30 = vld [vmem:[%s5000_s3 + $0x1e4] sm:$0xf]  ;;  %v3973_v31 = vld [vmem:[%s5000_s3 + $0x1e8] sm:$0xf0] }
 0x132   :  { %2512 = vmatpush.bf16.msrb.mxu2 %v3912_v7  ;;  %v1875_v17 = vpop.f32.mrf.mxu3  ;;  %v1850_v60 = vadd.f32 %v4754_v34, %v1837_v52  ;;  %v3955_v7 = vld [vmem:[%s5000_s3 + $0x1c0] sm:$0xf]  ;;  %v3976_v44 = vor.u32 %v4365_v30, %v3973_v31  ;;  %v4361_v52 = vld [vmem:[%s5000_s3 + $0x1c4] sm:$0xf]  ;;  %v4384_v30 = vld [vmem:[%s5002_s5 + $0x78] sm:$0xff] }
 0x133   :  { %v1851_v24 = vpop.f32.mrf.mxu1  ;;  %v4375_v31 = vld [vmem:[%s5002_s5 + $0x30] sm:$0xff] }
 0x134   :  { %2487 = vmatpush.bf16.msrb.mxu0 %v3776_v57  ;;  %v3880_v57 = vor.u32 %v4341_v48, %v3877_v49  ;;  %v1863_v0 = vadd.f32 %v1862_v6, %v1850_v60  ;;  %v4360_v6 = vld [vmem:[%s5000_s3 + $0x1b4] sm:$0xf0]  ;;  %v3931_v24 = vld [vmem:[%s5000_s3 + $0x190] sm:$0xf] }
 0x135   :  { %2500 = vmatpush.bf16.msrb.mxu1 %v3840_v58  ;;  %v4339_v58 = vld [vmem:[%s5000_s3 + $0x114] sm:$0xf]  ;;  %v3932_v26 = vor.u32 %v4356_v25, %v3931_v24 }
 0x136   :  { %2513 = vmatpush.bf16.msrb.mxu2 %v3904_v18  ;;  %v3872_v61 = vor.u32 %v4339_v58, %v3869_v59  ;;  %v3948_v18 = vor.u32 %v4360_v6, %v3947_v14  ;;  %v3949_v58 = vld [vmem:[%s5000_s3 + $0x1b8] sm:$0xf0]  ;;  %v334_v59 = vperm.slane %v4801_v27, 3 }
 0x137   :  { %v1864_v45 = vpop.f32.mrf.mxu2  ;;  %v3933_v27 = vld [vmem:[%s5000_s3 + $0x198] sm:$0xf0] }
 0x138   :  { %2488 = vmatpush.bf16.msrb.mxu0 %v3768_v33  ;;  %v3864_v33 = vor.u32 %v4337_v62, %v3861_v63  ;;  %v3941_v62 = vld [vmem:[%s5000_s3 + $0x1a8] sm:$0xf0] }
 0x139   :  { %2501 = vmatpush.bf16.msrb.mxu1 %v3832_v1  ;;  %v1876_v1 = vadd.f32 %v1875_v17, %v1863_v0 }
 0x13a   :  { %2514 = vmatpush.bf16.msrb.mxu2 %v3896_v32  ;;  %v1877_v47 = vpop.f32.mrf.mxu3  ;;  %v3923_v32 = vld [vmem:[%s5000_s3 + $0x180] sm:$0xf] }
 0x13b   :  { %v3965_v47 = vld [vmem:[%s5000_s3 + $0x1d8] sm:$0xf0] }
 0x13c   :  { %2489 = vmatpush.bf16.msrb.mxu0 %v3760_v8  ;;  %v4362_v8 = vld [vmem:[%s5000_s3 + $0x1c4] sm:$0xf0] }
 0x13d   :  { %2502 = vmatpush.bf16.msrb.mxu1 %v3824_v9  ;;  %v3956_v10 = vor.u32 %v4362_v8, %v3955_v7 }
 0x13e   :  { %2515 = vmatpush.bf16.msrb.mxu2 %v3888_v46  ;;  %v4363_v46 = vld [vmem:[%s5000_s3 + $0x1d4] sm:$0xf] }
 0x13f   :  { %v3968_v48 = vor.u32 %v4363_v46, %v3965_v47  ;;  %v4373_v46 = vld [vmem:[%s5002_s5 + $0x20] sm:$0xff]  ;;  %v4372_v47 = vld [vmem:[%s5002_s5 + $0x18] sm:$0xff] }
 0x140   :  { %2490 = vmatpush.bf16.msrb.mxu0 %v3752_v11 }
 0x141   :  { %2503 = vmatpush.bf16.msrb.mxu1 %v3816_v19  ;;  %v3939_v19 = vld [vmem:[%s5000_s3 + $0x1a0] sm:$0xf] }
 0x142   :  { %2516 = vmatpush.bf16.msrb.mxu2 %v3880_v57  ;;  %v3940_v23 = vor.u32 %v4358_v20, %v3939_v19  ;;  %v4359_v57 = vld [vmem:[%s5000_s3 + $0x1b4] sm:$0xf] }
 0x143   :  { %v3952_v60 = vor.u32 %v4359_v57, %v3949_v58  ;;  %v4380_v57 = vld [vmem:[%s5002_s5 + $0x58] sm:$0xff]  ;;  %v4379_v58 = vld [vmem:[%s5002_s5 + $0x50] sm:$0xff] }
 0x144   :  { %2491 = vmatpush.bf16.msrb.mxu0 %v3744_v40  ;;  %v4354_v40 = vld [vmem:[%s5000_s3 + $0x184] sm:$0xf0] }
 0x145   :  { %2504 = vmatpush.bf16.msrb.mxu1 %v3808_v50  ;;  %v3924_v38 = vor.u32 %v4354_v40, %v3923_v32  ;;  %v3981_v50 = vld [vmem:[%s5000_s3 + $0x1f8] sm:$0xf0] }
 0x146   :  { %2517 = vmatpush.bf16.msrb.mxu2 %v3872_v61  ;;  %v3984_v29 = vor.u32 %v4367_v28, %v3981_v50  ;;  %v4357_v61 = vld [vmem:[%s5000_s3 + $0x1a4] sm:$0xf] }
 0x148   :  { %2492 = vmatpush.bf16.msrb.mxu0 %v3736_v53  ;;  %v1888_v5 = vpop.f32.mrf.mxu0  ;;  %v3957_v53 = vld [vmem:[%s5000_s3 + $0x1c8] sm:$0xf0] }
 0x149   :  { %2505 = vmatpush.bf16.msrb.mxu1 %v3800_v55  ;;  %v1889_v35 = vadd.f32 %v1888_v5, %v1876_v1  ;;  %v3960_v55 = vor.u32 %v4361_v52, %v3957_v53  ;;  %v4355_v1 = vld [vmem:[%s5000_s3 + $0x194] sm:$0xf]  ;;  %v4370_v53 = vld [vmem:[%s5002_s5 + $0x8] sm:$0xff] }
 0x14a   :  { %2518 = vmatpush.bf16.msrb.mxu2 %v3864_v33  ;;  %v3944_v33 = vor.u32 %v4357_v61, %v3941_v62 }
 0x14b   :  { %2493 = vmatmul.bf16.vlgmr.msrb.gmra.mxu0 %v4696_v39  ;;  %v4366_v39 = vld [vmem:[%s5000_s3 + $0x1e4] sm:$0xf0]  ;;  %v1901_v34 = vpop.f32.mrf.mxu1 }
 0x14c   :  { %2506 = vmatmul.bf16.vlgmr.msrb.gmra.mxu1 %v4694_v36  ;;  %v3972_v3 = vor.u32 %v4366_v39, %v3971_v2  ;;  %v4364_v36 = vld [vmem:[%s5000_s3 + $0x1d4] sm:$0xf0]  ;;  %v1902_v42 = vadd.f32 %v1901_v34, %v1889_v35  ;;  %v3936_v39 = vor.u32 %v4355_v1, %v3933_v27 }
 0x14d   :  { %v3964_v41 = vor.u32 %v4364_v36, %v3963_v4  ;;  %v3925_v4 = vld [vmem:[%s5000_s3 + $0x188] sm:$0xf0]  ;;  %2686 = vmatpush.bf16.msra.mxu1 %v4384_v30 }
 0x14e   :  { %2473 = vmatpush.bf16.msra.mxu3 %v3972_v3  ;;  %v4353_v3 = vld [vmem:[%s5000_s3 + $0x184] sm:$0xf] }
 0x14f   :  { %v1914_v9 = vpop.f32.mrf.mxu2  ;;  %v3928_v5 = vor.u32 %v4353_v3, %v3925_v4 }
 0x150   :  { %v1915_v12 = vadd.f32 %v1914_v9, %v1902_v42  ;;  %v1890_v16 = vpop.f32.mrf.mxu0 }
 0x152   :  { %2474 = vmatpush.bf16.msra.mxu3 %v3964_v41  ;;  %v1927_v13 = vpop.f32.mrf.mxu3 }
 0x153   :  { %v1928_v15 = vadd.f32 %v1927_v13, %v1915_v12  ;;  %v1903_v17 = vpop.f32.mrf.mxu1 }
 0x155   :  { %v2037_v11 = vmax.f32 %v1928_v15, 0.0 }
 0x156   :  { %2475 = vmatpush.bf16.msra.mxu3 %v3956_v10 }
 0x157   :  { %v2041_v21 = vpack.c.bf16 %v2037_v11, %v2037_v11  ;;  %v1916_v22 = vpop.f32.mrf.mxu2  ;;  %v2107_v11 = vld [vmem:[%s5001_s4] sm:$0x3] }
 0x158   :  { %v2109_v19 = vperm.slane %v2107_v11, 0  ;;  %v2110_v25 = vperm.slane %v2107_v11, 1 }
 0x159   :  { %2467 = vmatmul.bf16.vlgmr.msra.gmra.mxu2 %v2041_v21 }
 0x15a   :  { %2476 = vmatpush.bf16.msra.mxu3 %v3948_v18  ;;  %v1929_v37 = vpop.f32.mrf.mxu3 }
 0x15e   :  { %2477 = vmatpush.bf16.msra.mxu3 %v3940_v23 }
 0x162   :  { %2478 = vmatpush.bf16.msra.mxu3 %v3932_v26 }
 0x166   :  { %2479 = vmatpush.bf16.msra.mxu3 %v3924_v38 }
 0x168   :  { %v1940_v43 = vpop.f32.mrf.mxu0 }
 0x169   :  { %2519 = vmatmul.bf16.vlgmr.msrb.gmra.mxu2 %v2041_v21  ;;  %v1941_v2 = vadd.f32 %v1940_v43, %v334_v59  ;;  %v4383_v43 = vld [vmem:[%s5002_s5 + $0x70] sm:$0xff]  ;;  %v4378_v59 = vld [vmem:[%s5002_s5 + $0x48] sm:$0xff] }
 0x16a   :  { %2524 = vmatpush.bf16.msrb.mxu3 %v3984_v29  ;;  %v4376_v29 = vld [vmem:[%s5002_s5 + $0x38] sm:$0xff]  ;;  %2687 = vmatpush.bf16.msra.mxu1 %v4383_v43 }
 0x16b   :  { %v1953_v45 = vpop.f32.mrf.mxu1  ;;  %2673 = vmatpush.bf16.msra.mxu0 %v4376_v29 }
 0x16c   :  { %v1954_v36 = vadd.f32 %v1953_v45, %v1941_v2 }
 0x16e   :  { %2525 = vmatpush.bf16.msrb.mxu3 %v3976_v44  ;;  %v4374_v44 = vld [vmem:[%s5002_s5 + $0x28] sm:$0xff] }
 0x16f   :  { %v1966_v49 = vpop.f32.mrf.mxu2  ;;  %2674 = vmatpush.bf16.msra.mxu0 %v4375_v31 }
 0x170   :  { %v1942_v54 = vpop.f32.mrf.mxu0  ;;  %v1967_v35 = vadd.f32 %v1966_v49, %v1954_v36  ;;  %v4371_v49 = vld [vmem:[%s5002_s5 + $0x10] sm:$0xff] }
 0x171   :  { %v4382_v54 = vld [vmem:[%s5002_s5 + $0x68] sm:$0xff] }
 0x172   :  { %v1979_v51 = vpop.f32.mrf.mxu3  ;;  %2526 = vmatpush.bf16.msrb.mxu3 %v3968_v48  ;;  %2688 = vmatpush.bf16.msra.mxu1 %v4382_v54 }
 0x173   :  { %v1955_v56 = vpop.f32.mrf.mxu1  ;;  %v1980_v34 = vadd.f32 %v1979_v51, %v1967_v35  ;;  %2675 = vmatpush.bf16.msra.mxu0 %v4374_v44 }
 0x174   :  { %v4381_v56 = vld [vmem:[%s5002_s5 + $0x60] sm:$0xff] }
 0x176   :  { %2527 = vmatpush.bf16.msrb.mxu3 %v3960_v55  ;;  %v4369_v55 = vld [vmem:[%s5002_s5] sm:$0xff]  ;;  %2689 = vmatpush.bf16.msra.mxu1 %v4381_v56 }
 0x177   :  { %v1968_v63 = vpop.f32.mrf.mxu2  ;;  %2676 = vmatpush.bf16.msra.mxu0 %v4373_v46 }
 0x17a   :  { %v1981_v0 = vpop.f32.mrf.mxu3  ;;  %2528 = vmatpush.bf16.msrb.mxu3 %v3952_v60  ;;  %2690 = vmatpush.bf16.msra.mxu1 %v4380_v57  ;;  %v4377_v60 = vld [vmem:[%s5002_s5 + $0x40] sm:$0xff] }
 0x17b   :  { %2677 = vmatpush.bf16.msra.mxu0 %v4372_v47 }
 0x17e   :  { %2529 = vmatpush.bf16.msrb.mxu3 %v3944_v33  ;;  %2691 = vmatpush.bf16.msra.mxu1 %v4379_v58 }
 0x17f   :  { %2678 = vmatpush.bf16.msra.mxu0 %v4371_v49 }
 0x182   :  { %2530 = vmatpush.bf16.msrb.mxu3 %v3936_v39  ;;  %2692 = vmatpush.bf16.msra.mxu1 %v4378_v59 }
 0x183   :  { %2679 = vmatpush.bf16.msra.mxu0 %v4370_v53 }
 0x186   :  { %2531 = vmatpush.bf16.msrb.mxu3 %v3928_v5  ;;  %2693 = vmatpush.bf16.msra.mxu1 %v4377_v60 }
 0x187   :  { %2680 = vmatpush.bf16.msra.mxu0 %v4369_v55 }
 0x188   :  { %v1992_v41 = vpop.f32.mrf.mxu0 }
 0x189   :  { %v2005_v42 = vpop.f32.mrf.mxu1  ;;  %v1993_v7 = vadd.f32 %v1992_v41, %v1980_v34  ;;  %v4388_v34 = vld [vmem:[%s5003_s6] ss:$0 sm:$0xff] }
 0x18b   :  { %v2006_v8 = vadd.f32 %v2005_v42, %v1993_v7 }
 0x190   :  { %v2018_v9 = vpop.f32.mrf.mxu2  ;;  %v1994_v13 = vpop.f32.mrf.mxu0 }
 0x191   :  { %v2019_v10 = vadd.f32 %v2018_v9, %v2006_v8  ;;  %v2031_v12 = vpop.f32.mrf.mxu3  ;;  %v2007_v14 = vpop.f32.mrf.mxu1 }
 0x193   :  { %v2032_v6 = vadd.f32 %v2031_v12, %v2019_v10 }
 0x195   :  { %v2038_v15 = vmax.f32 %v2032_v6, 0.0 }
 0x197   :  { %v2042_v16 = vpack.c.bf16 %v2038_v15, %v2038_v15 }
 0x198   :  { %v2020_v17 = vpop.f32.mrf.mxu2 }
 0x199   :  { %v2033_v18 = vpop.f32.mrf.mxu3  ;;  %2480 = vmatmul.bf16.vlgmr.msra.gmra.mxu3 %v2042_v16 }
 0x1a8   :  { %v2442_v20 = vpop.f32.mrf.mxu0 }
 0x1a9   :  { %v2443_v21 = vadd.f32 %v2442_v20, %v2109_v19  ;;  %v2455_v22 = vpop.f32.mrf.mxu1  ;;  %2532 = vmatmul.bf16.vlgmr.msrb.gmra.mxu3 %v2042_v16 }
 0x1ab   :  { %v2456_v23 = vadd.f32 %v2455_v22, %v2443_v21 }
 0x1b0   :  { %v2444_v37 = vpop.f32.mrf.mxu0 }
 0x1b1   :  { %v2457_v24 = vpop.f32.mrf.mxu1 }
 0x1c8   :  { %v2494_v26 = vpop.f32.mrf.mxu0 }
 0x1c9   :  { %v2495_v32 = vadd.f32 %v2494_v26, %v2110_v25  ;;  %v2507_v40 = vpop.f32.mrf.mxu1 }
 0x1cb   :  { %v2508_v38 = vadd.f32 %v2507_v40, %v2495_v32 }
 0x1d0   :  { %v2496_v28 = vpop.f32.mrf.mxu0 }
 0x1d1   :  { %v2509_v50 = vpop.f32.mrf.mxu1 }
 0x1dc   :  { %v2468_v45 = vpop.f32.mrf.mxu2 }
 0x1dd   :  { %v2469_v61 = vadd.f32 %v2468_v45, %v2456_v23 }
 0x1e4   :  { %v2470_v48 = vpop.f32.mrf.mxu2 }
 0x1ec   :  { %v2520_v51 = vpop.f32.mrf.mxu2 }
 0x1ed   :  { %v2521_v27 = vadd.f32 %v2520_v51, %v2508_v38 }
 0x1f4   :  { %v2522_v52 = vpop.f32.mrf.mxu2 }
 0x21c   :  { %v2481_v62 = vpop.f32.mrf.mxu3 }
 0x21d   :  { %v2482_v63 = vadd.f32 %v2481_v62, %v2469_v61 }
 0x21f   :  { %v2537_v0 = vmax.f32 %v2482_v63, 0.0 }
 0x221   :  { %v2539_v33 = vpack.c.bf16 %v2537_v0, %v2537_v0 }
 0x223   :  { %2681 = vmatmul.bf16.vlgmr.msra.gmra.mxu0 %v2539_v33 }
 0x224   :  { %v2483_v1 = vpop.f32.mrf.mxu3 }
 0x22c   :  { %v2533_v2 = vpop.f32.mrf.mxu3 }
 0x22d   :  { %v2534_v39 = vadd.f32 %v2533_v2, %v2521_v27 }
 0x22f   :  { %v2538_v3 = vmax.f32 %v2534_v39, 0.0 }
 0x231   :  { %v2540_v4 = vpack.c.bf16 %v2538_v3, %v2538_v3 }
 0x233   :  { %2694 = vmatmul.bf16.vlgmr.msra.gmra.mxu1 %v2540_v4 }
 0x234   :  { %v2535_v36 = vpop.f32.mrf.mxu3 }
 0x2a0   :  { %v2682_v5 = vpop.f32.mrf.mxu0 }
 0x2a1   :  { %v2683_v41 = vadd.f32 %v4388_v34, %v2682_v5 }
 0x2a8   :  { %v2684_v35 = vpop.f32.mrf.mxu0 }
 0x2b0   :  { %v2695_v42 = vpop.f32.mrf.mxu1 }
 0x2b1   :  { %v2696_v7 = vadd.f32 %v2695_v42, %v2683_v41 }
 0x2b3   :  { %2699 = vst [vmem:[%s5004_s7] sm:$0x3] %v2696_v7 }
 0x2b8   :  { %v2697_v8 = vpop.f32.mrf.mxu1 }
 0x2b9   :  { %2704 = vsyncpa [#allocation3], 1 }

</bundles_post_ra>
